<compile_context>
chip_gen: v7x
topology: tpu7x:2x2x1
jax: 0.10.0
libtpu: 0.0.40
codegen_flags: <defaults>
</compile_context>

<pallas_src>
import functools

import jax
import jax.numpy as jnp
from jax import lax
from jax.experimental import pallas as pl
from jax.experimental.pallas import tpu as pltpu

_OUT_LANES = 128  # lane-dense kernel output width


# ----------------------------------------------------------------------------
# Static per-layer configuration
# ----------------------------------------------------------------------------
def _layer_cfgs(nc, ngf, num_layers, spatial):
    cfgs = []
    h = spatial
    for i in range(num_layers):
        cin = nc if i == 0 else ngf * 2 ** (i - 1)
        cout = ngf * 2 ** i
        k = 3 if i == 0 else 4
        assert k in (3, 4)
        assert h % 2 == 0, "spatial size must stay even at every layer"
        oh = h // 2                               # Conv2d(k, stride=2, pad=1)
        wide = max(8, -(-oh // 8) * 8)            # output cols padded to 8*m sublanes
        hph = (h + 2) // 2                        # phase-split padded height
        wph = max((h + 2) // 2, 1 + wide)         # phase-split padded width
        assert 1 + oh <= hph
        cfgs.append(dict(k=k, cin=cin, cout=cout, oh=oh, wide=wide,
                         hph=hph, wph=wph,
                         use_bn=(i != 0 and i != num_layers - 1)))
        h = oh
    return cfgs


# ----------------------------------------------------------------------------
# Fused Pallas kernel: all conv layers + head, single invocation
# ----------------------------------------------------------------------------
def _fused_discriminator_kernel(*refs, cfgs, batch):
    n_layers = len(cfgs)
    a_ref = refs[0]                       # phase-split padded layer-0 input (f32)
    w_refs = refs[1:1 + n_layers]         # phase-packed weights: (4, 4*Cin, Cout) bf16
    wh_ref = refs[1 + n_layers]           # head 1x1-conv weight: (1, C_last) f32
    o_ref = refs[2 + n_layers]            # (batch, 128) lane-dense output
    act_scratch = refs[3 + n_layers:]     # VMEM scratch for layer-1.. inputs

    n = batch
    y4 = None
    for li, cfg in enumerate(cfgs):
        cin, cout = cfg["cin"], cfg["cout"]
        oh, wide = cfg["oh"], cfg["wide"]
        rows = n * oh * wide
        wq_ref = w_refs[li]

        # ---- conv (stride 2, pad 1): 4 phase-fused MXU matmuls, f32 accumulate
        acc = jnp.zeros((rows, cout), jnp.float32)
        for q in range(4):
            qi, qj = q // 2, q % 2
            win = a_ref[:, qi:qi + oh, qj:qj + wide, :]      # (n, oh, wide, 4*cin)
            acc = acc + jnp.dot(
                win.reshape(rows, 4 * cin).astype(jnp.bfloat16),
                wq_ref[q],
                preferred_element_type=jnp.float32)
        y4 = acc.reshape(n, oh, wide, cout)        # columns >= oh are padding

        # ---- BatchNorm2d (training-mode biased batch stats, gamma=1, beta=0)
        if cfg["use_bn"]:
            col = lax.broadcasted_iota(jnp.int32, (n, oh, wide, 1), 2)
            valid = col < oh
            count = float(n * oh * oh)
            masked = jnp.where(valid, y4, 0.0)
            mean = jnp.sum(masked, axis=(0, 1, 2), keepdims=True) / count
            cen = y4 - mean
            var = jnp.sum(jnp.where(valid, cen * cen, 0.0),
                          axis=(0, 1, 2), keepdims=True) / count
            y4 = cen * lax.rsqrt(var + 1e-5)

        # ---- LeakyReLU(0.2) ----
        y4 = jnp.where(y4 > 0, y4, 0.2 * y4)

        # ---- scatter into next layer's phase-split VMEM scratch, one
        #      lane-wide (n, 4*cout) store per destination pixel.
        if li + 1 < n_layers:
            nxt = act_scratch[li]
            n_valid = oh // 2 + 1                  # == cfgs[li+1]["hph"]
            wph_n = cfgs[li + 1]["wph"]
            zero_part = jnp.zeros((n, cout), jnp.float32)
            if wph_n > n_valid:                    # zero only never-written columns
                nxt[:, :, n_valid:, :] = jnp.zeros(
                    (n, n_valid, wph_n - n_valid, 4 * cout), jnp.float32)
            for i2 in range(n_valid):
                for j2 in range(n_valid):
                    parts = []
                    for r2 in range(2):
                        si = 2 * i2 + r2 - 1
                        for s2 in range(2):
                            sj = 2 * j2 + s2 - 1
                            if 0 <= si < oh and 0 <= sj < oh:
                                parts.append(y4[:, si, sj, :])
                            else:
                                parts.append(zero_part)
                    nxt[:, i2, j2, :] = jnp.concatenate(parts, axis=-1)
            a_ref = nxt

    # ---- head: AdaptiveAvgPool2d(1) (single masked reduce) + 1x1 conv + Sigmoid
    last = cfgs[-1]
    oh_l, wide_l, c_l = last["oh"], last["wide"], last["cout"]
    col = lax.broadcasted_iota(jnp.int32, (n, oh_l, wide_l, 1), 2)
    pooled = jnp.sum(jnp.where(col < oh_l, y4, 0.0), axis=(1, 2))
    pooled = pooled * (1.0 / float(oh_l * oh_l))                   # (n, c_l)
    logits = jnp.sum(pooled * wh_ref[...], axis=-1, keepdims=True)  # (n, 1)
    prob = jax.nn.sigmoid(logits)
    o_ref[...] = jnp.broadcast_to(prob, o_ref.shape).astype(o_ref.dtype)


# ----------------------------------------------------------------------------
# Wrapper: layout plumbing + single pallas_call
# ----------------------------------------------------------------------------
def _space_to_depth_pad(x_nhwc, target_w):
    """NHWC -> spatial pad 1 -> phase split A[n,i,j,(2r+s)C+c] = Xp[n,2i+r,2j+s,c]."""
    n, h, w, c = x_nhwc.shape
    xp = jnp.pad(x_nhwc, ((0, 0), (1, 1), (1, 1), (0, 0)))
    hp, wp = h + 2, w + 2
    a = (xp.reshape(n, hp // 2, 2, wp // 2, 2, c)
           .transpose(0, 1, 3, 2, 4, 5)
           .reshape(n, hp // 2, wp // 2, 4 * c))
    extra = target_w - wp // 2
    if extra > 0:
        a = jnp.pad(a, ((0, 0), (0, 0), (0, extra), (0, 0)))
    return a


def _pack_phase_weights(w, k):
    """(Cout, Cin, K, K) -> (4, 4*Cin, Cout) bf16; block q=(qi,qj), row ph*Cin+c
    holds tap (2*qi+ri, 2*qj+rj) with ph = 2*ri+rj (zeros for taps outside K)."""
    cout, cin = w.shape[0], w.shape[1]
    blocks = []
    for qi in range(2):
        for qj in range(2):
            rows = []
            for ri in range(2):
                for rj in range(2):
                    ki, kj = 2 * qi + ri, 2 * qj + rj
                    if ki < k and kj < k:
                        rows.append(jnp.transpose(w[:, :, ki, kj], (1, 0)))
                    else:
                        rows.append(jnp.zeros((cin, cout), w.dtype))
            blocks.append(jnp.concatenate(rows, axis=0))      # (4*Cin, Cout)
    return jnp.stack(blocks, axis=0).astype(jnp.bfloat16)     # (4, 4*Cin, Cout)


def discriminator_forward(x_nchw, conv_ws, w_final, *, nc, ngf, num_layers):
    n, c, h, w = x_nchw.shape
    assert c == nc and h == w
    cfgs = _layer_cfgs(nc, ngf, num_layers, h)

    x = jnp.transpose(x_nchw, (0, 2, 3, 1)).astype(jnp.float32)      # NCHW -> NHWC
    a0 = _space_to_depth_pad(x, cfgs[0]["wph"])
    w_packed = [_pack_phase_weights(wl, cfgs[i]["k"]) for i, wl in enumerate(conv_ws)]
    wh = w_final.reshape(1, w_final.shape[1]).astype(jnp.float32)    # (1, C_last)

    kernel = functools.partial(_fused_discriminator_kernel, cfgs=cfgs, batch=n)
    vmem = pltpu.MemorySpace.VMEM
    out = pl.pallas_call(
        kernel,
        out_shape=jax.ShapeDtypeStruct((n, _OUT_LANES), jnp.float32),
        in_specs=[pl.BlockSpec(memory_space=vmem)] * (num_layers + 2),
        out_specs=pl.BlockSpec(memory_space=vmem),
        scratch_shapes=[
            pltpu.VMEM((n, cfg["hph"], cfg["wph"], 4 * cfg["cin"]), jnp.float32)
            for cfg in cfgs[1:]
        ],
        compiler_params=pltpu.CompilerParams(vmem_limit_bytes=32 * 1024 * 1024),
    )(a0, *w_packed, wh)
    return out[:, :1].reshape(n, 1, 1, 1)            # matches PyTorch (N, 1, 1, 1)


# ----------------------------------------------------------------------------
# Pure-JAX reference (f32 HIGHEST) and synthetic params
# ----------------------------------------------------------------------------
def reference_forward(x_nchw, conv_ws, w_final, num_layers):
    x = jnp.transpose(x_nchw, (0, 2, 3, 1)).astype(jnp.float32)
    for i, wl in enumerate(conv_ws):
        w_hwio = jnp.transpose(wl, (2, 3, 1, 0))
        x = lax.conv_general_dilated(
            x, w_hwio, window_strides=(2, 2), padding=((1, 1), (1, 1)),
            dimension_numbers=("NHWC", "HWIO", "NHWC"),
            precision=lax.Precision.HIGHEST)
        if i != 0 and i != num_layers - 1:
            mean = jnp.mean(x, axis=(0, 1, 2), keepdims=True)
            var = jnp.mean((x - mean) ** 2, axis=(0, 1, 2), keepdims=True)
            x = (x - mean) * lax.rsqrt(var + 1e-5)
        x = jnp.where(x > 0, x, 0.2 * x)
    pooled = jnp.mean(x, axis=(1, 2))                                # (N, C)
    w_vec = w_final.reshape(-1)
    logits = jnp.sum(pooled * w_vec[None, :], axis=-1, keepdims=True)
    return jax.nn.sigmoid(logits).reshape(-1, 1, 1, 1)


def init_params(key, nc, ngf, num_layers):
    """Deterministic synthetic weights with the exact PyTorch conv shapes."""
    conv_ws = []
    for i in range(num_layers):
        cin = nc if i == 0 else ngf * 2 ** (i - 1)
        cout = ngf * 2 ** i
        k = 3 if i == 0 else 4
        key, sub = jax.random.split(key)
        conv_ws.append(jax.random.normal(sub, (cout, cin, k, k), jnp.float32) * 0.05)
    key, sub = jax.random.split(key)
    w_final = jax.random.normal(
        sub, (1, ngf * 2 ** (num_layers - 1), 1, 1), jnp.float32) * 0.05
    return conv_ws, w_final


# ----------------------------------------------------------------------------
if __name__ == "__main__":
    nc, ngf, num_layers = 3, 8, 3
    batch, spatial = 2, 16

    key = jax.random.PRNGKey(0)
    key, kx = jax.random.split(key)
    data_in = jax.random.normal(kx, (batch, nc, spatial, spatial), jnp.float32)
    conv_ws, w_final = init_params(key, nc, ngf, num_layers)

    fwd = jax.jit(functools.partial(discriminator_forward,
                                    nc=nc, ngf=ngf, num_layers=num_layers))
    out = jax.block_until_ready(fwd(data_in, conv_ws, w_final))
    ref = jax.block_until_ready(reference_forward(data_in, conv_ws, w_final, num_layers))

    assert out.shape == (batch, 1, 1, 1)
    assert bool(jnp.all((out >= 0.0) & (out <= 1.0)))
    # bf16 MXU operands vs f32 HIGHEST reference -> slightly loosened tolerance.
    assert bool(jnp.allclose(out, ref, atol=2e-2, rtol=2e-2)), (out, ref)
    print("KERNEL_OK")
</pallas_src>

<mosaic_0001>
module attributes {stable_mosaic.version = 11 : i64} {
  func.func @_fused_discriminator_kernel(%arg0: memref<2x9x9x12xf32, #tpu.memory_space<vmem>>, %arg1: memref<4x12x8xbf16, #tpu.memory_space<vmem>>, %arg2: memref<4x32x16xbf16, #tpu.memory_space<vmem>>, %arg3: memref<4x64x32xbf16, #tpu.memory_space<vmem>>, %arg4: memref<1x32xf32, #tpu.memory_space<vmem>>, %arg5: memref<2x128xf32, #tpu.memory_space<vmem>>, %arg6: memref<2x5x9x32xf32, #tpu.memory_space<vmem>>, %arg7: memref<2x3x9x64xf32, #tpu.memory_space<vmem>>) attributes {dimension_semantics = [], scalar_prefetch = 0 : i64, scratch_operands = 2 : i64, tpu.core_type = #tpu.core_type<tc>} {
    %cst = arith.constant 0.000000e+00 : f32
    %0 = vector.broadcast %cst : f32 to vector<128x8xf32>
    %c0 = arith.constant 0 : index
    %c0_0 = arith.constant 0 : index
    %c0_1 = arith.constant 0 : index
    %c0_2 = arith.constant 0 : index
    %1 = vector.load %arg0[%c0, %c0_0, %c0_1, %c0_2] : memref<2x9x9x12xf32, #tpu.memory_space<vmem>>, vector<2x8x8x12xf32>
    %2 = vector.shape_cast %1 : vector<2x8x8x12xf32> to vector<128x12xf32>
    %3 = arith.truncf %2 : vector<128x12xf32> to vector<128x12xbf16>
    %c0_3 = arith.constant 0 : index
    %c0_4 = arith.constant 0 : index
    %c0_5 = arith.constant 0 : index
    %4 = vector.load %arg1[%c0_3, %c0_4, %c0_5] : memref<4x12x8xbf16, #tpu.memory_space<vmem>>, vector<1x12x8xbf16>
    %5 = vector.shape_cast %4 : vector<1x12x8xbf16> to vector<12x8xbf16>
    %cst_6 = arith.constant dense<0.000000e+00> : vector<128x8xf32>
    %6 = tpu.matmul %3, %5, %cst_6 {dimension_numbers = #tpu.dot_dimension_numbers<[1], [0], [0], [1], [0, 0, 1, 1], [], []>} : vector<128x12xbf16>, vector<12x8xbf16>, vector<128x8xf32> -> vector<128x8xf32>
    %7 = arith.addf %0, %6 : vector<128x8xf32>
    %c0_7 = arith.constant 0 : index
    %c0_8 = arith.constant 0 : index
    %c1 = arith.constant 1 : index
    %c0_9 = arith.constant 0 : index
    %8 = vector.load %arg0[%c0_7, %c0_8, %c1, %c0_9] : memref<2x9x9x12xf32, #tpu.memory_space<vmem>>, vector<2x8x8x12xf32>
    %9 = vector.shape_cast %8 : vector<2x8x8x12xf32> to vector<128x12xf32>
    %10 = arith.truncf %9 : vector<128x12xf32> to vector<128x12xbf16>
    %c1_10 = arith.constant 1 : index
    %c0_11 = arith.constant 0 : index
    %c0_12 = arith.constant 0 : index
    %11 = vector.load %arg1[%c1_10, %c0_11, %c0_12] : memref<4x12x8xbf16, #tpu.memory_space<vmem>>, vector<1x12x8xbf16>
    %12 = vector.shape_cast %11 : vector<1x12x8xbf16> to vector<12x8xbf16>
    %cst_13 = arith.constant dense<0.000000e+00> : vector<128x8xf32>
    %13 = tpu.matmul %10, %12, %cst_13 {dimension_numbers = #tpu.dot_dimension_numbers<[1], [0], [0], [1], [0, 0, 1, 1], [], []>} : vector<128x12xbf16>, vector<12x8xbf16>, vector<128x8xf32> -> vector<128x8xf32>
    %14 = arith.addf %7, %13 : vector<128x8xf32>
    %c0_14 = arith.constant 0 : index
    %c1_15 = arith.constant 1 : index
    %c0_16 = arith.constant 0 : index
    %c0_17 = arith.constant 0 : index
    %15 = vector.load %arg0[%c0_14, %c1_15, %c0_16, %c0_17] : memref<2x9x9x12xf32, #tpu.memory_space<vmem>>, vector<2x8x8x12xf32>
    %16 = vector.shape_cast %15 : vector<2x8x8x12xf32> to vector<128x12xf32>
    %17 = arith.truncf %16 : vector<128x12xf32> to vector<128x12xbf16>
    %c2 = arith.constant 2 : index
    %c0_18 = arith.constant 0 : index
    %c0_19 = arith.constant 0 : index
    %18 = vector.load %arg1[%c2, %c0_18, %c0_19] : memref<4x12x8xbf16, #tpu.memory_space<vmem>>, vector<1x12x8xbf16>
    %19 = vector.shape_cast %18 : vector<1x12x8xbf16> to vector<12x8xbf16>
    %cst_20 = arith.constant dense<0.000000e+00> : vector<128x8xf32>
    %20 = tpu.matmul %17, %19, %cst_20 {dimension_numbers = #tpu.dot_dimension_numbers<[1], [0], [0], [1], [0, 0, 1, 1], [], []>} : vector<128x12xbf16>, vector<12x8xbf16>, vector<128x8xf32> -> vector<128x8xf32>
    %21 = arith.addf %14, %20 : vector<128x8xf32>
    %c0_21 = arith.constant 0 : index
    %c1_22 = arith.constant 1 : index
    %c1_23 = arith.constant 1 : index
    %c0_24 = arith.constant 0 : index
    %22 = vector.load %arg0[%c0_21, %c1_22, %c1_23, %c0_24] : memref<2x9x9x12xf32, #tpu.memory_space<vmem>>, vector<2x8x8x12xf32>
    %23 = vector.shape_cast %22 : vector<2x8x8x12xf32> to vector<128x12xf32>
    %24 = arith.truncf %23 : vector<128x12xf32> to vector<128x12xbf16>
    %c3 = arith.constant 3 : index
    %c0_25 = arith.constant 0 : index
    %c0_26 = arith.constant 0 : index
    %25 = vector.load %arg1[%c3, %c0_25, %c0_26] : memref<4x12x8xbf16, #tpu.memory_space<vmem>>, vector<1x12x8xbf16>
    %26 = vector.shape_cast %25 : vector<1x12x8xbf16> to vector<12x8xbf16>
    %cst_27 = arith.constant dense<0.000000e+00> : vector<128x8xf32>
    %27 = tpu.matmul %24, %26, %cst_27 {dimension_numbers = #tpu.dot_dimension_numbers<[1], [0], [0], [1], [0, 0, 1, 1], [], []>} : vector<128x12xbf16>, vector<12x8xbf16>, vector<128x8xf32> -> vector<128x8xf32>
    %28 = arith.addf %21, %27 : vector<128x8xf32>
    %29 = vector.shape_cast %28 : vector<128x8xf32> to vector<2x8x8x8xf32>
    %cst_28 = arith.constant 0.000000e+00 : f32
    %30 = vector.broadcast %cst_28 : f32 to vector<2x8x8x8xf32>
    %31 = arith.cmpf ogt, %29, %30 : vector<2x8x8x8xf32>
    %cst_29 = arith.constant 2.000000e-01 : f32
    %32 = vector.broadcast %cst_29 : f32 to vector<2x8x8x8xf32>
    %33 = arith.mulf %32, %29 : vector<2x8x8x8xf32>
    %34 = arith.select %31, %29, %33 : vector<2x8x8x8xi1>, vector<2x8x8x8xf32>
    %cst_30 = arith.constant 0.000000e+00 : f32
    %35 = vector.broadcast %cst_30 : f32 to vector<2x8xf32>
    %cst_31 = arith.constant 0.000000e+00 : f32
    %36 = vector.broadcast %cst_31 : f32 to vector<2x5x4x32xf32>
    %c0_32 = arith.constant 0 : index
    %c0_33 = arith.constant 0 : index
    %c5 = arith.constant 5 : index
    %c0_34 = arith.constant 0 : index
    %37 = vector.load %arg6[%c0_32, %c0_33, %c5, %c0_34] : memref<2x5x9x32xf32, #tpu.memory_space<vmem>>, vector<2x5x4x32xf32>
    tpu.vector_store %arg6[%c0_32, %c0_33, %c5, %c0_34], %36 {strides = array<i32>} : memref<2x5x9x32xf32, #tpu.memory_space<vmem>>, vector<2x5x4x32xf32>,
    %38 = vector.extract_strided_slice %34 {offsets = [0, 0, 0, 0], sizes = [2, 1, 1, 8], strides = [1, 1, 1, 1]} : vector<2x8x8x8xf32> to vector<2x1x1x8xf32>
    %39 = vector.shape_cast %38 : vector<2x1x1x8xf32> to vector<2x8xf32>
    %40 = tpu.concatenate %35, %35, %35, %39 in 1 : vector<2x8xf32>, vector<2x8xf32>, vector<2x8xf32>, vector<2x8xf32> -> vector<2x32xf32>
    %c0_35 = arith.constant 0 : index
    %c0_36 = arith.constant 0 : index
    %c0_37 = arith.constant 0 : index
    %c0_38 = arith.constant 0 : index
    %41 = vector.load %arg6[%c0_35, %c0_36, %c0_37, %c0_38] : memref<2x5x9x32xf32, #tpu.memory_space<vmem>>, vector<2x1x1x32xf32>
    %42 = vector.shape_cast %41 : vector<2x1x1x32xf32> to vector<2x32xf32>
    %43 = vector.shape_cast %40 : vector<2x32xf32> to vector<2x1x1x32xf32>
    tpu.vector_store %arg6[%c0_35, %c0_36, %c0_37, %c0_38], %43 {strides = array<i32>} : memref<2x5x9x32xf32, #tpu.memory_space<vmem>>, vector<2x1x1x32xf32>,
    %44 = vector.extract_strided_slice %34 {offsets = [0, 0, 1, 0], sizes = [2, 1, 1, 8], strides = [1, 1, 1, 1]} : vector<2x8x8x8xf32> to vector<2x1x1x8xf32>
    %45 = vector.shape_cast %44 : vector<2x1x1x8xf32> to vector<2x8xf32>
    %46 = vector.extract_strided_slice %34 {offsets = [0, 0, 2, 0], sizes = [2, 1, 1, 8], strides = [1, 1, 1, 1]} : vector<2x8x8x8xf32> to vector<2x1x1x8xf32>
    %47 = vector.shape_cast %46 : vector<2x1x1x8xf32> to vector<2x8xf32>
    %48 = tpu.concatenate %35, %35, %45, %47 in 1 : vector<2x8xf32>, vector<2x8xf32>, vector<2x8xf32>, vector<2x8xf32> -> vector<2x32xf32>
    %c0_39 = arith.constant 0 : index
    %c0_40 = arith.constant 0 : index
    %c1_41 = arith.constant 1 : index
    %c0_42 = arith.constant 0 : index
    %49 = vector.load %arg6[%c0_39, %c0_40, %c1_41, %c0_42] : memref<2x5x9x32xf32, #tpu.memory_space<vmem>>, vector<2x1x1x32xf32>
    %50 = vector.shape_cast %49 : vector<2x1x1x32xf32> to vector<2x32xf32>
    %51 = vector.shape_cast %48 : vector<2x32xf32> to vector<2x1x1x32xf32>
    tpu.vector_store %arg6[%c0_39, %c0_40, %c1_41, %c0_42], %51 {strides = array<i32>} : memref<2x5x9x32xf32, #tpu.memory_space<vmem>>, vector<2x1x1x32xf32>,
    %52 = vector.extract_strided_slice %34 {offsets = [0, 0, 3, 0], sizes = [2, 1, 1, 8], strides = [1, 1, 1, 1]} : vector<2x8x8x8xf32> to vector<2x1x1x8xf32>
    %53 = vector.shape_cast %52 : vector<2x1x1x8xf32> to vector<2x8xf32>
    %54 = vector.extract_strided_slice %34 {offsets = [0, 0, 4, 0], sizes = [2, 1, 1, 8], strides = [1, 1, 1, 1]} : vector<2x8x8x8xf32> to vector<2x1x1x8xf32>
    %55 = vector.shape_cast %54 : vector<2x1x1x8xf32> to vector<2x8xf32>
    %56 = tpu.concatenate %35, %35, %53, %55 in 1 : vector<2x8xf32>, vector<2x8xf32>, vector<2x8xf32>, vector<2x8xf32> -> vector<2x32xf32>
    %c0_43 = arith.constant 0 : index
    %c0_44 = arith.constant 0 : index
    %c2_45 = arith.constant 2 : index
    %c0_46 = arith.constant 0 : index
    %57 = vector.load %arg6[%c0_43, %c0_44, %c2_45, %c0_46] : memref<2x5x9x32xf32, #tpu.memory_space<vmem>>, vector<2x1x1x32xf32>
    %58 = vector.shape_cast %57 : vector<2x1x1x32xf32> to vector<2x32xf32>
    %59 = vector.shape_cast %56 : vector<2x32xf32> to vector<2x1x1x32xf32>
    tpu.vector_store %arg6[%c0_43, %c0_44, %c2_45, %c0_46], %59 {strides = array<i32>} : memref<2x5x9x32xf32, #tpu.memory_space<vmem>>, vector<2x1x1x32xf32>,
    %60 = vector.extract_strided_slice %34 {offsets = [0, 0, 5, 0], sizes = [2, 1, 1, 8], strides = [1, 1, 1, 1]} : vector<2x8x8x8xf32> to vector<2x1x1x8xf32>
    %61 = vector.shape_cast %60 : vector<2x1x1x8xf32> to vector<2x8xf32>
    %62 = vector.extract_strided_slice %34 {offsets = [0, 0, 6, 0], sizes = [2, 1, 1, 8], strides = [1, 1, 1, 1]} : vector<2x8x8x8xf32> to vector<2x1x1x8xf32>
    %63 = vector.shape_cast %62 : vector<2x1x1x8xf32> to vector<2x8xf32>
    %64 = tpu.concatenate %35, %35, %61, %63 in 1 : vector<2x8xf32>, vector<2x8xf32>, vector<2x8xf32>, vector<2x8xf32> -> vector<2x32xf32>
    %c0_47 = arith.constant 0 : index
    %c0_48 = arith.constant 0 : index
    %c3_49 = arith.constant 3 : index
    %c0_50 = arith.constant 0 : index
    %65 = vector.load %arg6[%c0_47, %c0_48, %c3_49, %c0_50] : memref<2x5x9x32xf32, #tpu.memory_space<vmem>>, vector<2x1x1x32xf32>
    %66 = vector.shape_cast %65 : vector<2x1x1x32xf32> to vector<2x32xf32>
    %67 = vector.shape_cast %64 : vector<2x32xf32> to vector<2x1x1x32xf32>
    tpu.vector_store %arg6[%c0_47, %c0_48, %c3_49, %c0_50], %67 {strides = array<i32>} : memref<2x5x9x32xf32, #tpu.memory_space<vmem>>, vector<2x1x1x32xf32>,
    %68 = vector.extract_strided_slice %34 {offsets = [0, 0, 7, 0], sizes = [2, 1, 1, 8], strides = [1, 1, 1, 1]} : vector<2x8x8x8xf32> to vector<2x1x1x8xf32>
    %69 = vector.shape_cast %68 : vector<2x1x1x8xf32> to vector<2x8xf32>
    %70 = tpu.concatenate %35, %35, %69, %35 in 1 : vector<2x8xf32>, vector<2x8xf32>, vector<2x8xf32>, vector<2x8xf32> -> vector<2x32xf32>
    %c0_51 = arith.constant 0 : index
    %c0_52 = arith.constant 0 : index
    %c4 = arith.constant 4 : index
    %c0_53 = arith.constant 0 : index
    %71 = vector.load %arg6[%c0_51, %c0_52, %c4, %c0_53] : memref<2x5x9x32xf32, #tpu.memory_space<vmem>>, vector<2x1x1x32xf32>
    %72 = vector.shape_cast %71 : vector<2x1x1x32xf32> to vector<2x32xf32>
    %73 = vector.shape_cast %70 : vector<2x32xf32> to vector<2x1x1x32xf32>
    tpu.vector_store %arg6[%c0_51, %c0_52, %c4, %c0_53], %73 {strides = array<i32>} : memref<2x5x9x32xf32, #tpu.memory_space<vmem>>, vector<2x1x1x32xf32>,
    %74 = vector.extract_strided_slice %34 {offsets = [0, 1, 0, 0], sizes = [2, 1, 1, 8], strides = [1, 1, 1, 1]} : vector<2x8x8x8xf32> to vector<2x1x1x8xf32>
    %75 = vector.shape_cast %74 : vector<2x1x1x8xf32> to vector<2x8xf32>
    %76 = vector.extract_strided_slice %34 {offsets = [0, 2, 0, 0], sizes = [2, 1, 1, 8], strides = [1, 1, 1, 1]} : vector<2x8x8x8xf32> to vector<2x1x1x8xf32>
    %77 = vector.shape_cast %76 : vector<2x1x1x8xf32> to vector<2x8xf32>
    %78 = tpu.concatenate %35, %75, %35, %77 in 1 : vector<2x8xf32>, vector<2x8xf32>, vector<2x8xf32>, vector<2x8xf32> -> vector<2x32xf32>
    %c0_54 = arith.constant 0 : index
    %c1_55 = arith.constant 1 : index
    %c0_56 = arith.constant 0 : index
    %c0_57 = arith.constant 0 : index
    %79 = vector.load %arg6[%c0_54, %c1_55, %c0_56, %c0_57] : memref<2x5x9x32xf32, #tpu.memory_space<vmem>>, vector<2x1x1x32xf32>
    %80 = vector.shape_cast %79 : vector<2x1x1x32xf32> to vector<2x32xf32>
    %81 = vector.shape_cast %78 : vector<2x32xf32> to vector<2x1x1x32xf32>
    tpu.vector_store %arg6[%c0_54, %c1_55, %c0_56, %c0_57], %81 {strides = array<i32>} : memref<2x5x9x32xf32, #tpu.memory_space<vmem>>, vector<2x1x1x32xf32>,
    %82 = vector.extract_strided_slice %34 {offsets = [0, 1, 1, 0], sizes = [2, 1, 1, 8], strides = [1, 1, 1, 1]} : vector<2x8x8x8xf32> to vector<2x1x1x8xf32>
    %83 = vector.shape_cast %82 : vector<2x1x1x8xf32> to vector<2x8xf32>
    %84 = vector.extract_strided_slice %34 {offsets = [0, 1, 2, 0], sizes = [2, 1, 1, 8], strides = [1, 1, 1, 1]} : vector<2x8x8x8xf32> to vector<2x1x1x8xf32>
    %85 = vector.shape_cast %84 : vector<2x1x1x8xf32> to vector<2x8xf32>
    %86 = vector.extract_strided_slice %34 {offsets = [0, 2, 1, 0], sizes = [2, 1, 1, 8], strides = [1, 1, 1, 1]} : vector<2x8x8x8xf32> to vector<2x1x1x8xf32>
    %87 = vector.shape_cast %86 : vector<2x1x1x8xf32> to vector<2x8xf32>
    %88 = vector.extract_strided_slice %34 {offsets = [0, 2, 2, 0], sizes = [2, 1, 1, 8], strides = [1, 1, 1, 1]} : vector<2x8x8x8xf32> to vector<2x1x1x8xf32>
    %89 = vector.shape_cast %88 : vector<2x1x1x8xf32> to vector<2x8xf32>
    %90 = tpu.concatenate %83, %85, %87, %89 in 1 : vector<2x8xf32>, vector<2x8xf32>, vector<2x8xf32>, vector<2x8xf32> -> vector<2x32xf32>
    %c0_58 = arith.constant 0 : index
    %c1_59 = arith.constant 1 : index
    %c1_60 = arith.constant 1 : index
    %c0_61 = arith.constant 0 : index
    %91 = vector.load %arg6[%c0_58, %c1_59, %c1_60, %c0_61] : memref<2x5x9x32xf32, #tpu.memory_space<vmem>>, vector<2x1x1x32xf32>
    %92 = vector.shape_cast %91 : vector<2x1x1x32xf32> to vector<2x32xf32>
    %93 = vector.shape_cast %90 : vector<2x32xf32> to vector<2x1x1x32xf32>
    tpu.vector_store %arg6[%c0_58, %c1_59, %c1_60, %c0_61], %93 {strides = array<i32>} : memref<2x5x9x32xf32, #tpu.memory_space<vmem>>, vector<2x1x1x32xf32>,
    %94 = vector.extract_strided_slice %34 {offsets = [0, 1, 3, 0], sizes = [2, 1, 1, 8], strides = [1, 1, 1, 1]} : vector<2x8x8x8xf32> to vector<2x1x1x8xf32>
    %95 = vector.shape_cast %94 : vector<2x1x1x8xf32> to vector<2x8xf32>
    %96 = vector.extract_strided_slice %34 {offsets = [0, 1, 4, 0], sizes = [2, 1, 1, 8], strides = [1, 1, 1, 1]} : vector<2x8x8x8xf32> to vector<2x1x1x8xf32>
    %97 = vector.shape_cast %96 : vector<2x1x1x8xf32> to vector<2x8xf32>
    %98 = vector.extract_strided_slice %34 {offsets = [0, 2, 3, 0], sizes = [2, 1, 1, 8], strides = [1, 1, 1, 1]} : vector<2x8x8x8xf32> to vector<2x1x1x8xf32>
    %99 = vector.shape_cast %98 : vector<2x1x1x8xf32> to vector<2x8xf32>
    %100 = vector.extract_strided_slice %34 {offsets = [0, 2, 4, 0], sizes = [2, 1, 1, 8], strides = [1, 1, 1, 1]} : vector<2x8x8x8xf32> to vector<2x1x1x8xf32>
    %101 = vector.shape_cast %100 : vector<2x1x1x8xf32> to vector<2x8xf32>
    %102 = tpu.concatenate %95, %97, %99, %101 in 1 : vector<2x8xf32>, vector<2x8xf32>, vector<2x8xf32>, vector<2x8xf32> -> vector<2x32xf32>
    %c0_62 = arith.constant 0 : index
    %c1_63 = arith.constant 1 : index
    %c2_64 = arith.constant 2 : index
    %c0_65 = arith.constant 0 : index
    %103 = vector.load %arg6[%c0_62, %c1_63, %c2_64, %c0_65] : memref<2x5x9x32xf32, #tpu.memory_space<vmem>>, vector<2x1x1x32xf32>
    %104 = vector.shape_cast %103 : vector<2x1x1x32xf32> to vector<2x32xf32>
    %105 = vector.shape_cast %102 : vector<2x32xf32> to vector<2x1x1x32xf32>
    tpu.vector_store %arg6[%c0_62, %c1_63, %c2_64, %c0_65], %105 {strides = array<i32>} : memref<2x5x9x32xf32, #tpu.memory_space<vmem>>, vector<2x1x1x32xf32>,
    %106 = vector.extract_strided_slice %34 {offsets = [0, 1, 5, 0], sizes = [2, 1, 1, 8], strides = [1, 1, 1, 1]} : vector<2x8x8x8xf32> to vector<2x1x1x8xf32>
    %107 = vector.shape_cast %106 : vector<2x1x1x8xf32> to vector<2x8xf32>
    %108 = vector.extract_strided_slice %34 {offsets = [0, 1, 6, 0], sizes = [2, 1, 1, 8], strides = [1, 1, 1, 1]} : vector<2x8x8x8xf32> to vector<2x1x1x8xf32>
    %109 = vector.shape_cast %108 : vector<2x1x1x8xf32> to vector<2x8xf32>
    %110 = vector.extract_strided_slice %34 {offsets = [0, 2, 5, 0], sizes = [2, 1, 1, 8], strides = [1, 1, 1, 1]} : vector<2x8x8x8xf32> to vector<2x1x1x8xf32>
    %111 = vector.shape_cast %110 : vector<2x1x1x8xf32> to vector<2x8xf32>
    %112 = vector.extract_strided_slice %34 {offsets = [0, 2, 6, 0], sizes = [2, 1, 1, 8], strides = [1, 1, 1, 1]} : vector<2x8x8x8xf32> to vector<2x1x1x8xf32>
    %113 = vector.shape_cast %112 : vector<2x1x1x8xf32> to vector<2x8xf32>
    %114 = tpu.concatenate %107, %109, %111, %113 in 1 : vector<2x8xf32>, vector<2x8xf32>, vector<2x8xf32>, vector<2x8xf32> -> vector<2x32xf32>
    %c0_66 = arith.constant 0 : index
    %c1_67 = arith.constant 1 : index
    %c3_68 = arith.constant 3 : index
    %c0_69 = arith.constant 0 : index
    %115 = vector.load %arg6[%c0_66, %c1_67, %c3_68, %c0_69] : memref<2x5x9x32xf32, #tpu.memory_space<vmem>>, vector<2x1x1x32xf32>
    %116 = vector.shape_cast %115 : vector<2x1x1x32xf32> to vector<2x32xf32>
    %117 = vector.shape_cast %114 : vector<2x32xf32> to vector<2x1x1x32xf32>
    tpu.vector_store %arg6[%c0_66, %c1_67, %c3_68, %c0_69], %117 {strides = array<i32>} : memref<2x5x9x32xf32, #tpu.memory_space<vmem>>, vector<2x1x1x32xf32>,
    %118 = vector.extract_strided_slice %34 {offsets = [0, 1, 7, 0], sizes = [2, 1, 1, 8], strides = [1, 1, 1, 1]} : vector<2x8x8x8xf32> to vector<2x1x1x8xf32>
    %119 = vector.shape_cast %118 : vector<2x1x1x8xf32> to vector<2x8xf32>
    %120 = vector.extract_strided_slice %34 {offsets = [0, 2, 7, 0], sizes = [2, 1, 1, 8], strides = [1, 1, 1, 1]} : vector<2x8x8x8xf32> to vector<2x1x1x8xf32>
    %121 = vector.shape_cast %120 : vector<2x1x1x8xf32> to vector<2x8xf32>
    %122 = tpu.concatenate %119, %35, %121, %35 in 1 : vector<2x8xf32>, vector<2x8xf32>, vector<2x8xf32>, vector<2x8xf32> -> vector<2x32xf32>
    %c0_70 = arith.constant 0 : index
    %c1_71 = arith.constant 1 : index
    %c4_72 = arith.constant 4 : index
    %c0_73 = arith.constant 0 : index
    %123 = vector.load %arg6[%c0_70, %c1_71, %c4_72, %c0_73] : memref<2x5x9x32xf32, #tpu.memory_space<vmem>>, vector<2x1x1x32xf32>
    %124 = vector.shape_cast %123 : vector<2x1x1x32xf32> to vector<2x32xf32>
    %125 = vector.shape_cast %122 : vector<2x32xf32> to vector<2x1x1x32xf32>
    tpu.vector_store %arg6[%c0_70, %c1_71, %c4_72, %c0_73], %125 {strides = array<i32>} : memref<2x5x9x32xf32, #tpu.memory_space<vmem>>, vector<2x1x1x32xf32>,
    %126 = vector.extract_strided_slice %34 {offsets = [0, 3, 0, 0], sizes = [2, 1, 1, 8], strides = [1, 1, 1, 1]} : vector<2x8x8x8xf32> to vector<2x1x1x8xf32>
    %127 = vector.shape_cast %126 : vector<2x1x1x8xf32> to vector<2x8xf32>
    %128 = vector.extract_strided_slice %34 {offsets = [0, 4, 0, 0], sizes = [2, 1, 1, 8], strides = [1, 1, 1, 1]} : vector<2x8x8x8xf32> to vector<2x1x1x8xf32>
    %129 = vector.shape_cast %128 : vector<2x1x1x8xf32> to vector<2x8xf32>
    %130 = tpu.concatenate %35, %127, %35, %129 in 1 : vector<2x8xf32>, vector<2x8xf32>, vector<2x8xf32>, vector<2x8xf32> -> vector<2x32xf32>
    %c0_74 = arith.constant 0 : index
    %c2_75 = arith.constant 2 : index
    %c0_76 = arith.constant 0 : index
    %c0_77 = arith.constant 0 : index
    %131 = vector.load %arg6[%c0_74, %c2_75, %c0_76, %c0_77] : memref<2x5x9x32xf32, #tpu.memory_space<vmem>>, vector<2x1x1x32xf32>
    %132 = vector.shape_cast %131 : vector<2x1x1x32xf32> to vector<2x32xf32>
    %133 = vector.shape_cast %130 : vector<2x32xf32> to vector<2x1x1x32xf32>
    tpu.vector_store %arg6[%c0_74, %c2_75, %c0_76, %c0_77], %133 {strides = array<i32>} : memref<2x5x9x32xf32, #tpu.memory_space<vmem>>, vector<2x1x1x32xf32>,
    %134 = vector.extract_strided_slice %34 {offsets = [0, 3, 1, 0], sizes = [2, 1, 1, 8], strides = [1, 1, 1, 1]} : vector<2x8x8x8xf32> to vector<2x1x1x8xf32>
    %135 = vector.shape_cast %134 : vector<2x1x1x8xf32> to vector<2x8xf32>
    %136 = vector.extract_strided_slice %34 {offsets = [0, 3, 2, 0], sizes = [2, 1, 1, 8], strides = [1, 1, 1, 1]} : vector<2x8x8x8xf32> to vector<2x1x1x8xf32>
    %137 = vector.shape_cast %136 : vector<2x1x1x8xf32> to vector<2x8xf32>
    %138 = vector.extract_strided_slice %34 {offsets = [0, 4, 1, 0], sizes = [2, 1, 1, 8], strides = [1, 1, 1, 1]} : vector<2x8x8x8xf32> to vector<2x1x1x8xf32>
    %139 = vector.shape_cast %138 : vector<2x1x1x8xf32> to vector<2x8xf32>
    %140 = vector.extract_strided_slice %34 {offsets = [0, 4, 2, 0], sizes = [2, 1, 1, 8], strides = [1, 1, 1, 1]} : vector<2x8x8x8xf32> to vector<2x1x1x8xf32>
    %141 = vector.shape_cast %140 : vector<2x1x1x8xf32> to vector<2x8xf32>
    %142 = tpu.concatenate %135, %137, %139, %141 in 1 : vector<2x8xf32>, vector<2x8xf32>, vector<2x8xf32>, vector<2x8xf32> -> vector<2x32xf32>
    %c0_78 = arith.constant 0 : index
    %c2_79 = arith.constant 2 : index
    %c1_80 = arith.constant 1 : index
    %c0_81 = arith.constant 0 : index
    %143 = vector.load %arg6[%c0_78, %c2_79, %c1_80, %c0_81] : memref<2x5x9x32xf32, #tpu.memory_space<vmem>>, vector<2x1x1x32xf32>
    %144 = vector.shape_cast %143 : vector<2x1x1x32xf32> to vector<2x32xf32>
    %145 = vector.shape_cast %142 : vector<2x32xf32> to vector<2x1x1x32xf32>
    tpu.vector_store %arg6[%c0_78, %c2_79, %c1_80, %c0_81], %145 {strides = array<i32>} : memref<2x5x9x32xf32, #tpu.memory_space<vmem>>, vector<2x1x1x32xf32>,
    %146 = vector.extract_strided_slice %34 {offsets = [0, 3, 3, 0], sizes = [2, 1, 1, 8], strides = [1, 1, 1, 1]} : vector<2x8x8x8xf32> to vector<2x1x1x8xf32>
    %147 = vector.shape_cast %146 : vector<2x1x1x8xf32> to vector<2x8xf32>
    %148 = vector.extract_strided_slice %34 {offsets = [0, 3, 4, 0], sizes = [2, 1, 1, 8], strides = [1, 1, 1, 1]} : vector<2x8x8x8xf32> to vector<2x1x1x8xf32>
    %149 = vector.shape_cast %148 : vector<2x1x1x8xf32> to vector<2x8xf32>
    %150 = vector.extract_strided_slice %34 {offsets = [0, 4, 3, 0], sizes = [2, 1, 1, 8], strides = [1, 1, 1, 1]} : vector<2x8x8x8xf32> to vector<2x1x1x8xf32>
    %151 = vector.shape_cast %150 : vector<2x1x1x8xf32> to vector<2x8xf32>
    %152 = vector.extract_strided_slice %34 {offsets = [0, 4, 4, 0], sizes = [2, 1, 1, 8], strides = [1, 1, 1, 1]} : vector<2x8x8x8xf32> to vector<2x1x1x8xf32>
    %153 = vector.shape_cast %152 : vector<2x1x1x8xf32> to vector<2x8xf32>
    %154 = tpu.concatenate %147, %149, %151, %153 in 1 : vector<2x8xf32>, vector<2x8xf32>, vector<2x8xf32>, vector<2x8xf32> -> vector<2x32xf32>
    %c0_82 = arith.constant 0 : index
    %c2_83 = arith.constant 2 : index
    %c2_84 = arith.constant 2 : index
    %c0_85 = arith.constant 0 : index
    %155 = vector.load %arg6[%c0_82, %c2_83, %c2_84, %c0_85] : memref<2x5x9x32xf32, #tpu.memory_space<vmem>>, vector<2x1x1x32xf32>
    %156 = vector.shape_cast %155 : vector<2x1x1x32xf32> to vector<2x32xf32>
    %157 = vector.shape_cast %154 : vector<2x32xf32> to vector<2x1x1x32xf32>
    tpu.vector_store %arg6[%c0_82, %c2_83, %c2_84, %c0_85], %157 {strides = array<i32>} : memref<2x5x9x32xf32, #tpu.memory_space<vmem>>, vector<2x1x1x32xf32>,
    %158 = vector.extract_strided_slice %34 {offsets = [0, 3, 5, 0], sizes = [2, 1, 1, 8], strides = [1, 1, 1, 1]} : vector<2x8x8x8xf32> to vector<2x1x1x8xf32>
    %159 = vector.shape_cast %158 : vector<2x1x1x8xf32> to vector<2x8xf32>
    %160 = vector.extract_strided_slice %34 {offsets = [0, 3, 6, 0], sizes = [2, 1, 1, 8], strides = [1, 1, 1, 1]} : vector<2x8x8x8xf32> to vector<2x1x1x8xf32>
    %161 = vector.shape_cast %160 : vector<2x1x1x8xf32> to vector<2x8xf32>
    %162 = vector.extract_strided_slice %34 {offsets = [0, 4, 5, 0], sizes = [2, 1, 1, 8], strides = [1, 1, 1, 1]} : vector<2x8x8x8xf32> to vector<2x1x1x8xf32>
    %163 = vector.shape_cast %162 : vector<2x1x1x8xf32> to vector<2x8xf32>
    %164 = vector.extract_strided_slice %34 {offsets = [0, 4, 6, 0], sizes = [2, 1, 1, 8], strides = [1, 1, 1, 1]} : vector<2x8x8x8xf32> to vector<2x1x1x8xf32>
    %165 = vector.shape_cast %164 : vector<2x1x1x8xf32> to vector<2x8xf32>
    %166 = tpu.concatenate %159, %161, %163, %165 in 1 : vector<2x8xf32>, vector<2x8xf32>, vector<2x8xf32>, vector<2x8xf32> -> vector<2x32xf32>
    %c0_86 = arith.constant 0 : index
    %c2_87 = arith.constant 2 : index
    %c3_88 = arith.constant 3 : index
    %c0_89 = arith.constant 0 : index
    %167 = vector.load %arg6[%c0_86, %c2_87, %c3_88, %c0_89] : memref<2x5x9x32xf32, #tpu.memory_space<vmem>>, vector<2x1x1x32xf32>
    %168 = vector.shape_cast %167 : vector<2x1x1x32xf32> to vector<2x32xf32>
    %169 = vector.shape_cast %166 : vector<2x32xf32> to vector<2x1x1x32xf32>
    tpu.vector_store %arg6[%c0_86, %c2_87, %c3_88, %c0_89], %169 {strides = array<i32>} : memref<2x5x9x32xf32, #tpu.memory_space<vmem>>, vector<2x1x1x32xf32>,
    %170 = vector.extract_strided_slice %34 {offsets = [0, 3, 7, 0], sizes = [2, 1, 1, 8], strides = [1, 1, 1, 1]} : vector<2x8x8x8xf32> to vector<2x1x1x8xf32>
    %171 = vector.shape_cast %170 : vector<2x1x1x8xf32> to vector<2x8xf32>
    %172 = vector.extract_strided_slice %34 {offsets = [0, 4, 7, 0], sizes = [2, 1, 1, 8], strides = [1, 1, 1, 1]} : vector<2x8x8x8xf32> to vector<2x1x1x8xf32>
    %173 = vector.shape_cast %172 : vector<2x1x1x8xf32> to vector<2x8xf32>
    %174 = tpu.concatenate %171, %35, %173, %35 in 1 : vector<2x8xf32>, vector<2x8xf32>, vector<2x8xf32>, vector<2x8xf32> -> vector<2x32xf32>
    %c0_90 = arith.constant 0 : index
    %c2_91 = arith.constant 2 : index
    %c4_92 = arith.constant 4 : index
    %c0_93 = arith.constant 0 : index
    %175 = vector.load %arg6[%c0_90, %c2_91, %c4_92, %c0_93] : memref<2x5x9x32xf32, #tpu.memory_space<vmem>>, vector<2x1x1x32xf32>
    %176 = vector.shape_cast %175 : vector<2x1x1x32xf32> to vector<2x32xf32>
    %177 = vector.shape_cast %174 : vector<2x32xf32> to vector<2x1x1x32xf32>
    tpu.vector_store %arg6[%c0_90, %c2_91, %c4_92, %c0_93], %177 {strides = array<i32>} : memref<2x5x9x32xf32, #tpu.memory_space<vmem>>, vector<2x1x1x32xf32>,
    %178 = vector.extract_strided_slice %34 {offsets = [0, 5, 0, 0], sizes = [2, 1, 1, 8], strides = [1, 1, 1, 1]} : vector<2x8x8x8xf32> to vector<2x1x1x8xf32>
    %179 = vector.shape_cast %178 : vector<2x1x1x8xf32> to vector<2x8xf32>
    %180 = vector.extract_strided_slice %34 {offsets = [0, 6, 0, 0], sizes = [2, 1, 1, 8], strides = [1, 1, 1, 1]} : vector<2x8x8x8xf32> to vector<2x1x1x8xf32>
    %181 = vector.shape_cast %180 : vector<2x1x1x8xf32> to vector<2x8xf32>
    %182 = tpu.concatenate %35, %179, %35, %181 in 1 : vector<2x8xf32>, vector<2x8xf32>, vector<2x8xf32>, vector<2x8xf32> -> vector<2x32xf32>
    %c0_94 = arith.constant 0 : index
    %c3_95 = arith.constant 3 : index
    %c0_96 = arith.constant 0 : index
    %c0_97 = arith.constant 0 : index
    %183 = vector.load %arg6[%c0_94, %c3_95, %c0_96, %c0_97] : memref<2x5x9x32xf32, #tpu.memory_space<vmem>>, vector<2x1x1x32xf32>
    %184 = vector.shape_cast %183 : vector<2x1x1x32xf32> to vector<2x32xf32>
    %185 = vector.shape_cast %182 : vector<2x32xf32> to vector<2x1x1x32xf32>
    tpu.vector_store %arg6[%c0_94, %c3_95, %c0_96, %c0_97], %185 {strides = array<i32>} : memref<2x5x9x32xf32, #tpu.memory_space<vmem>>, vector<2x1x1x32xf32>,
    %186 = vector.extract_strided_slice %34 {offsets = [0, 5, 1, 0], sizes = [2, 1, 1, 8], strides = [1, 1, 1, 1]} : vector<2x8x8x8xf32> to vector<2x1x1x8xf32>
    %187 = vector.shape_cast %186 : vector<2x1x1x8xf32> to vector<2x8xf32>
    %188 = vector.extract_strided_slice %34 {offsets = [0, 5, 2, 0], sizes = [2, 1, 1, 8], strides = [1, 1, 1, 1]} : vector<2x8x8x8xf32> to vector<2x1x1x8xf32>
    %189 = vector.shape_cast %188 : vector<2x1x1x8xf32> to vector<2x8xf32>
    %190 = vector.extract_strided_slice %34 {offsets = [0, 6, 1, 0], sizes = [2, 1, 1, 8], strides = [1, 1, 1, 1]} : vector<2x8x8x8xf32> to vector<2x1x1x8xf32>
    %191 = vector.shape_cast %190 : vector<2x1x1x8xf32> to vector<2x8xf32>
    %192 = vector.extract_strided_slice %34 {offsets = [0, 6, 2, 0], sizes = [2, 1, 1, 8], strides = [1, 1, 1, 1]} : vector<2x8x8x8xf32> to vector<2x1x1x8xf32>
    %193 = vector.shape_cast %192 : vector<2x1x1x8xf32> to vector<2x8xf32>
    %194 = tpu.concatenate %187, %189, %191, %193 in 1 : vector<2x8xf32>, vector<2x8xf32>, vector<2x8xf32>, vector<2x8xf32> -> vector<2x32xf32>
    %c0_98 = arith.constant 0 : index
    %c3_99 = arith.constant 3 : index
    %c1_100 = arith.constant 1 : index
    %c0_101 = arith.constant 0 : index
    %195 = vector.load %arg6[%c0_98, %c3_99, %c1_100, %c0_101] : memref<2x5x9x32xf32, #tpu.memory_space<vmem>>, vector<2x1x1x32xf32>
    %196 = vector.shape_cast %195 : vector<2x1x1x32xf32> to vector<2x32xf32>
    %197 = vector.shape_cast %194 : vector<2x32xf32> to vector<2x1x1x32xf32>
    tpu.vector_store %arg6[%c0_98, %c3_99, %c1_100, %c0_101], %197 {strides = array<i32>} : memref<2x5x9x32xf32, #tpu.memory_space<vmem>>, vector<2x1x1x32xf32>,
    %198 = vector.extract_strided_slice %34 {offsets = [0, 5, 3, 0], sizes = [2, 1, 1, 8], strides = [1, 1, 1, 1]} : vector<2x8x8x8xf32> to vector<2x1x1x8xf32>
    %199 = vector.shape_cast %198 : vector<2x1x1x8xf32> to vector<2x8xf32>
    %200 = vector.extract_strided_slice %34 {offsets = [0, 5, 4, 0], sizes = [2, 1, 1, 8], strides = [1, 1, 1, 1]} : vector<2x8x8x8xf32> to vector<2x1x1x8xf32>
    %201 = vector.shape_cast %200 : vector<2x1x1x8xf32> to vector<2x8xf32>
    %202 = vector.extract_strided_slice %34 {offsets = [0, 6, 3, 0], sizes = [2, 1, 1, 8], strides = [1, 1, 1, 1]} : vector<2x8x8x8xf32> to vector<2x1x1x8xf32>
    %203 = vector.shape_cast %202 : vector<2x1x1x8xf32> to vector<2x8xf32>
    %204 = vector.extract_strided_slice %34 {offsets = [0, 6, 4, 0], sizes = [2, 1, 1, 8], strides = [1, 1, 1, 1]} : vector<2x8x8x8xf32> to vector<2x1x1x8xf32>
    %205 = vector.shape_cast %204 : vector<2x1x1x8xf32> to vector<2x8xf32>
    %206 = tpu.concatenate %199, %201, %203, %205 in 1 : vector<2x8xf32>, vector<2x8xf32>, vector<2x8xf32>, vector<2x8xf32> -> vector<2x32xf32>
    %c0_102 = arith.constant 0 : index
    %c3_103 = arith.constant 3 : index
    %c2_104 = arith.constant 2 : index
    %c0_105 = arith.constant 0 : index
    %207 = vector.load %arg6[%c0_102, %c3_103, %c2_104, %c0_105] : memref<2x5x9x32xf32, #tpu.memory_space<vmem>>, vector<2x1x1x32xf32>
    %208 = vector.shape_cast %207 : vector<2x1x1x32xf32> to vector<2x32xf32>
    %209 = vector.shape_cast %206 : vector<2x32xf32> to vector<2x1x1x32xf32>
    tpu.vector_store %arg6[%c0_102, %c3_103, %c2_104, %c0_105], %209 {strides = array<i32>} : memref<2x5x9x32xf32, #tpu.memory_space<vmem>>, vector<2x1x1x32xf32>,
    %210 = vector.extract_strided_slice %34 {offsets = [0, 5, 5, 0], sizes = [2, 1, 1, 8], strides = [1, 1, 1, 1]} : vector<2x8x8x8xf32> to vector<2x1x1x8xf32>
    %211 = vector.shape_cast %210 : vector<2x1x1x8xf32> to vector<2x8xf32>
    %212 = vector.extract_strided_slice %34 {offsets = [0, 5, 6, 0], sizes = [2, 1, 1, 8], strides = [1, 1, 1, 1]} : vector<2x8x8x8xf32> to vector<2x1x1x8xf32>
    %213 = vector.shape_cast %212 : vector<2x1x1x8xf32> to vector<2x8xf32>
    %214 = vector.extract_strided_slice %34 {offsets = [0, 6, 5, 0], sizes = [2, 1, 1, 8], strides = [1, 1, 1, 1]} : vector<2x8x8x8xf32> to vector<2x1x1x8xf32>
    %215 = vector.shape_cast %214 : vector<2x1x1x8xf32> to vector<2x8xf32>
    %216 = vector.extract_strided_slice %34 {offsets = [0, 6, 6, 0], sizes = [2, 1, 1, 8], strides = [1, 1, 1, 1]} : vector<2x8x8x8xf32> to vector<2x1x1x8xf32>
    %217 = vector.shape_cast %216 : vector<2x1x1x8xf32> to vector<2x8xf32>
    %218 = tpu.concatenate %211, %213, %215, %217 in 1 : vector<2x8xf32>, vector<2x8xf32>, vector<2x8xf32>, vector<2x8xf32> -> vector<2x32xf32>
    %c0_106 = arith.constant 0 : index
    %c3_107 = arith.constant 3 : index
    %c3_108 = arith.constant 3 : index
    %c0_109 = arith.constant 0 : index
    %219 = vector.load %arg6[%c0_106, %c3_107, %c3_108, %c0_109] : memref<2x5x9x32xf32, #tpu.memory_space<vmem>>, vector<2x1x1x32xf32>
    %220 = vector.shape_cast %219 : vector<2x1x1x32xf32> to vector<2x32xf32>
    %221 = vector.shape_cast %218 : vector<2x32xf32> to vector<2x1x1x32xf32>
    tpu.vector_store %arg6[%c0_106, %c3_107, %c3_108, %c0_109], %221 {strides = array<i32>} : memref<2x5x9x32xf32, #tpu.memory_space<vmem>>, vector<2x1x1x32xf32>,
    %222 = vector.extract_strided_slice %34 {offsets = [0, 5, 7, 0], sizes = [2, 1, 1, 8], strides = [1, 1, 1, 1]} : vector<2x8x8x8xf32> to vector<2x1x1x8xf32>
    %223 = vector.shape_cast %222 : vector<2x1x1x8xf32> to vector<2x8xf32>
    %224 = vector.extract_strided_slice %34 {offsets = [0, 6, 7, 0], sizes = [2, 1, 1, 8], strides = [1, 1, 1, 1]} : vector<2x8x8x8xf32> to vector<2x1x1x8xf32>
    %225 = vector.shape_cast %224 : vector<2x1x1x8xf32> to vector<2x8xf32>
    %226 = tpu.concatenate %223, %35, %225, %35 in 1 : vector<2x8xf32>, vector<2x8xf32>, vector<2x8xf32>, vector<2x8xf32> -> vector<2x32xf32>
    %c0_110 = arith.constant 0 : index
    %c3_111 = arith.constant 3 : index
    %c4_112 = arith.constant 4 : index
    %c0_113 = arith.constant 0 : index
    %227 = vector.load %arg6[%c0_110, %c3_111, %c4_112, %c0_113] : memref<2x5x9x32xf32, #tpu.memory_space<vmem>>, vector<2x1x1x32xf32>
    %228 = vector.shape_cast %227 : vector<2x1x1x32xf32> to vector<2x32xf32>
    %229 = vector.shape_cast %226 : vector<2x32xf32> to vector<2x1x1x32xf32>
    tpu.vector_store %arg6[%c0_110, %c3_111, %c4_112, %c0_113], %229 {strides = array<i32>} : memref<2x5x9x32xf32, #tpu.memory_space<vmem>>, vector<2x1x1x32xf32>,
    %230 = vector.extract_strided_slice %34 {offsets = [0, 7, 0, 0], sizes = [2, 1, 1, 8], strides = [1, 1, 1, 1]} : vector<2x8x8x8xf32> to vector<2x1x1x8xf32>
    %231 = vector.shape_cast %230 : vector<2x1x1x8xf32> to vector<2x8xf32>
    %232 = tpu.concatenate %35, %231, %35, %35 in 1 : vector<2x8xf32>, vector<2x8xf32>, vector<2x8xf32>, vector<2x8xf32> -> vector<2x32xf32>
    %c0_114 = arith.constant 0 : index
    %c4_115 = arith.constant 4 : index
    %c0_116 = arith.constant 0 : index
    %c0_117 = arith.constant 0 : index
    %233 = vector.load %arg6[%c0_114, %c4_115, %c0_116, %c0_117] : memref<2x5x9x32xf32, #tpu.memory_space<vmem>>, vector<2x1x1x32xf32>
    %234 = vector.shape_cast %233 : vector<2x1x1x32xf32> to vector<2x32xf32>
    %235 = vector.shape_cast %232 : vector<2x32xf32> to vector<2x1x1x32xf32>
    tpu.vector_store %arg6[%c0_114, %c4_115, %c0_116, %c0_117], %235 {strides = array<i32>} : memref<2x5x9x32xf32, #tpu.memory_space<vmem>>, vector<2x1x1x32xf32>,
    %236 = vector.extract_strided_slice %34 {offsets = [0, 7, 1, 0], sizes = [2, 1, 1, 8], strides = [1, 1, 1, 1]} : vector<2x8x8x8xf32> to vector<2x1x1x8xf32>
    %237 = vector.shape_cast %236 : vector<2x1x1x8xf32> to vector<2x8xf32>
    %238 = vector.extract_strided_slice %34 {offsets = [0, 7, 2, 0], sizes = [2, 1, 1, 8], strides = [1, 1, 1, 1]} : vector<2x8x8x8xf32> to vector<2x1x1x8xf32>
    %239 = vector.shape_cast %238 : vector<2x1x1x8xf32> to vector<2x8xf32>
    %240 = tpu.concatenate %237, %239, %35, %35 in 1 : vector<2x8xf32>, vector<2x8xf32>, vector<2x8xf32>, vector<2x8xf32> -> vector<2x32xf32>
    %c0_118 = arith.constant 0 : index
    %c4_119 = arith.constant 4 : index
    %c1_120 = arith.constant 1 : index
    %c0_121 = arith.constant 0 : index
    %241 = vector.load %arg6[%c0_118, %c4_119, %c1_120, %c0_121] : memref<2x5x9x32xf32, #tpu.memory_space<vmem>>, vector<2x1x1x32xf32>
    %242 = vector.shape_cast %241 : vector<2x1x1x32xf32> to vector<2x32xf32>
    %243 = vector.shape_cast %240 : vector<2x32xf32> to vector<2x1x1x32xf32>
    tpu.vector_store %arg6[%c0_118, %c4_119, %c1_120, %c0_121], %243 {strides = array<i32>} : memref<2x5x9x32xf32, #tpu.memory_space<vmem>>, vector<2x1x1x32xf32>,
    %244 = vector.extract_strided_slice %34 {offsets = [0, 7, 3, 0], sizes = [2, 1, 1, 8], strides = [1, 1, 1, 1]} : vector<2x8x8x8xf32> to vector<2x1x1x8xf32>
    %245 = vector.shape_cast %244 : vector<2x1x1x8xf32> to vector<2x8xf32>
    %246 = vector.extract_strided_slice %34 {offsets = [0, 7, 4, 0], sizes = [2, 1, 1, 8], strides = [1, 1, 1, 1]} : vector<2x8x8x8xf32> to vector<2x1x1x8xf32>
    %247 = vector.shape_cast %246 : vector<2x1x1x8xf32> to vector<2x8xf32>
    %248 = tpu.concatenate %245, %247, %35, %35 in 1 : vector<2x8xf32>, vector<2x8xf32>, vector<2x8xf32>, vector<2x8xf32> -> vector<2x32xf32>
    %c0_122 = arith.constant 0 : index
    %c4_123 = arith.constant 4 : index
    %c2_124 = arith.constant 2 : index
    %c0_125 = arith.constant 0 : index
    %249 = vector.load %arg6[%c0_122, %c4_123, %c2_124, %c0_125] : memref<2x5x9x32xf32, #tpu.memory_space<vmem>>, vector<2x1x1x32xf32>
    %250 = vector.shape_cast %249 : vector<2x1x1x32xf32> to vector<2x32xf32>
    %251 = vector.shape_cast %248 : vector<2x32xf32> to vector<2x1x1x32xf32>
    tpu.vector_store %arg6[%c0_122, %c4_123, %c2_124, %c0_125], %251 {strides = array<i32>} : memref<2x5x9x32xf32, #tpu.memory_space<vmem>>, vector<2x1x1x32xf32>,
    %252 = vector.extract_strided_slice %34 {offsets = [0, 7, 5, 0], sizes = [2, 1, 1, 8], strides = [1, 1, 1, 1]} : vector<2x8x8x8xf32> to vector<2x1x1x8xf32>
    %253 = vector.shape_cast %252 : vector<2x1x1x8xf32> to vector<2x8xf32>
    %254 = vector.extract_strided_slice %34 {offsets = [0, 7, 6, 0], sizes = [2, 1, 1, 8], strides = [1, 1, 1, 1]} : vector<2x8x8x8xf32> to vector<2x1x1x8xf32>
    %255 = vector.shape_cast %254 : vector<2x1x1x8xf32> to vector<2x8xf32>
    %256 = tpu.concatenate %253, %255, %35, %35 in 1 : vector<2x8xf32>, vector<2x8xf32>, vector<2x8xf32>, vector<2x8xf32> -> vector<2x32xf32>
    %c0_126 = arith.constant 0 : index
    %c4_127 = arith.constant 4 : index
    %c3_128 = arith.constant 3 : index
    %c0_129 = arith.constant 0 : index
    %257 = vector.load %arg6[%c0_126, %c4_127, %c3_128, %c0_129] : memref<2x5x9x32xf32, #tpu.memory_space<vmem>>, vector<2x1x1x32xf32>
    %258 = vector.shape_cast %257 : vector<2x1x1x32xf32> to vector<2x32xf32>
    %259 = vector.shape_cast %256 : vector<2x32xf32> to vector<2x1x1x32xf32>
    tpu.vector_store %arg6[%c0_126, %c4_127, %c3_128, %c0_129], %259 {strides = array<i32>} : memref<2x5x9x32xf32, #tpu.memory_space<vmem>>, vector<2x1x1x32xf32>,
    %260 = vector.extract_strided_slice %34 {offsets = [0, 7, 7, 0], sizes = [2, 1, 1, 8], strides = [1, 1, 1, 1]} : vector<2x8x8x8xf32> to vector<2x1x1x8xf32>
    %261 = vector.shape_cast %260 : vector<2x1x1x8xf32> to vector<2x8xf32>
    %262 = tpu.concatenate %261, %35, %35, %35 in 1 : vector<2x8xf32>, vector<2x8xf32>, vector<2x8xf32>, vector<2x8xf32> -> vector<2x32xf32>
    %c0_130 = arith.constant 0 : index
    %c4_131 = arith.constant 4 : index
    %c4_132 = arith.constant 4 : index
    %c0_133 = arith.constant 0 : index
    %263 = vector.load %arg6[%c0_130, %c4_131, %c4_132, %c0_133] : memref<2x5x9x32xf32, #tpu.memory_space<vmem>>, vector<2x1x1x32xf32>
    %264 = vector.shape_cast %263 : vector<2x1x1x32xf32> to vector<2x32xf32>
    %265 = vector.shape_cast %262 : vector<2x32xf32> to vector<2x1x1x32xf32>
    tpu.vector_store %arg6[%c0_130, %c4_131, %c4_132, %c0_133], %265 {strides = array<i32>} : memref<2x5x9x32xf32, #tpu.memory_space<vmem>>, vector<2x1x1x32xf32>,
    %cst_134 = arith.constant 0.000000e+00 : f32
    %266 = vector.broadcast %cst_134 : f32 to vector<64x16xf32>
    %c0_135 = arith.constant 0 : index
    %c0_136 = arith.constant 0 : index
    %c0_137 = arith.constant 0 : index
    %c0_138 = arith.constant 0 : index
    %267 = vector.load %arg6[%c0_135, %c0_136, %c0_137, %c0_138] : memref<2x5x9x32xf32, #tpu.memory_space<vmem>>, vector<2x4x8x32xf32>
    %268 = vector.shape_cast %267 : vector<2x4x8x32xf32> to vector<64x32xf32>
    %269 = arith.truncf %268 : vector<64x32xf32> to vector<64x32xbf16>
    %c0_139 = arith.constant 0 : index
    %c0_140 = arith.constant 0 : index
    %c0_141 = arith.constant 0 : index
    %270 = vector.load %arg2[%c0_139, %c0_140, %c0_141] : memref<4x32x16xbf16, #tpu.memory_space<vmem>>, vector<1x32x16xbf16>
    %271 = vector.shape_cast %270 : vector<1x32x16xbf16> to vector<32x16xbf16>
    %cst_142 = arith.constant dense<0.000000e+00> : vector<64x16xf32>
    %272 = tpu.matmul %269, %271, %cst_142 {dimension_numbers = #tpu.dot_dimension_numbers<[1], [0], [0], [1], [0, 0, 1, 1], [], []>} : vector<64x32xbf16>, vector<32x16xbf16>, vector<64x16xf32> -> vector<64x16xf32>
    %273 = arith.addf %266, %272 : vector<64x16xf32>
    %c0_143 = arith.constant 0 : index
    %c0_144 = arith.constant 0 : index
    %c1_145 = arith.constant 1 : index
    %c0_146 = arith.constant 0 : index
    %274 = vector.load %arg6[%c0_143, %c0_144, %c1_145, %c0_146] : memref<2x5x9x32xf32, #tpu.memory_space<vmem>>, vector<2x4x8x32xf32>
    %275 = vector.shape_cast %274 : vector<2x4x8x32xf32> to vector<64x32xf32>
    %276 = arith.truncf %275 : vector<64x32xf32> to vector<64x32xbf16>
    %c1_147 = arith.constant 1 : index
    %c0_148 = arith.constant 0 : index
    %c0_149 = arith.constant 0 : index
    %277 = vector.load %arg2[%c1_147, %c0_148, %c0_149] : memref<4x32x16xbf16, #tpu.memory_space<vmem>>, vector<1x32x16xbf16>
    %278 = vector.shape_cast %277 : vector<1x32x16xbf16> to vector<32x16xbf16>
    %cst_150 = arith.constant dense<0.000000e+00> : vector<64x16xf32>
    %279 = tpu.matmul %276, %278, %cst_150 {dimension_numbers = #tpu.dot_dimension_numbers<[1], [0], [0], [1], [0, 0, 1, 1], [], []>} : vector<64x32xbf16>, vector<32x16xbf16>, vector<64x16xf32> -> vector<64x16xf32>
    %280 = arith.addf %273, %279 : vector<64x16xf32>
    %c0_151 = arith.constant 0 : index
    %c1_152 = arith.constant 1 : index
    %c0_153 = arith.constant 0 : index
    %c0_154 = arith.constant 0 : index
    %281 = vector.load %arg6[%c0_151, %c1_152, %c0_153, %c0_154] : memref<2x5x9x32xf32, #tpu.memory_space<vmem>>, vector<2x4x8x32xf32>
    %282 = vector.shape_cast %281 : vector<2x4x8x32xf32> to vector<64x32xf32>
    %283 = arith.truncf %282 : vector<64x32xf32> to vector<64x32xbf16>
    %c2_155 = arith.constant 2 : index
    %c0_156 = arith.constant 0 : index
    %c0_157 = arith.constant 0 : index
    %284 = vector.load %arg2[%c2_155, %c0_156, %c0_157] : memref<4x32x16xbf16, #tpu.memory_space<vmem>>, vector<1x32x16xbf16>
    %285 = vector.shape_cast %284 : vector<1x32x16xbf16> to vector<32x16xbf16>
    %cst_158 = arith.constant dense<0.000000e+00> : vector<64x16xf32>
    %286 = tpu.matmul %283, %285, %cst_158 {dimension_numbers = #tpu.dot_dimension_numbers<[1], [0], [0], [1], [0, 0, 1, 1], [], []>} : vector<64x32xbf16>, vector<32x16xbf16>, vector<64x16xf32> -> vector<64x16xf32>
    %287 = arith.addf %280, %286 : vector<64x16xf32>
    %c0_159 = arith.constant 0 : index
    %c1_160 = arith.constant 1 : index
    %c1_161 = arith.constant 1 : index
    %c0_162 = arith.constant 0 : index
    %288 = vector.load %arg6[%c0_159, %c1_160, %c1_161, %c0_162] : memref<2x5x9x32xf32, #tpu.memory_space<vmem>>, vector<2x4x8x32xf32>
    %289 = vector.shape_cast %288 : vector<2x4x8x32xf32> to vector<64x32xf32>
    %290 = arith.truncf %289 : vector<64x32xf32> to vector<64x32xbf16>
    %c3_163 = arith.constant 3 : index
    %c0_164 = arith.constant 0 : index
    %c0_165 = arith.constant 0 : index
    %291 = vector.load %arg2[%c3_163, %c0_164, %c0_165] : memref<4x32x16xbf16, #tpu.memory_space<vmem>>, vector<1x32x16xbf16>
    %292 = vector.shape_cast %291 : vector<1x32x16xbf16> to vector<32x16xbf16>
    %cst_166 = arith.constant dense<0.000000e+00> : vector<64x16xf32>
    %293 = tpu.matmul %290, %292, %cst_166 {dimension_numbers = #tpu.dot_dimension_numbers<[1], [0], [0], [1], [0, 0, 1, 1], [], []>} : vector<64x32xbf16>, vector<32x16xbf16>, vector<64x16xf32> -> vector<64x16xf32>
    %294 = arith.addf %287, %293 : vector<64x16xf32>
    %295 = vector.shape_cast %294 : vector<64x16xf32> to vector<2x4x8x16xf32>
    %296 = tpu.iota {dimensions = array<i32: 2>} : vector<2x4x8x1xi32>
    %c4_i32 = arith.constant 4 : i32
    %297 = vector.broadcast %c4_i32 : i32 to vector<2x4x8x1xi32>
    %298 = arith.cmpi slt, %296, %297 : vector<2x4x8x1xi32>
    %cst_167 = arith.constant 0.000000e+00 : f32
    %299 = vector.shape_cast %298 : vector<2x4x8x1xi1> to vector<2x4x8x1xi1>
    %300 = vector.broadcast %299 : vector<2x4x8x1xi1> to vector<2x4x8x16xi1>
    %301 = vector.broadcast %cst_167 : f32 to vector<2x4x8x16xf32>
    %302 = arith.select %300, %295, %301 : vector<2x4x8x16xi1>, vector<2x4x8x16xf32>
    %cst_168 = arith.constant dense<0.000000e+00> : vector<16xf32>
    %303 = vector.multi_reduction <add>, %302, %cst_168 [0, 1, 2] : vector<2x4x8x16xf32> to vector<16xf32>
    %304 = vector.shape_cast %303 : vector<16xf32> to vector<1x1x1x16xf32>
    %cst_169 = arith.constant 3.200000e+01 : f32
    %305 = vector.broadcast %cst_169 : f32 to vector<1x1x1x16xf32>
    %306 = arith.divf %304, %305 : vector<1x1x1x16xf32>
    %307 = vector.broadcast %306 : vector<1x1x1x16xf32> to vector<2x4x8x16xf32>
    %308 = arith.subf %295, %307 : vector<2x4x8x16xf32>
    %309 = arith.mulf %308, %308 : vector<2x4x8x16xf32>
    %cst_170 = arith.constant 0.000000e+00 : f32
    %310 = vector.shape_cast %298 : vector<2x4x8x1xi1> to vector<2x4x8x1xi1>
    %311 = vector.broadcast %310 : vector<2x4x8x1xi1> to vector<2x4x8x16xi1>
    %312 = vector.broadcast %cst_170 : f32 to vector<2x4x8x16xf32>
    %313 = arith.select %311, %309, %312 : vector<2x4x8x16xi1>, vector<2x4x8x16xf32>
    %cst_171 = arith.constant dense<0.000000e+00> : vector<16xf32>
    %314 = vector.multi_reduction <add>, %313, %cst_171 [0, 1, 2] : vector<2x4x8x16xf32> to vector<16xf32>
    %315 = vector.shape_cast %314 : vector<16xf32> to vector<1x1x1x16xf32>
    %cst_172 = arith.constant 3.200000e+01 : f32
    %316 = vector.broadcast %cst_172 : f32 to vector<1x1x1x16xf32>
    %317 = arith.divf %315, %316 : vector<1x1x1x16xf32>
    %cst_173 = arith.constant 9.99999974E-6 : f32
    %318 = vector.broadcast %cst_173 : f32 to vector<1x1x1x16xf32>
    %319 = arith.addf %317, %318 : vector<1x1x1x16xf32>
    %320 = math.rsqrt %319 : vector<1x1x1x16xf32>
    %321 = vector.broadcast %320 : vector<1x1x1x16xf32> to vector<2x4x8x16xf32>
    %322 = arith.mulf %308, %321 : vector<2x4x8x16xf32>
    %cst_174 = arith.constant 0.000000e+00 : f32
    %323 = vector.broadcast %cst_174 : f32 to vector<2x4x8x16xf32>
    %324 = arith.cmpf ogt, %322, %323 : vector<2x4x8x16xf32>
    %cst_175 = arith.constant 2.000000e-01 : f32
    %325 = vector.broadcast %cst_175 : f32 to vector<2x4x8x16xf32>
    %326 = arith.mulf %325, %322 : vector<2x4x8x16xf32>
    %327 = arith.select %324, %322, %326 : vector<2x4x8x16xi1>, vector<2x4x8x16xf32>
    %cst_176 = arith.constant 0.000000e+00 : f32
    %328 = vector.broadcast %cst_176 : f32 to vector<2x16xf32>
    %cst_177 = arith.constant 0.000000e+00 : f32
    %329 = vector.broadcast %cst_177 : f32 to vector<2x3x6x64xf32>
    %c0_178 = arith.constant 0 : index
    %c0_179 = arith.constant 0 : index
    %c3_180 = arith.constant 3 : index
    %c0_181 = arith.constant 0 : index
    %330 = vector.load %arg7[%c0_178, %c0_179, %c3_180, %c0_181] : memref<2x3x9x64xf32, #tpu.memory_space<vmem>>, vector<2x3x6x64xf32>
    tpu.vector_store %arg7[%c0_178, %c0_179, %c3_180, %c0_181], %329 {strides = array<i32>} : memref<2x3x9x64xf32, #tpu.memory_space<vmem>>, vector<2x3x6x64xf32>,
    %331 = vector.extract_strided_slice %327 {offsets = [0, 0, 0, 0], sizes = [2, 1, 1, 16], strides = [1, 1, 1, 1]} : vector<2x4x8x16xf32> to vector<2x1x1x16xf32>
    %332 = vector.shape_cast %331 : vector<2x1x1x16xf32> to vector<2x16xf32>
    %333 = tpu.concatenate %328, %328, %328, %332 in 1 : vector<2x16xf32>, vector<2x16xf32>, vector<2x16xf32>, vector<2x16xf32> -> vector<2x64xf32>
    %c0_182 = arith.constant 0 : index
    %c0_183 = arith.constant 0 : index
    %c0_184 = arith.constant 0 : index
    %c0_185 = arith.constant 0 : index
    %334 = vector.load %arg7[%c0_182, %c0_183, %c0_184, %c0_185] : memref<2x3x9x64xf32, #tpu.memory_space<vmem>>, vector<2x1x1x64xf32>
    %335 = vector.shape_cast %334 : vector<2x1x1x64xf32> to vector<2x64xf32>
    %336 = vector.shape_cast %333 : vector<2x64xf32> to vector<2x1x1x64xf32>
    tpu.vector_store %arg7[%c0_182, %c0_183, %c0_184, %c0_185], %336 {strides = array<i32>} : memref<2x3x9x64xf32, #tpu.memory_space<vmem>>, vector<2x1x1x64xf32>,
    %337 = vector.extract_strided_slice %327 {offsets = [0, 0, 1, 0], sizes = [2, 1, 1, 16], strides = [1, 1, 1, 1]} : vector<2x4x8x16xf32> to vector<2x1x1x16xf32>
    %338 = vector.shape_cast %337 : vector<2x1x1x16xf32> to vector<2x16xf32>
    %339 = vector.extract_strided_slice %327 {offsets = [0, 0, 2, 0], sizes = [2, 1, 1, 16], strides = [1, 1, 1, 1]} : vector<2x4x8x16xf32> to vector<2x1x1x16xf32>
    %340 = vector.shape_cast %339 : vector<2x1x1x16xf32> to vector<2x16xf32>
    %341 = tpu.concatenate %328, %328, %338, %340 in 1 : vector<2x16xf32>, vector<2x16xf32>, vector<2x16xf32>, vector<2x16xf32> -> vector<2x64xf32>
    %c0_186 = arith.constant 0 : index
    %c0_187 = arith.constant 0 : index
    %c1_188 = arith.constant 1 : index
    %c0_189 = arith.constant 0 : index
    %342 = vector.load %arg7[%c0_186, %c0_187, %c1_188, %c0_189] : memref<2x3x9x64xf32, #tpu.memory_space<vmem>>, vector<2x1x1x64xf32>
    %343 = vector.shape_cast %342 : vector<2x1x1x64xf32> to vector<2x64xf32>
    %344 = vector.shape_cast %341 : vector<2x64xf32> to vector<2x1x1x64xf32>
    tpu.vector_store %arg7[%c0_186, %c0_187, %c1_188, %c0_189], %344 {strides = array<i32>} : memref<2x3x9x64xf32, #tpu.memory_space<vmem>>, vector<2x1x1x64xf32>,
    %345 = vector.extract_strided_slice %327 {offsets = [0, 0, 3, 0], sizes = [2, 1, 1, 16], strides = [1, 1, 1, 1]} : vector<2x4x8x16xf32> to vector<2x1x1x16xf32>
    %346 = vector.shape_cast %345 : vector<2x1x1x16xf32> to vector<2x16xf32>
    %347 = tpu.concatenate %328, %328, %346, %328 in 1 : vector<2x16xf32>, vector<2x16xf32>, vector<2x16xf32>, vector<2x16xf32> -> vector<2x64xf32>
    %c0_190 = arith.constant 0 : index
    %c0_191 = arith.constant 0 : index
    %c2_192 = arith.constant 2 : index
    %c0_193 = arith.constant 0 : index
    %348 = vector.load %arg7[%c0_190, %c0_191, %c2_192, %c0_193] : memref<2x3x9x64xf32, #tpu.memory_space<vmem>>, vector<2x1x1x64xf32>
    %349 = vector.shape_cast %348 : vector<2x1x1x64xf32> to vector<2x64xf32>
    %350 = vector.shape_cast %347 : vector<2x64xf32> to vector<2x1x1x64xf32>
    tpu.vector_store %arg7[%c0_190, %c0_191, %c2_192, %c0_193], %350 {strides = array<i32>} : memref<2x3x9x64xf32, #tpu.memory_space<vmem>>, vector<2x1x1x64xf32>,
    %351 = vector.extract_strided_slice %327 {offsets = [0, 1, 0, 0], sizes = [2, 1, 1, 16], strides = [1, 1, 1, 1]} : vector<2x4x8x16xf32> to vector<2x1x1x16xf32>
    %352 = vector.shape_cast %351 : vector<2x1x1x16xf32> to vector<2x16xf32>
    %353 = vector.extract_strided_slice %327 {offsets = [0, 2, 0, 0], sizes = [2, 1, 1, 16], strides = [1, 1, 1, 1]} : vector<2x4x8x16xf32> to vector<2x1x1x16xf32>
    %354 = vector.shape_cast %353 : vector<2x1x1x16xf32> to vector<2x16xf32>
    %355 = tpu.concatenate %328, %352, %328, %354 in 1 : vector<2x16xf32>, vector<2x16xf32>, vector<2x16xf32>, vector<2x16xf32> -> vector<2x64xf32>
    %c0_194 = arith.constant 0 : index
    %c1_195 = arith.constant 1 : index
    %c0_196 = arith.constant 0 : index
    %c0_197 = arith.constant 0 : index
    %356 = vector.load %arg7[%c0_194, %c1_195, %c0_196, %c0_197] : memref<2x3x9x64xf32, #tpu.memory_space<vmem>>, vector<2x1x1x64xf32>
    %357 = vector.shape_cast %356 : vector<2x1x1x64xf32> to vector<2x64xf32>
    %358 = vector.shape_cast %355 : vector<2x64xf32> to vector<2x1x1x64xf32>
    tpu.vector_store %arg7[%c0_194, %c1_195, %c0_196, %c0_197], %358 {strides = array<i32>} : memref<2x3x9x64xf32, #tpu.memory_space<vmem>>, vector<2x1x1x64xf32>,
    %359 = vector.extract_strided_slice %327 {offsets = [0, 1, 1, 0], sizes = [2, 1, 1, 16], strides = [1, 1, 1, 1]} : vector<2x4x8x16xf32> to vector<2x1x1x16xf32>
    %360 = vector.shape_cast %359 : vector<2x1x1x16xf32> to vector<2x16xf32>
    %361 = vector.extract_strided_slice %327 {offsets = [0, 1, 2, 0], sizes = [2, 1, 1, 16], strides = [1, 1, 1, 1]} : vector<2x4x8x16xf32> to vector<2x1x1x16xf32>
    %362 = vector.shape_cast %361 : vector<2x1x1x16xf32> to vector<2x16xf32>
    %363 = vector.extract_strided_slice %327 {offsets = [0, 2, 1, 0], sizes = [2, 1, 1, 16], strides = [1, 1, 1, 1]} : vector<2x4x8x16xf32> to vector<2x1x1x16xf32>
    %364 = vector.shape_cast %363 : vector<2x1x1x16xf32> to vector<2x16xf32>
    %365 = vector.extract_strided_slice %327 {offsets = [0, 2, 2, 0], sizes = [2, 1, 1, 16], strides = [1, 1, 1, 1]} : vector<2x4x8x16xf32> to vector<2x1x1x16xf32>
    %366 = vector.shape_cast %365 : vector<2x1x1x16xf32> to vector<2x16xf32>
    %367 = tpu.concatenate %360, %362, %364, %366 in 1 : vector<2x16xf32>, vector<2x16xf32>, vector<2x16xf32>, vector<2x16xf32> -> vector<2x64xf32>
    %c0_198 = arith.constant 0 : index
    %c1_199 = arith.constant 1 : index
    %c1_200 = arith.constant 1 : index
    %c0_201 = arith.constant 0 : index
    %368 = vector.load %arg7[%c0_198, %c1_199, %c1_200, %c0_201] : memref<2x3x9x64xf32, #tpu.memory_space<vmem>>, vector<2x1x1x64xf32>
    %369 = vector.shape_cast %368 : vector<2x1x1x64xf32> to vector<2x64xf32>
    %370 = vector.shape_cast %367 : vector<2x64xf32> to vector<2x1x1x64xf32>
    tpu.vector_store %arg7[%c0_198, %c1_199, %c1_200, %c0_201], %370 {strides = array<i32>} : memref<2x3x9x64xf32, #tpu.memory_space<vmem>>, vector<2x1x1x64xf32>,
    %371 = vector.extract_strided_slice %327 {offsets = [0, 1, 3, 0], sizes = [2, 1, 1, 16], strides = [1, 1, 1, 1]} : vector<2x4x8x16xf32> to vector<2x1x1x16xf32>
    %372 = vector.shape_cast %371 : vector<2x1x1x16xf32> to vector<2x16xf32>
    %373 = vector.extract_strided_slice %327 {offsets = [0, 2, 3, 0], sizes = [2, 1, 1, 16], strides = [1, 1, 1, 1]} : vector<2x4x8x16xf32> to vector<2x1x1x16xf32>
    %374 = vector.shape_cast %373 : vector<2x1x1x16xf32> to vector<2x16xf32>
    %375 = tpu.concatenate %372, %328, %374, %328 in 1 : vector<2x16xf32>, vector<2x16xf32>, vector<2x16xf32>, vector<2x16xf32> -> vector<2x64xf32>
    %c0_202 = arith.constant 0 : index
    %c1_203 = arith.constant 1 : index
    %c2_204 = arith.constant 2 : index
    %c0_205 = arith.constant 0 : index
    %376 = vector.load %arg7[%c0_202, %c1_203, %c2_204, %c0_205] : memref<2x3x9x64xf32, #tpu.memory_space<vmem>>, vector<2x1x1x64xf32>
    %377 = vector.shape_cast %376 : vector<2x1x1x64xf32> to vector<2x64xf32>
    %378 = vector.shape_cast %375 : vector<2x64xf32> to vector<2x1x1x64xf32>
    tpu.vector_store %arg7[%c0_202, %c1_203, %c2_204, %c0_205], %378 {strides = array<i32>} : memref<2x3x9x64xf32, #tpu.memory_space<vmem>>, vector<2x1x1x64xf32>,
    %379 = vector.extract_strided_slice %327 {offsets = [0, 3, 0, 0], sizes = [2, 1, 1, 16], strides = [1, 1, 1, 1]} : vector<2x4x8x16xf32> to vector<2x1x1x16xf32>
    %380 = vector.shape_cast %379 : vector<2x1x1x16xf32> to vector<2x16xf32>
    %381 = tpu.concatenate %328, %380, %328, %328 in 1 : vector<2x16xf32>, vector<2x16xf32>, vector<2x16xf32>, vector<2x16xf32> -> vector<2x64xf32>
    %c0_206 = arith.constant 0 : index
    %c2_207 = arith.constant 2 : index
    %c0_208 = arith.constant 0 : index
    %c0_209 = arith.constant 0 : index
    %382 = vector.load %arg7[%c0_206, %c2_207, %c0_208, %c0_209] : memref<2x3x9x64xf32, #tpu.memory_space<vmem>>, vector<2x1x1x64xf32>
    %383 = vector.shape_cast %382 : vector<2x1x1x64xf32> to vector<2x64xf32>
    %384 = vector.shape_cast %381 : vector<2x64xf32> to vector<2x1x1x64xf32>
    tpu.vector_store %arg7[%c0_206, %c2_207, %c0_208, %c0_209], %384 {strides = array<i32>} : memref<2x3x9x64xf32, #tpu.memory_space<vmem>>, vector<2x1x1x64xf32>,
    %385 = vector.extract_strided_slice %327 {offsets = [0, 3, 1, 0], sizes = [2, 1, 1, 16], strides = [1, 1, 1, 1]} : vector<2x4x8x16xf32> to vector<2x1x1x16xf32>
    %386 = vector.shape_cast %385 : vector<2x1x1x16xf32> to vector<2x16xf32>
    %387 = vector.extract_strided_slice %327 {offsets = [0, 3, 2, 0], sizes = [2, 1, 1, 16], strides = [1, 1, 1, 1]} : vector<2x4x8x16xf32> to vector<2x1x1x16xf32>
    %388 = vector.shape_cast %387 : vector<2x1x1x16xf32> to vector<2x16xf32>
    %389 = tpu.concatenate %386, %388, %328, %328 in 1 : vector<2x16xf32>, vector<2x16xf32>, vector<2x16xf32>, vector<2x16xf32> -> vector<2x64xf32>
    %c0_210 = arith.constant 0 : index
    %c2_211 = arith.constant 2 : index
    %c1_212 = arith.constant 1 : index
    %c0_213 = arith.constant 0 : index
    %390 = vector.load %arg7[%c0_210, %c2_211, %c1_212, %c0_213] : memref<2x3x9x64xf32, #tpu.memory_space<vmem>>, vector<2x1x1x64xf32>
    %391 = vector.shape_cast %390 : vector<2x1x1x64xf32> to vector<2x64xf32>
    %392 = vector.shape_cast %389 : vector<2x64xf32> to vector<2x1x1x64xf32>
    tpu.vector_store %arg7[%c0_210, %c2_211, %c1_212, %c0_213], %392 {strides = array<i32>} : memref<2x3x9x64xf32, #tpu.memory_space<vmem>>, vector<2x1x1x64xf32>,
    %393 = vector.extract_strided_slice %327 {offsets = [0, 3, 3, 0], sizes = [2, 1, 1, 16], strides = [1, 1, 1, 1]} : vector<2x4x8x16xf32> to vector<2x1x1x16xf32>
    %394 = vector.shape_cast %393 : vector<2x1x1x16xf32> to vector<2x16xf32>
    %395 = tpu.concatenate %394, %328, %328, %328 in 1 : vector<2x16xf32>, vector<2x16xf32>, vector<2x16xf32>, vector<2x16xf32> -> vector<2x64xf32>
    %c0_214 = arith.constant 0 : index
    %c2_215 = arith.constant 2 : index
    %c2_216 = arith.constant 2 : index
    %c0_217 = arith.constant 0 : index
    %396 = vector.load %arg7[%c0_214, %c2_215, %c2_216, %c0_217] : memref<2x3x9x64xf32, #tpu.memory_space<vmem>>, vector<2x1x1x64xf32>
    %397 = vector.shape_cast %396 : vector<2x1x1x64xf32> to vector<2x64xf32>
    %398 = vector.shape_cast %395 : vector<2x64xf32> to vector<2x1x1x64xf32>
    tpu.vector_store %arg7[%c0_214, %c2_215, %c2_216, %c0_217], %398 {strides = array<i32>} : memref<2x3x9x64xf32, #tpu.memory_space<vmem>>, vector<2x1x1x64xf32>,
    %cst_218 = arith.constant 0.000000e+00 : f32
    %399 = vector.broadcast %cst_218 : f32 to vector<32x32xf32>
    %c0_219 = arith.constant 0 : index
    %c0_220 = arith.constant 0 : index
    %c0_221 = arith.constant 0 : index
    %c0_222 = arith.constant 0 : index
    %400 = vector.load %arg7[%c0_219, %c0_220, %c0_221, %c0_222] : memref<2x3x9x64xf32, #tpu.memory_space<vmem>>, vector<2x2x8x64xf32>
    %401 = vector.shape_cast %400 : vector<2x2x8x64xf32> to vector<32x64xf32>
    %402 = arith.truncf %401 : vector<32x64xf32> to vector<32x64xbf16>
    %c0_223 = arith.constant 0 : index
    %c0_224 = arith.constant 0 : index
    %c0_225 = arith.constant 0 : index
    %403 = vector.load %arg3[%c0_223, %c0_224, %c0_225] : memref<4x64x32xbf16, #tpu.memory_space<vmem>>, vector<1x64x32xbf16>
    %404 = vector.shape_cast %403 : vector<1x64x32xbf16> to vector<64x32xbf16>
    %cst_226 = arith.constant dense<0.000000e+00> : vector<32x32xf32>
    %405 = tpu.matmul %402, %404, %cst_226 {dimension_numbers = #tpu.dot_dimension_numbers<[1], [0], [0], [1], [0, 0, 1, 1], [], []>} : vector<32x64xbf16>, vector<64x32xbf16>, vector<32x32xf32> -> vector<32x32xf32>
    %406 = arith.addf %399, %405 : vector<32x32xf32>
    %c0_227 = arith.constant 0 : index
    %c0_228 = arith.constant 0 : index
    %c1_229 = arith.constant 1 : index
    %c0_230 = arith.constant 0 : index
    %407 = vector.load %arg7[%c0_227, %c0_228, %c1_229, %c0_230] : memref<2x3x9x64xf32, #tpu.memory_space<vmem>>, vector<2x2x8x64xf32>
    %408 = vector.shape_cast %407 : vector<2x2x8x64xf32> to vector<32x64xf32>
    %409 = arith.truncf %408 : vector<32x64xf32> to vector<32x64xbf16>
    %c1_231 = arith.constant 1 : index
    %c0_232 = arith.constant 0 : index
    %c0_233 = arith.constant 0 : index
    %410 = vector.load %arg3[%c1_231, %c0_232, %c0_233] : memref<4x64x32xbf16, #tpu.memory_space<vmem>>, vector<1x64x32xbf16>
    %411 = vector.shape_cast %410 : vector<1x64x32xbf16> to vector<64x32xbf16>
    %cst_234 = arith.constant dense<0.000000e+00> : vector<32x32xf32>
    %412 = tpu.matmul %409, %411, %cst_234 {dimension_numbers = #tpu.dot_dimension_numbers<[1], [0], [0], [1], [0, 0, 1, 1], [], []>} : vector<32x64xbf16>, vector<64x32xbf16>, vector<32x32xf32> -> vector<32x32xf32>
    %413 = arith.addf %406, %412 : vector<32x32xf32>
    %c0_235 = arith.constant 0 : index
    %c1_236 = arith.constant 1 : index
    %c0_237 = arith.constant 0 : index
    %c0_238 = arith.constant 0 : index
    %414 = vector.load %arg7[%c0_235, %c1_236, %c0_237, %c0_238] : memref<2x3x9x64xf32, #tpu.memory_space<vmem>>, vector<2x2x8x64xf32>
    %415 = vector.shape_cast %414 : vector<2x2x8x64xf32> to vector<32x64xf32>
    %416 = arith.truncf %415 : vector<32x64xf32> to vector<32x64xbf16>
    %c2_239 = arith.constant 2 : index
    %c0_240 = arith.constant 0 : index
    %c0_241 = arith.constant 0 : index
    %417 = vector.load %arg3[%c2_239, %c0_240, %c0_241] : memref<4x64x32xbf16, #tpu.memory_space<vmem>>, vector<1x64x32xbf16>
    %418 = vector.shape_cast %417 : vector<1x64x32xbf16> to vector<64x32xbf16>
    %cst_242 = arith.constant dense<0.000000e+00> : vector<32x32xf32>
    %419 = tpu.matmul %416, %418, %cst_242 {dimension_numbers = #tpu.dot_dimension_numbers<[1], [0], [0], [1], [0, 0, 1, 1], [], []>} : vector<32x64xbf16>, vector<64x32xbf16>, vector<32x32xf32> -> vector<32x32xf32>
    %420 = arith.addf %413, %419 : vector<32x32xf32>
    %c0_243 = arith.constant 0 : index
    %c1_244 = arith.constant 1 : index
    %c1_245 = arith.constant 1 : index
    %c0_246 = arith.constant 0 : index
    %421 = vector.load %arg7[%c0_243, %c1_244, %c1_245, %c0_246] : memref<2x3x9x64xf32, #tpu.memory_space<vmem>>, vector<2x2x8x64xf32>
    %422 = vector.shape_cast %421 : vector<2x2x8x64xf32> to vector<32x64xf32>
    %423 = arith.truncf %422 : vector<32x64xf32> to vector<32x64xbf16>
    %c3_247 = arith.constant 3 : index
    %c0_248 = arith.constant 0 : index
    %c0_249 = arith.constant 0 : index
    %424 = vector.load %arg3[%c3_247, %c0_248, %c0_249] : memref<4x64x32xbf16, #tpu.memory_space<vmem>>, vector<1x64x32xbf16>
    %425 = vector.shape_cast %424 : vector<1x64x32xbf16> to vector<64x32xbf16>
    %cst_250 = arith.constant dense<0.000000e+00> : vector<32x32xf32>
    %426 = tpu.matmul %423, %425, %cst_250 {dimension_numbers = #tpu.dot_dimension_numbers<[1], [0], [0], [1], [0, 0, 1, 1], [], []>} : vector<32x64xbf16>, vector<64x32xbf16>, vector<32x32xf32> -> vector<32x32xf32>
    %427 = arith.addf %420, %426 : vector<32x32xf32>
    %428 = vector.shape_cast %427 : vector<32x32xf32> to vector<2x2x8x32xf32>
    %cst_251 = arith.constant 0.000000e+00 : f32
    %429 = vector.broadcast %cst_251 : f32 to vector<2x2x8x32xf32>
    %430 = arith.cmpf ogt, %428, %429 : vector<2x2x8x32xf32>
    %cst_252 = arith.constant 2.000000e-01 : f32
    %431 = vector.broadcast %cst_252 : f32 to vector<2x2x8x32xf32>
    %432 = arith.mulf %431, %428 : vector<2x2x8x32xf32>
    %433 = arith.select %430, %428, %432 : vector<2x2x8x32xi1>, vector<2x2x8x32xf32>
    %434 = tpu.iota {dimensions = array<i32: 2>} : vector<2x2x8x1xi32>
    %c2_i32 = arith.constant 2 : i32
    %435 = vector.broadcast %c2_i32 : i32 to vector<2x2x8x1xi32>
    %436 = arith.cmpi slt, %434, %435 : vector<2x2x8x1xi32>
    %cst_253 = arith.constant 0.000000e+00 : f32
    %437 = vector.shape_cast %436 : vector<2x2x8x1xi1> to vector<2x2x8x1xi1>
    %438 = vector.broadcast %437 : vector<2x2x8x1xi1> to vector<2x2x8x32xi1>
    %439 = vector.broadcast %cst_253 : f32 to vector<2x2x8x32xf32>
    %440 = arith.select %438, %433, %439 : vector<2x2x8x32xi1>, vector<2x2x8x32xf32>
    %cst_254 = arith.constant dense<0.000000e+00> : vector<2x32xf32>
    %441 = vector.multi_reduction <add>, %440, %cst_254 [1, 2] : vector<2x2x8x32xf32> to vector<2x32xf32>
    %cst_255 = arith.constant 2.500000e-01 : f32
    %442 = vector.broadcast %cst_255 : f32 to vector<2x32xf32>
    %443 = arith.mulf %441, %442 : vector<2x32xf32>
    %c0_256 = arith.constant 0 : index
    %c0_257 = arith.constant 0 : index
    %444 = vector.load %arg4[%c0_256, %c0_257] : memref<1x32xf32, #tpu.memory_space<vmem>>, vector<1x32xf32>
    %445 = vector.broadcast %444 : vector<1x32xf32> to vector<2x32xf32>
    %446 = arith.mulf %443, %445 : vector<2x32xf32>
    %cst_258 = arith.constant dense<0.000000e+00> : vector<2xf32>
    %447 = vector.multi_reduction <add>, %446, %cst_258 [1] : vector<2x32xf32> to vector<2xf32>
    %448 = vector.shape_cast %447 : vector<2xf32> to vector<2x1xf32>
    %449 = arith.negf %448 : vector<2x1xf32>
    %450 = math.exp %449 : vector<2x1xf32>
    %cst_259 = arith.constant 1.000000e+00 : f32
    %451 = vector.broadcast %cst_259 : f32 to vector<2x1xf32>
    %452 = arith.addf %451, %450 : vector<2x1xf32>
    %453 = arith.divf %451, %452 : vector<2x1xf32>
    %454 = vector.shape_cast %453 : vector<2x1xf32> to vector<2x1xf32>
    %455 = vector.broadcast %454 : vector<2x1xf32> to vector<2x128xf32>
    %c0_260 = arith.constant 0 : index
    %c0_261 = arith.constant 0 : index
    %456 = vector.load %arg5[%c0_260, %c0_261] : memref<2x128xf32, #tpu.memory_space<vmem>>, vector<2x128xf32>
    tpu.vector_store %arg5[%c0_260, %c0_261], %455 {strides = array<i32>} : memref<2x128xf32, #tpu.memory_space<vmem>>, vector<2x128xf32>,
    return
  }
}

</mosaic_0001>

<bundles_post_ra>
// kernel: discriminator_forward.1
= control target key start
LH: loop header
LB: loop body
LE: loop exit
PB: predicated region body
PF: predicated region fallthrough
CT: control target
= control target key end

     0   :  { %vm104_vm0 = vcmask 1045504   ;;  %vm79_vm1 = vcmask 97280   ;;  %vm948_vm4 = vcmask 64512   ;;  %vm746_vm6 = vcmask 195584   ;;  %s3792_s22 = smov 24   ;;  %s3793_s23 = smov 8   ;;  %s5023_s1 = inlined_call_operand.vmem [shape: bf16[4,12,8], index: 1, kind: input, shape index: {}]   ;;  %s5024_s0 = inlined_call_operand.vmem [shape: f32[2,9,9,12], index: 0, kind: input, shape index: {}]   ;;  %s5025_s2 = inlined_call_operand.vmem [shape: bf16[4,32,16], index: 2, kind: input, shape index: {}]   ;;  %s5026_s3 = inlined_call_operand.vmem [shape: bf16[4,64,32], index: 3, kind: input, shape index: {}]   ;;  %s5027_s4 = inlined_call_operand.vmem [shape: f32[1,32], index: 4, kind: input, shape index: {}]   ;;  %s5028_s5 = inlined_call_operand.vmem [shape: f32[2,128], index: 5, kind: output, shape index: {}]  }
   0x1   :  { %v3756_v0 = vld [vmem:[%s5023_s1 + $0x8] sm:$0x3f]   ;;  %v3836_v2 = vld [vmem:[%s5024_s0 + $0x11] sm:$0xff]  ;;  %v3757_v9 = vld [vmem:[%s5023_s1] sm:$0x3f]   ;;  %vm787_vm7 = vcmask 130048  }
   0x2   :  { %v47_v1 = vld [vmem:[%s5024_s0 + $0x1] sm:$0xff]  ;;  %3745 = vmatprep.subr.msk.bf16.mxu0 %vm104_vm0, %v3756_v0  ;;  %v106_v4 = vsel %vm104_vm0, %v3756_v0, 0  ;;  %v3849_v6 = vld [vmem:[%s5024_s0 + $0x31] sm:$0xff]  ;;  %v235_v15 = vsel %vm104_vm0, %v3757_v9, 0  ;;  %vm1082_vm11 = vcmask 1046534   ;;  %vm1028_vm12 = vcmask 1044484  }
   0x3   :  { %v3841_v3 = vld [vmem:[%s5024_s0 + $0x21] sm:$0xff]  ;;  %v63_v5 = vpack.c.bf16 %v3836_v2, %v47_v1  ;;  %3494 = vmatpush3.bf16.msra.mxu0 %v106_v4  ;;  %v3866_v11 = vld [vmem:[%s5024_s0 + $0x51] sm:$0xff]  ;;  %vm980_vm14 = vcmask 1042434   ;;  %vm741_vm15 = vcmask 1041409   ;;  %s3796_s16 = smov 48  }
   0x4   :  { %v523_v7 = vpack.c.bf16 %v3841_v3, %v3836_v2  ;;  %v64_v8 = vpack.c.bf16 %v3849_v6, %v3841_v3  ;;  %v3861_v10 = vld [vmem:[%s5024_s0 + $0x41] sm:$0xff]  ;;  %3746 = vmatprep.subr.msk.bf16.mxu0 %vm104_vm0, %v3757_v9  ;;  %v3888_v17 = vld [vmem:[%s5024_s0 + $0xb1] sm:$0xff] }
   0x5   :  { %3495 = vmatprep.mubr.msk.bf16.mxu0 %vm79_vm1, %v63_v5  ;;  %v65_v12 = vpack.c.bf16 %v3866_v11, %v3861_v10  ;;  %v3874_v13 = vld [vmem:[%s5024_s0 + $0x61] sm:$0xff]  ;;  %v524_v14 = vpack.c.bf16 %v3861_v10, %v3849_v6  ;;  %v3901_v20 = vld [vmem:[%s5024_s0 + $0xd1] sm:$0xff] }
   0x6   :  { %v3883_v16 = vld [vmem:[%s5024_s0 + $0xa1] sm:$0xff]  ;;  %v525_v19 = vpack.c.bf16 %v3874_v13, %v3866_v11  ;;  %3496 = vmatmul.mubr.msk.bf16.vlgmr.msra.gmra.mrb[0].mxu0 %vm79_vm1, %v64_v8  ;;  %v3911_v22 = vld [vmem:[%s5024_s0 + $0xf1] sm:$0xff]  ;;  %v752_v11 = vlaneseq }
   0x7   :  { %v3893_v18 = vld [vmem:[%s5024_s0 + $0xc1] sm:$0xff]  ;;  %v527_v23 = vpack.c.bf16 %v3888_v17, %v3883_v16  ;;  %3512 = vmatpush3.bf16.msra.mxu0 %v235_v15  ;;  %3499 = vmatprep.mubr.msk.bf16.mxu0 %vm79_vm1, %v65_v12  ;;  %v3919_v24 = vld [vmem:[%s5024_s0 + $0x71] sm:$0xff] }
   0x8   :  { %v3906_v21 = vld [vmem:[%s5024_s0 + $0xe1] sm:$0xff]  ;;  %v528_v25 = vpack.c.bf16 %v3901_v20, %v3893_v18  ;;  %v55_v27 = vld [vmem:[%s5024_s0 + $0x91] sm:$0xff]  ;;  %v66_v29 = vpack.c.bf16 %v3919_v24, %v3874_v13  ;;  %v68_v36 = vpack.c.bf16 %v3893_v18, %v3888_v17  ;;  %v4077_v18 = vshrl.u32 %v752_v11, 7 }
   0x9   :  { %v529_v26 = vpack.c.bf16 %v3911_v22, %v3906_v21  ;;  %v3758_v28 = vld [vmem:[%s5023_s1 + $0x10] sm:$0x3f]   ;;  %v67_v30 = vpack.c.bf16 %v3883_v16, %v55_v27  ;;  %v3940_v31 = vld [vmem:[%s5024_s0 + $0x101] sm:$0xff]  ;;  %v69_v37 = vpack.c.bf16 %v3906_v21, %v3901_v20  ;;  %v3759_v49 = vld [vmem:[%s5023_s1 + $0x18] sm:$0x3f]  }
   0xa   :  { %3747 = vmatprep.subr.msk.bf16.mxu0 %vm104_vm0, %v3758_v28  ;;  %v3945_v32 = vld [vmem:[%s5024_s0 + $0x81] sm:$0xff]  ;;  %v3950_v33 = vld [vmem:[%s5024_s0 + $0x111] sm:$0xff]  ;;  %v70_v40 = vpack.c.bf16 %v3940_v31, %v3911_v22  ;;  %v392_v48 = vsel %vm104_vm0, %v3758_v28, 0  ;;  %v564_v8 = vsel %vm104_vm0, %v3759_v49, 0 }
   0xb   :  { %v526_v34 = vpack.c.bf16 %v3945_v32, %v3919_v24  ;;  %v530_v35 = vpack.c.bf16 %v3950_v33, %v3940_v31  ;;  %v21_v38 = vld [vmem:[%s5024_s0] sm:$0xff]  ;;  %v22_v39 = vld [vmem:[%s5024_s0 + $0x10] sm:$0xff] }
   0xc   :  { %v37_v41 = vpack.c.bf16 %v22_v39, %v21_v38  ;;  %v23_v42 = vld [vmem:[%s5024_s0 + $0x20] sm:$0xff]  ;;  %v24_v43 = vld [vmem:[%s5024_s0 + $0x30] sm:$0xff] }
   0xd   :  { %v25_v44 = vld [vmem:[%s5024_s0 + $0x40] sm:$0xff]  ;;  %v26_v45 = vld [vmem:[%s5024_s0 + $0x50] sm:$0xff]  ;;  %v38_v46 = vpack.c.bf16 %v24_v43, %v23_v42  ;;  %v351_v1 = vpack.c.bf16 %v23_v42, %v22_v39 }
   0xe   :  { %3500 = vmatmul.mubr.msk.bf16.gmra.mrb[4].mxu0 %vm79_vm1, %v66_v29  ;;  %v39_v47 = vpack.c.bf16 %v26_v45, %v25_v44  ;;  %v27_v50 = vld [vmem:[%s5024_s0 + $0x60] sm:$0xff]  ;;  %v28_v51 = vld [vmem:[%s5024_s0 + $0x70] sm:$0xff]  ;;  %v352_v4 = vpack.c.bf16 %v25_v44, %v24_v43 }
   0xf   :  { %3503 = vmatprep.mubr.msk.bf16.mxu0 %vm79_vm1, %v67_v30  ;;  %v29_v52 = vld [vmem:[%s5024_s0 + $0x90] sm:$0xff]  ;;  %v30_v53 = vld [vmem:[%s5024_s0 + $0xa0] sm:$0xff]  ;;  %v40_v54 = vpack.c.bf16 %v28_v51, %v27_v50  ;;  %v353_v5 = vpack.c.bf16 %v27_v50, %v26_v45 }
  0x10   :  { %v41_v55 = vpack.c.bf16 %v30_v53, %v29_v52  ;;  %v31_v56 = vld [vmem:[%s5024_s0 + $0xb0] sm:$0xff]  ;;  %v32_v57 = vld [vmem:[%s5024_s0 + $0xc0] sm:$0xff] }
  0x11   :  { %v33_v58 = vld [vmem:[%s5024_s0 + $0xd0] sm:$0xff]  ;;  %v34_v59 = vld [vmem:[%s5024_s0 + $0xe0] sm:$0xff]  ;;  %v42_v60 = vpack.c.bf16 %v32_v57, %v31_v56  ;;  %v355_v15 = vpack.c.bf16 %v31_v56, %v30_v53 }
  0x12   :  { %v43_v61 = vpack.c.bf16 %v34_v59, %v33_v58  ;;  %v35_v62 = vld [vmem:[%s5024_s0 + $0xf0] sm:$0xff]  ;;  %v36_v63 = vld [vmem:[%s5024_s0 + $0x100] sm:$0xff]  ;;  %v356_v27 = vpack.c.bf16 %v33_v58, %v32_v57 }
  0x13   :  { %v44_v0 = vpack.c.bf16 %v36_v63, %v35_v62  ;;  %v3276_v9 = vld [vmem:[%s5024_s0 + $0x80] sm:$0xff]  ;;  %v357_v28 = vpack.c.bf16 %v35_v62, %v34_v59  ;;  %v3284_v29 = vld [vmem:[%s5024_s0 + $0x110] sm:$0xff]  ;;  %s3791_s0 = smov 16  }
  0x14   :  { %v354_v12 = vpack.c.bf16 %v3276_v9, %v28_v51  ;;  %v358_v30 = vpack.c.bf16 %v3284_v29, %v36_v63 }
  0x16   :  { %3504 = vmatmul.mubr.msk.bf16.gmra.mrb[8].mxu0 %vm79_vm1, %v68_v36 }
  0x17   :  { %3507 = vmatprep.mubr.msk.bf16.mxu0 %vm79_vm1, %v69_v37 }
  0x1e   :  { %3508 = vmatmul.mubr.msk.bf16.gmra.mrb[12].mxu0 %vm79_vm1, %v70_v40 }
  0x1f   :  { %3513 = vmatprep.mubr.msk.bf16.mxu0 %vm79_vm1, %v37_v41 }
  0x26   :  { %3514 = vmatmul.mubr.msk.bf16.vlgmr.msra.gmra.mrb[0].mxu0 %vm79_vm1, %v38_v46 }
  0x27   :  { %3530 = vmatpush3.bf16.msra.mxu0 %v392_v48  ;;  %3517 = vmatprep.mubr.msk.bf16.mxu0 %vm79_vm1, %v39_v47 }
  0x28   :  { %3748 = vmatprep.subr.msk.bf16.mxu0 %vm104_vm0, %v3759_v49 }
  0x2e   :  { %3518 = vmatmul.mubr.msk.bf16.gmra.mrb[4].mxu0 %vm79_vm1, %v40_v54 }
  0x2f   :  { %3521 = vmatprep.mubr.msk.bf16.mxu0 %vm79_vm1, %v41_v55 }
  0x36   :  { %3522 = vmatmul.mubr.msk.bf16.gmra.mrb[8].mxu0 %vm79_vm1, %v42_v60 }
  0x37   :  { %3525 = vmatprep.mubr.msk.bf16.mxu0 %vm79_vm1, %v43_v61 }
  0x3e   :  { %3526 = vmatmul.mubr.msk.bf16.gmra.mrb[12].mxu0 %vm79_vm1, %v44_v0 }
  0x3f   :  { %3531 = vmatprep.mubr.msk.bf16.mxu0 %vm79_vm1, %v351_v1 }
  0x46   :  { %3532 = vmatmul.mubr.msk.bf16.vlgmr.msra.gmra.mrb[0].mxu0 %vm79_vm1, %v352_v4 }
  0x47   :  { %3548 = vmatpush3.bf16.msra.mxu0 %v564_v8  ;;  %3535 = vmatprep.mubr.msk.bf16.mxu0 %vm79_vm1, %v353_v5 }
  0x4e   :  { %3536 = vmatmul.mubr.msk.bf16.gmra.mrb[4].mxu0 %vm79_vm1, %v354_v12 }
  0x4f   :  { %3539 = vmatprep.mubr.msk.bf16.mxu0 %vm79_vm1, %v355_v15 }
  0x56   :  { %3540 = vmatmul.mubr.msk.bf16.gmra.mrb[8].mxu0 %vm79_vm1, %v356_v27 }
  0x57   :  { %3543 = vmatprep.mubr.msk.bf16.mxu0 %vm79_vm1, %v357_v28 }
  0x5e   :  { %3544 = vmatmul.mubr.msk.bf16.gmra.mrb[12].mxu0 %vm79_vm1, %v358_v30 }
  0x5f   :  { %3549 = vmatprep.mubr.msk.bf16.mxu0 %vm79_vm1, %v523_v7  ;;  %v3790_v7 = vmov 1966171168  }
  0x60   :  { %v750_v10 = vunpack.c.l.s4 %v3790_v7 }
  0x62   :  { %v751_v17 = vunpack.c.0.s8 %v750_v10 }
  0x66   :  { %3550 = vmatmul.mubr.msk.bf16.vlgmr.msra.gmra.mrb[0].mxu0 %vm79_vm1, %v524_v14 }
  0x67   :  { %3553 = vmatprep.mubr.msk.bf16.mxu0 %vm79_vm1, %v525_v19 }
  0x6e   :  { %3554 = vmatmul.mubr.msk.bf16.gmra.mrb[4].mxu0 %vm79_vm1, %v526_v34 }
  0x6f   :  { %3557 = vmatprep.mubr.msk.bf16.mxu0 %vm79_vm1, %v527_v23 }
  0x76   :  { %3558 = vmatmul.mubr.msk.bf16.gmra.mrb[8].mxu0 %vm79_vm1, %v528_v25  ;;  %v4080_v25 = vsub.s32 %v751_v17, %v4077_v18 }
  0x77   :  { %3561 = vmatprep.mubr.msk.bf16.mxu0 %vm79_vm1, %v529_v26 }
  0x7e   :  { %3562 = vmatmul.mubr.msk.bf16.gmra.mrb[12].mxu0 %vm79_vm1, %v530_v35  ;;  %vm773_vm1 = vcmask 253952  }
 0x139   :  { %v3551_v2 = vpop.f32.mrb[0].mxu0 }
 0x13a   :  { %vm681_vm2 = vcmp.gt.f32.partialorder %v3551_v2, 0.0  ;;  %v697_v3 = vmul.f32 0.2, %v3551_v2  ;;  %v600_v6 = vpop.f32.mrb[1].mxu0 }
 0x13b   :  { %v3552_v13 = vpop.f32.mrb[2].mxu0  ;;  %v695_v19 = vmul.f32 0.2, %v600_v6  ;;  %vm679_vm3 = vcmp.gt.f32.partialorder %v600_v6, 0.0 }
 0x13c   :  { %v4073_v14 = vsel %vm681_vm2, %v3551_v2, %v697_v3  ;;  %v603_v16 = vpop.f32.mrb[3].mxu0  ;;  %v698_v20 = vmul.f32 0.2, %v3552_v13  ;;  %vm682_vm5 = vcmp.gt.f32.partialorder %v3552_v13, 0.0 }
 0x13d   :  { %1131 = vrot.lane.b32.xlu0 %v4073_v14, %s3791_s0  ;;  %v696_v21 = vmul.f32 0.2, %v603_v16  ;;  %vm680_vm8 = vcmp.gt.f32.partialorder %v603_v16, 0.0  ;;  %v4082_v26 = vsel %vm679_vm3, %v600_v6, %v695_v19  ;;  %v992_v41 = vrot.slane %v4073_v14, 1 }
 0x13e   :  { %v4085_v33 = vsel %vm682_vm5, %v3552_v13, %v698_v20  ;;  %v776_v42 = vrot.slane %v4082_v26, 1  ;;  %v858_v43 = vrot.slane %v4082_v26, 5  ;;  %v781_v46 = vrot.slane %v4082_v26, 2 }
 0x13f   :  { %v4090_v37 = vsel %vm680_vm8, %v603_v16, %v696_v21  ;;  %v1227_v45 = vrot.slane %v4085_v33, 1  ;;  %v817_v47 = vrot.slane %v4082_v26, 3  ;;  %v899_v51 = vrot.slane %v4082_v26, 7 }
 0x140   :  { %v4112_v50 = vrot.slane %v4090_v37, 1  ;;  %v864_v55 = vrot.slane %v4082_v26, 6  ;;  %v823_v56 = vrot.slane %v4082_v26, 4 }
 0x141   :  { %v3555_v22 = vpop.f32.mrb[4].mxu0 }
 0x142   :  { %vm685_vm9 = vcmp.gt.f32.partialorder %v3555_v22, 0.0  ;;  %v701_v23 = vmul.f32 0.2, %v3555_v22  ;;  %v616_v24 = vpop.f32.mrb[5].mxu0 }
 0x143   :  { %vm683_vm10 = vcmp.gt.f32.partialorder %v616_v24, 0.0  ;;  %v699_v31 = vmul.f32 0.2, %v616_v24  ;;  %v3556_v32 = vpop.f32.mrb[6].mxu0 }
 0x144   :  { %v4087_v34 = vsel %vm685_vm9, %v3555_v22, %v701_v23  ;;  %vm686_vm13 = vcmp.gt.f32.partialorder %v3556_v32, 0.0  ;;  %v702_v35 = vmul.f32 0.2, %v3556_v32  ;;  %v619_v36 = vpop.f32.mrb[7].mxu0 }
 0x145   :  { %v4092_v38 = vsel %vm683_vm10, %v616_v24, %v699_v31  ;;  %vm684_vm0 = vcmp.gt.f32.partialorder %v619_v36, 0.0  ;;  %v700_v39 = vmul.f32 0.2, %v619_v36  ;;  %1615 = vrot.lane.b32.xlu0 %v4087_v34, %s3791_s0  ;;  %v4117_v54 = vrot.slane %v4087_v34, 1 }
 0x146   :  { %v4096_v40 = vsel %vm686_vm13, %v3556_v32, %v702_v35  ;;  %1373 = vrot.lane.b32.xlu1 %v4092_v38, %s3791_s0  ;;  %v4122_v60 = vrot.slane %v4092_v38, 1 }
 0x147   :  { %v1825_v44 = vsel %vm948_vm4, %v4096_v40, 0.0  ;;  %v4109_v49 = vsel %vm684_vm0, %v619_v36, %v700_v39  ;;  %v4128_v0 = vrot.slane %v4096_v40, 1 }
 0x148   :  { %v1827_v48 = vsel %vm787_vm7, %v1825_v44, 0.0  ;;  %v4125_v63 = vrot.slane %v4109_v49, 1 }
 0x149   :  { %v1829_v52 = vsel %vm746_vm6, %v1827_v48, 0.0  ;;  %v3559_v53 = vpop.f32.mrb[8].mxu0 }
 0x14a   :  { %v1833_v57 = vcombine.high %v1829_v52, %v1829_v52  ;;  %vm689_vm2 = vcmp.gt.f32.partialorder %v3559_v53, 0.0  ;;  %v705_v58 = vmul.f32 0.2, %v3559_v53  ;;  %v632_v59 = vpop.f32.mrb[9].mxu0 }
 0x14b   :  { %vm687_vm3 = vcmp.gt.f32.partialorder %v632_v59, 0.0  ;;  %v703_v61 = vmul.f32 0.2, %v632_v59  ;;  %v3560_v62 = vpop.f32.mrb[10].mxu0 }
 0x14c   :  { %v1840_v1 = vrot.slane %v1833_v57, %v4080_v25  ;;  %v721_v4 = vsel %vm689_vm2, %v3559_v53, %v705_v58  ;;  %vm690_vm5 = vcmp.gt.f32.partialorder %v3560_v62, 0.0  ;;  %v706_v5 = vmul.f32 0.2, %v3560_v62  ;;  %v635_v8 = vpop.f32.mrb[11].mxu0 }
 0x14d   :  { %v4131_v9 = vrot.slane %v721_v4, 7  ;;  %v4133_v12 = vsel %vm687_vm3, %v632_v59, %v703_v61  ;;  %vm688_vm8 = vcmp.gt.f32.partialorder %v635_v8, 0.0  ;;  %v704_v15 = vmul.f32 0.2, %v635_v8 }
 0x14e   :  { %v1841_v27 = vcombine.high %v1840_v1, %v1840_v1  ;;  %v722_v28 = vsel %vm690_vm5, %v3560_v62, %v706_v5  ;;  %v1093_v29 = vsel %vm1082_vm11, %v721_v4, %v992_v41  ;;  %v1039_v30 = vsel %vm1028_vm12, %v721_v4, %v992_v41 }
 0x14f   :  { %v4137_v2 = vrot.slane %v722_v28, 7  ;;  %v720_v3 = vsel %vm688_vm8, %v635_v8, %v704_v15  ;;  %1094 = vrot.lane.b32.xlu1 %v1093_v29, %s3792_s22  ;;  %1040 = vrot.lane.b32.xlu0 %v1039_v30, %s3792_s22  ;;  %v993_v6 = vsel %vm980_vm14, %v721_v4, %v992_v41  ;;  %v777_v7 = vsel %vm741_vm15, %v4133_v12, %v776_v42 }
 0x150   :  { %v1848_v10 = vrot.slane %v1841_v27, %v4080_v25  ;;  %v4145_v11 = vrot.slane %v720_v3, 7  ;;  %v1035_v13 = vsel %vm1028_vm12, %v4131_v9, %v4073_v14  ;;  %v1089_v16 = vsel %vm1082_vm11, %v4131_v9, %v4073_v14 }
 0x151   :  { %v3563_v17 = vpop.f32.mrb[12].mxu0  ;;  %v1327_v19 = vsel %vm1082_vm11, %v722_v28, %v1227_v45  ;;  %v1274_v20 = vsel %vm1028_vm12, %v722_v28, %v1227_v45  ;;  %v4158_v21 = vsel %vm980_vm14, %v4131_v9, %v4073_v14  ;;  %v4161_v22 = vsel %vm980_vm14, %v722_v28, %v1227_v45 }
 0x152   :  { %v1849_v23 = vcombine.high %v1848_v10, %v1848_v10  ;;  %vm693_vm9 = vcmp.gt.f32.partialorder %v3563_v17, 0.0  ;;  %v709_v24 = vmul.f32 0.2, %v3563_v17  ;;  %v648_v31 = vpop.f32.mrb[13].mxu0  ;;  %v4165_v32 = vsel %vm1082_vm11, %v720_v3, %v4112_v50 }
 0x153   :  { %994 = vrot.lane.b32.xlu1 %v993_v6, %s3792_s22  ;;  %778 = vrot.lane.b32.xlu0 %v777_v7, %s3791_s0  ;;  %vm691_vm10 = vcmp.gt.f32.partialorder %v648_v31, 0.0  ;;  %v707_v35 = vmul.f32 0.2, %v648_v31  ;;  %v3564_v36 = vpop.f32.mrb[14].mxu0  ;;  %v4171_v39 = vsel %vm1028_vm12, %v720_v3, %v4112_v50  ;;  %v859_v41 = vrot.slane %v4133_v12, 4 }
 0x154   :  { %1866 = vst.msk [vmem:[#allocation2 + $0x44] sm:$0x1] %vm773_vm1, %v1849_v23  ;;  %v725_v42 = vsel %vm693_vm9, %v3563_v17, %v709_v24  ;;  %vm694_vm13 = vcmp.gt.f32.partialorder %v3564_v36, 0.0  ;;  %v710_v44 = vmul.f32 0.2, %v3564_v36  ;;  %v651_v45 = vpop.f32.mrb[15].mxu0  ;;  %v4177_v48 = vsel %vm980_vm14, %v720_v3, %v4112_v50 }
 0x155   :  { %v4179_v52 = vrot.slane %v725_v42, 7  ;;  %v723_v53 = vsel %vm691_vm10, %v648_v31, %v707_v35  ;;  %vm692_vm0 = vcmp.gt.f32.partialorder %v651_v45, 0.0  ;;  %v708_v57 = vmul.f32 0.2, %v651_v45 }
 0x156   :  { %v4181_v58 = vrot.slane %v723_v53, 7  ;;  %v726_v59 = vsel %vm694_vm13, %v3564_v36, %v710_v44  ;;  %v4186_v61 = vsel %vm741_vm15, %v859_v41, %v858_v43  ;;  %v782_v62 = vrot.slane %v4133_v12, 1 }
 0x157   :  { %v4189_v1 = vrot.slane %v726_v59, 7  ;;  %v724_v4 = vsel %vm692_vm0, %v651_v45, %v708_v57  ;;  %1036 = vrot.lane.b32.xlu1 %v1035_v13, %s3791_s0  ;;  %1090 = vrot.lane.b32.xlu0 %v1089_v16, %s3791_s0  ;;  %v818_v50 = vrot.slane %v4133_v12, 2  ;;  %v900_v5 = vrot.slane %v4133_v12, 6 }
 0x158   :  { %v4195_v8 = vrot.slane %v724_v4, 7  ;;  %v783_v43 = vsel %vm741_vm15, %v782_v62, %v781_v46  ;;  %v1577_v15 = vsel %vm1082_vm11, %v725_v42, %v4117_v54  ;;  %v1524_v27 = vsel %vm1028_vm12, %v725_v42, %v4117_v54 }
 0x159   :  { %v1826_v28 = vsel %vm948_vm4, %v4189_v1, 0.0  ;;  %v819_v29 = vsel %vm741_vm15, %v818_v50, %v817_v47  ;;  %v901_v30 = vsel %vm741_vm15, %v900_v5, %v899_v51  ;;  %v1282_v46 = vsel %vm1028_vm12, %v723_v53, %v4122_v60 }
 0x15a   :  { %v1828_v3 = vsel %vm787_vm7, %v1826_v28, 0.0  ;;  %v4217_v6 = vsel %vm980_vm14, %v725_v42, %v4117_v54  ;;  %v4221_v7 = vsel %vm980_vm14, %v723_v53, %v4122_v60  ;;  %v4225_v47 = vsel %vm1082_vm11, %v723_v53, %v4122_v60 }
 0x15b   :  { %v1830_v10 = vsel %vm746_vm6, %v1828_v3, 0.0  ;;  %1328 = vrot.lane.b32.xlu0 %v1327_v19, %s3793_s23  ;;  %1275 = vrot.lane.b32.xlu1 %v1274_v20, %s3793_s23  ;;  %v4233_v51 = vsel %vm1028_vm12, %v4179_v52, %v4087_v34  ;;  %v4238_v54 = vsel %vm1082_vm11, %v4179_v52, %v4087_v34  ;;  %v4242_v60 = vsel %vm1082_vm11, %v724_v4, %v4125_v63 }
 0x15c   :  { %v1856_v13 = vrot.slane %v1830_v10, %v4080_v25  ;;  %v4248_v16 = vsel %vm980_vm14, %v4179_v52, %v4087_v34  ;;  %v4253_v17 = vsel %vm1028_vm12, %v4181_v58, %v4092_v38  ;;  %v865_v19 = vrot.slane %v4133_v12, 5 }
 0x15d   :  { %v4258_v20 = vsel %vm1028_vm12, %v724_v4, %v4125_v63  ;;  %v4263_v23 = vsel %vm1082_vm11, %v4181_v58, %v4092_v38  ;;  %v4267_v24 = vsel %vm980_vm14, %v724_v4, %v4125_v63  ;;  %v824_v31 = vrot.slane %v4133_v12, 3 }
 0x15e   :  { %v1863_v35 = vrot.slane %v1856_v13, %v4080_v25  ;;  %v866_v36 = vsel %vm741_vm15, %v865_v19, %v864_v55  ;;  %v1232_v41 = vsel %vm980_vm14, %v4181_v58, %v4092_v38  ;;  %v4280_v42 = vsel %vm741_vm15, %v4145_v11, %v4090_v37 }
 0x15f   :  { %989 = vrot.lane.b32.xlu0 %v4158_v21, %s3791_s0  ;;  %1229 = vrot.lane.b32.xlu1 %v4161_v22, %s3793_s23  ;;  %v825_v63 = vsel %vm741_vm15, %v824_v31, %v823_v56  ;;  %v4292_v55 = vsel %vm741_vm15, %v4137_v2, %v4085_v33  ;;  %v740_v44 = vrot.slane %v4133_v12, 7  ;;  %v4299_v21 = vsel %vm741_vm15, %v4195_v8, %v4109_v49 }
 0x160   :  { %1867 = vst.msk [vmem:[#allocation2 + $0x94] sm:$0x1] %vm773_vm1, %v1863_v35  ;;  %v4304_v22 = vsel %vm741_vm15, %v4181_v58, %v4092_v38  ;;  %v4309_v56 = vsel %vm741_vm15, %v4179_v52, %v4087_v34  ;;  %v4313_v12 = vsel %vm1028_vm12, %v726_v59, %v4128_v0  ;;  %v4321_v53 = vsel %vm1082_vm11, %v726_v59, %v4128_v0 }
 0x161   :  { %v4317_v45 = vsel %vm741_vm15, %v740_v44, %v4082_v26  ;;  %v4325_v38 = vsel %vm980_vm14, %v726_v59, %v4128_v0  ;;  %v4330_v34 = vsel %vm741_vm15, %v4189_v1, %v4096_v40  ;;  %v4335_v57 = vsel %vm1082_vm11, %v4137_v2, %v4085_v33 }
 0x162   :  { %v4340_v26 = vsel %vm1028_vm12, %v4137_v2, %v4085_v33  ;;  %v4345_v0 = vsel %vm980_vm14, %v4137_v2, %v4085_v33  ;;  %v4350_v59 = vsel %vm1082_vm11, %v4145_v11, %v4090_v37  ;;  %v4359_v62 = vsel %vm1028_vm12, %v4145_v11, %v4090_v37 }
 0x163   :  { %1086 = vrot.lane.b32.xlu1 %v4165_v32, %s3793_s23  ;;  %1032 = vrot.lane.b32.xlu0 %v4171_v39, %s3793_s23  ;;  %v4364_v4 = vsel %vm980_vm14, %v4145_v11, %v4090_v37  ;;  %v4369_v50 = vsel %vm1082_vm11, %v4195_v8, %v4109_v49  ;;  %v4374_v32 = vsel %vm1028_vm12, %v4195_v8, %v4109_v49  ;;  %vm1913_vm2 = vcmask 261120  }
 0x164   :  { %v4379_v39 = vsel %vm980_vm14, %v4195_v8, %v4109_v49  ;;  %v4384_v5 = vsel %vm1028_vm12, %v4189_v1, %v4096_v40  ;;  %v4389_v28 = vsel %vm1082_vm11, %v4189_v1, %v4096_v40  ;;  %v4394_v3 = vsel %vm980_vm14, %v4189_v1, %v4096_v40  ;;  %v4458_v1 = vld [vmem:[%s5025_s2] sm:$0xff]  }
 0x165   :  { %vm727_vm11 = vcmask 257024   ;;  %v3794_v40 = vmov 0.0   ;;  %vm2438_vm0 = vcmask 392192  }
 0x166   :  { %728 = vst.msk [vmem:[#allocation2 + $0x5] sm:$0xf] %vm727_vm11, %v3794_v40  ;;  %729 = vst.msk [vmem:[#allocation2 + $0x15] sm:$0xf] %vm727_vm11, %v3794_v40 }
 0x167   :  { %861 = vrot.lane.b32.xlu0 %v4186_v61, %s3791_s0  ;;  %985 = vrot.lane.b32.xlu1 %v4177_v48, %s3793_s23  ;;  %730 = vst.msk [vmem:[#allocation2 + $0x25] sm:$0xf] %vm727_vm11, %v3794_v40  ;;  %731 = vst.msk [vmem:[#allocation2 + $0x35] sm:$0xf] %vm727_vm11, %v3794_v40  ;;  %v3760_v48 = vld [vmem:[%s5025_s2 + $0x10] sm:$0xff]   ;;  %v3761_v61 = vld [vmem:[%s5025_s2 + $0x18] sm:$0xff]  }
 0x168   :  { %732 = vst.msk [vmem:[#allocation2 + $0x45] sm:$0xf] %vm727_vm11, %v3794_v40  ;;  %733 = vst.msk [vmem:[#allocation2 + $0x55] sm:$0xf] %vm727_vm11, %v3794_v40  ;;  %3565 = vmatprep.subr.bf16.mxu1 %v3760_v48 }
 0x169   :  { %734 = vst.msk [vmem:[#allocation2 + $0x65] sm:$0xf] %vm727_vm11, %v3794_v40  ;;  %735 = vst.msk [vmem:[#allocation2 + $0x75] sm:$0xf] %vm727_vm11, %v3794_v40  ;;  %3566 = vmatpush3.bf16.msra.mxu1 %v3760_v48 }
 0x16a   :  { %736 = vst.msk [vmem:[#allocation2 + $0x85] sm:$0xf] %vm727_vm11, %v3794_v40  ;;  %737 = vst.msk [vmem:[#allocation2 + $0x95] sm:$0xf] %vm727_vm11, %v3794_v40  ;;  %3567 = vmatprep.subr.bf16.mxu1 %v3761_v61 }
 0x16b   :  { %784 = vrot.lane.b32.xlu0 %v783_v43, %s3792_s22  ;;  %820 = vrot.lane.b32.xlu1 %v819_v29, %s3791_s0 }
 0x16d   :  { %3568 = vmatpush3.bf16.msra.mxu1 %v3761_v61 }
 0x16e   :  { %3577 = vmatprep.subr.bf16.mxu1 %v4458_v1 }
 0x16f   :  { %902 = vrot.lane.b32.xlu1 %v901_v30, %s3791_s0  ;;  %1578 = vrot.lane.b32.xlu0 %v1577_v15, %s3792_s22 }
 0x173   :  { %1525 = vrot.lane.b32.xlu1 %v1524_v27, %s3792_s22  ;;  %1283 = vrot.lane.b32.xlu0 %v1282_v46, %s3792_s22  ;;  %v1621_v46 = vsel %vm948_vm4, %v4109_v49, 0.0 }
 0x177   :  { %1480 = vrot.lane.b32.xlu1 %v4217_v6, %s3792_s22  ;;  %1238 = vrot.lane.b32.xlu0 %v4221_v7, %s3792_s22 }
 0x17b   :  { %1336 = vrot.lane.b32.xlu1 %v4225_v47, %s3792_s22  ;;  %1521 = vrot.lane.b32.xlu0 %v4233_v51, %s3791_s0  ;;  %v1379_v47 = vsel %vm948_vm4, %v4085_v33, 0.0 }
 0x17f   :  { %1574 = vrot.lane.b32.xlu1 %v4238_v54, %s3791_s0  ;;  %1570 = vrot.lane.b32.xlu0 %v4242_v60, %s3793_s23 }
 0x183   :  { %1475 = vrot.lane.b32.xlu1 %v4248_v16, %s3791_s0  ;;  %1279 = vrot.lane.b32.xlu0 %v4253_v17, %s3791_s0 }
 0x187   :  { %867 = vrot.lane.b32.xlu0 %v866_v36, %s3792_s22  ;;  %1517 = vrot.lane.b32.xlu1 %v4258_v20, %s3793_s23 }
 0x18b   :  { %1332 = vrot.lane.b32.xlu1 %v4263_v23, %s3791_s0  ;;  %1471 = vrot.lane.b32.xlu0 %v4267_v24, %s3793_s23 }
 0x18f   :  { %826 = vrot.lane.b32.xlu1 %v825_v63, %s3792_s22  ;;  %1233 = vrot.lane.b32.xlu0 %v1232_v41, %s3791_s0 }
 0x193   :  { %1133 = vrot.lane.b32.xlu1 %v4131_v9, %s3791_s0  ;;  %1375 = vrot.lane.b32.xlu0 %v4181_v58, %s3791_s0  ;;  %v944_v58 = vsel %vm741_vm15, %v4131_v9, %v4073_v14  ;;  %v1137_v9 = vsel %vm948_vm4, %v4090_v37, 0.0 }
 0x197   :  { %1617 = vrot.lane.b32.xlu1 %v4179_v52, %s3791_s0  ;;  %938 = vrot.lane.b32.xlu0 %v4280_v42, %s3793_s23 }
 0x19b   :  { %1184 = vrot.lane.b32.xlu1 %v4292_v55, %s3793_s23  ;;  %945 = vrot.lane.b32.xlu0 %v944_v58, %s3792_s22 }
 0x19f   :  { %743 = vrot.lane.b32.xlu1 %v4317_v45, %s3792_s22  ;;  %1426 = vrot.lane.b32.xlu0 %v4299_v21, %s3793_s23 }
 0x1a3   :  { %1191 = vrot.lane.b32.xlu1 %v4304_v22, %s3792_s22  ;;  %1433 = vrot.lane.b32.xlu0 %v4309_v56, %s3792_s22 }
 0x1a7   :  { %1743 = vrot.lane.b32.xlu1 %v4313_v12, %s3793_s23  ;;  %1788 = vrot.lane.b32.xlu0 %v4321_v53, %s3793_s23 }
 0x1ab   :  { %1706 = vrot.lane.b32.xlu1 %v4325_v38, %s3793_s23  ;;  %1668 = vrot.lane.b32.xlu0 %v4330_v34, %s3793_s23 }
 0x1af   :  { %v1132_v14 = vpop.permute.xlu0 %1131 }
 0x1b0   :  { %v1139_v52 = vsel %vm787_vm7, %v1137_v9, %v1132_v14 }
 0x1b1   :  { %v1141_v43 = vsel %vm746_vm6, %v1139_v52, 0.0 }
 0x1b2   :  { %v1145_v15 = vcombine.high %v1141_v43, %v1141_v43 }
 0x1b4   :  { %v1152_v27 = vrot.slane %v1145_v15, %v4080_v25 }
 0x1b6   :  { %v1153_v29 = vcombine.high %v1152_v27, %v1152_v27 }
 0x1b7   :  { %v1616_v30 = vpop.permute.xlu0 %1615 }
 0x1b8   :  { %v1160_v6 = vrot.slane %v1153_v29, %v4080_v25  ;;  %v1623_v7 = vsel %vm787_vm7, %v1621_v46, %v1616_v30  ;;  %v1374_v37 = vpop.permute.xlu1 %1373 }
 0x1b9   :  { %v1625_v10 = vsel %vm746_vm6, %v1623_v7, 0.0  ;;  %v1381_v51 = vsel %vm787_vm7, %v1379_v47, %v1374_v37 }
 0x1ba   :  { %v1161_v54 = vcombine.high %v1160_v6, %v1160_v6  ;;  %v1629_v60 = vcombine.high %v1625_v10, %v1625_v10  ;;  %v1383_v13 = vsel %vm746_vm6, %v1381_v51, 0.0 }
 0x1bb   :  { %v1387_v16 = vcombine.high %v1383_v13, %v1383_v13 }
 0x1bc   :  { %1178 = vst.msk [vmem:[#allocation2 + $0x14] sm:$0x1] %vm773_vm1, %v1161_v54  ;;  %v1636_v49 = vrot.slane %v1629_v60, %v4080_v25 }
 0x1bd   :  { %v1394_v17 = vrot.slane %v1387_v16, %v4080_v25 }
 0x1be   :  { %v1637_v19 = vcombine.high %v1636_v49, %v1636_v49 }
 0x1bf   :  { %v1395_v20 = vcombine.high %v1394_v17, %v1394_v17 }
 0x1c0   :  { %v1644_v33 = vrot.slane %v1637_v19, %v4080_v25 }
 0x1c1   :  { %v1402_v23 = vrot.slane %v1395_v20, %v4080_v25  ;;  %v1095_v24 = vpop.permute.xlu1 %1094  ;;  %v1041_v31 = vpop.permute.xlu0 %1040 }
 0x1c2   :  { %v1645_v35 = vcombine.high %v1644_v33, %v1644_v33 }
 0x1c3   :  { %v1403_v36 = vcombine.high %v1402_v23, %v1402_v23 }
 0x1c4   :  { %1662 = vst.msk [vmem:[#allocation2 + $0x34] sm:$0x1] %vm773_vm1, %v1645_v35 }
 0x1c5   :  { %1420 = vst.msk [vmem:[#allocation2 + $0x24] sm:$0x1] %vm773_vm1, %v1403_v36  ;;  %v995_v41 = vpop.permute.xlu1 %994  ;;  %v779_v42 = vpop.permute.xlu0 %778 }
 0x1c6   :  { %v788_v46 = vsel %vm787_vm7, 0.0, %v779_v42 }
 0x1c9   :  { %v1037_v63 = vpop.permute.xlu1 %1036  ;;  %v1091_v55 = vpop.permute.xlu0 %1090 }
 0x1cd   :  { %v4504_v44 = vpop.permute.xlu0 %1328  ;;  %v4506_v21 = vpop.permute.xlu1 %1275 }
 0x1d1   :  { %v990_v22 = vpop.permute.xlu0 %989  ;;  %v4508_v56 = vpop.permute.xlu1 %1229 }
 0x1d5   :  { %v1087_v12 = vpop.permute.xlu1 %1086  ;;  %v1033_v45 = vpop.permute.xlu0 %1032 }
 0x1d6   :  { %v1097_v53 = vsel %vm948_vm4, %v4350_v59, %v1087_v12  ;;  %v1043_v38 = vsel %vm948_vm4, %v4359_v62, %v1033_v45 }
 0x1d7   :  { %v1098_v34 = vsel %vm787_vm7, %v1097_v53, %v1091_v55  ;;  %v1044_v48 = vsel %vm787_vm7, %v1043_v38, %v1037_v63 }
 0x1d8   :  { %v1099_v61 = vsel %vm746_vm6, %v1098_v34, %v1095_v24  ;;  %v1045_v58 = vsel %vm746_vm6, %v1044_v48, %v1041_v31 }
 0x1d9   :  { %v1101_v14 = vcombine.high %v1099_v61, %v1099_v61  ;;  %v1047_v9 = vcombine.high %v1045_v58, %v1045_v58  ;;  %v1054_v52 = vrot.slane %v1045_v58, %v4080_v25  ;;  %v4519_v43 = vpop.permute.xlu0 %861  ;;  %v986_v15 = vpop.permute.xlu1 %985 }
 0x1da   :  { %v997_v59 = vsel %vm948_vm4, %v4364_v4, %v986_v15 }
 0x1db   :  { %v1108_v62 = vrot.slane %v1101_v14, %v4080_v25  ;;  %v1061_v27 = vrot.slane %v1047_v9, %v4080_v25  ;;  %v1062_v29 = vcombine.high %v1054_v52, %v1054_v52  ;;  %v998_v30 = vsel %vm787_vm7, %v997_v59, %v990_v22 }
 0x1dc   :  { %v999_v6 = vsel %vm746_vm6, %v998_v30, %v995_v41 }
 0x1dd   :  { %v1109_v7 = vcombine.high %v1108_v62, %v1108_v62  ;;  %v1116_v47 = vrot.slane %v1108_v62, %v4080_v25  ;;  %v1069_v37 = vrot.slane %v1061_v27, %v4080_v25  ;;  %v1076_v10 = vrot.slane %v1062_v29, %v4080_v25  ;;  %v785_v51 = vpop.permute.xlu0 %784  ;;  %v4531_v4 = vpop.permute.xlu1 %820 }
 0x1de   :  { %v1007_v54 = vrot.slane %v999_v6, %v4080_v25  ;;  %v789_v60 = vsel %vm746_vm6, %v788_v46, %v785_v51  ;;  %v1286_v62 = vsel %vm948_vm4, %v4340_v26, %v4506_v21 }
 0x1df   :  { %v1123_v13 = vrot.slane %v1109_v7, %v4080_v25  ;;  %v1124_v16 = vcombine.high %v1116_v47, %v1116_v47  ;;  %v1077_v49 = vcombine.high %v1076_v10, %v1076_v10  ;;  %1081 = vst.msk [vmem:[#allocation2 + $0x62] sm:$0x1] %vm773_vm1, %v1069_v37  ;;  %v797_v17 = vrot.slane %v789_v60, %v4080_v25 }
 0x1e0   :  { %v1008_v19 = vcombine.high %v1007_v54, %v1007_v54  ;;  %v1015_v20 = vrot.slane %v1007_v54, %v4080_v25  ;;  %v870_v37 = vsel %vm787_vm7, 0.0, %v4519_v43 }
 0x1e1   :  { %1127 = vst.msk [vmem:[#allocation2 + $0x13] sm:$0x1] %vm773_vm1, %v1123_v13  ;;  %1128 = vst.msk [vmem:[#allocation2 + $0x63] sm:$0x1] %vm773_vm1, %v1124_v16  ;;  %v798_v33 = vcombine.high %v797_v17, %v797_v17  ;;  %v805_v23 = vrot.slane %v797_v17, %v4080_v25  ;;  %v903_v24 = vpop.permute.xlu1 %902  ;;  %v1579_v31 = vpop.permute.xlu0 %1578 }
 0x1e2   :  { %1080 = vst.msk [vmem:[#allocation2 + $0x12] sm:$0x1] %vm773_vm1, %v1077_v49  ;;  %v1022_v35 = vrot.slane %v1008_v19, %v4080_v25  ;;  %v1023_v36 = vcombine.high %v1015_v20, %v1015_v20  ;;  %v905_v41 = vsel %vm787_vm7, 0.0, %v903_v24  ;;  %v1339_v20 = vsel %vm948_vm4, %v4335_v57, %v4504_v44 }
 0x1e3   :  { %v812_v42 = vrot.slane %v798_v33, %v4080_v25  ;;  %815 = vst.msk [vmem:[#allocation2 + $0x1] sm:$0x1] %vm773_vm1, %v805_v23  ;;  %v906_v63 = vsel %vm746_vm6, %v905_v41, 0.0 }
 0x1e4   :  { %1026 = vst.msk [vmem:[#allocation2 + $0x11] sm:$0x1] %vm773_vm1, %v1022_v35  ;;  %1027 = vst.msk [vmem:[#allocation2 + $0x61] sm:$0x1] %vm773_vm1, %v1023_v36  ;;  %v914_v55 = vrot.slane %v906_v63, %v4080_v25 }
 0x1e5   :  { %816 = vst.msk [vmem:[#allocation2 + $0x51] sm:$0x1] %vm773_vm1, %v812_v42  ;;  %v1526_v22 = vpop.permute.xlu1 %1525  ;;  %v1284_v12 = vpop.permute.xlu0 %1283 }
 0x1e6   :  { %v915_v45 = vcombine.high %v914_v55, %v914_v55  ;;  %v922_v53 = vrot.slane %v914_v55, %v4080_v25 }
 0x1e8   :  { %v929_v38 = vrot.slane %v915_v45, %v4080_v25  ;;  %932 = vst.msk [vmem:[#allocation2 + $0x4] sm:$0x1] %vm773_vm1, %v922_v53  ;;  %v1241_v53 = vsel %vm948_vm4, %v4345_v0, %v4508_v56 }
 0x1e9   :  { %v1481_v34 = vpop.permute.xlu1 %1480  ;;  %v4555_v48 = vpop.permute.xlu0 %1238 }
 0x1ea   :  { %933 = vst.msk [vmem:[#allocation2 + $0x54] sm:$0x1] %vm773_vm1, %v929_v38 }
 0x1ed   :  { %v1337_v61 = vpop.permute.xlu1 %1336  ;;  %v1522_v58 = vpop.permute.xlu0 %1521 }
 0x1f1   :  { %v1575_v14 = vpop.permute.xlu1 %1574  ;;  %v1571_v9 = vpop.permute.xlu0 %1570 }
 0x1f2   :  { %v1581_v52 = vsel %vm948_vm4, %v4369_v50, %v1571_v9 }
 0x1f3   :  { %v1582_v15 = vsel %vm787_vm7, %v1581_v52, %v1575_v14 }
 0x1f4   :  { %v1583_v59 = vsel %vm746_vm6, %v1582_v15, %v1579_v31 }
 0x1f5   :  { %v1585_v27 = vcombine.high %v1583_v59, %v1583_v59  ;;  %v1476_v29 = vpop.permute.xlu1 %1475  ;;  %v1280_v30 = vpop.permute.xlu0 %1279 }
 0x1f6   :  { %v1287_v46 = vsel %vm787_vm7, %v1286_v62, %v1280_v30 }
 0x1f7   :  { %v1592_v6 = vrot.slane %v1585_v27, %v4080_v25  ;;  %v1288_v7 = vsel %vm746_vm6, %v1287_v46, %v1284_v12 }
 0x1f8   :  { %v1290_v47 = vcombine.high %v1288_v7, %v1288_v7  ;;  %v1297_v50 = vrot.slane %v1288_v7, %v4080_v25 }
 0x1f9   :  { %v1593_v10 = vcombine.high %v1592_v6, %v1592_v6  ;;  %v1600_v51 = vrot.slane %v1592_v6, %v4080_v25  ;;  %v868_v54 = vpop.permute.xlu0 %867  ;;  %v1518_v26 = vpop.permute.xlu1 %1517 }
 0x1fa   :  { %v1304_v21 = vrot.slane %v1290_v47, %v4080_v25  ;;  %v1305_v60 = vcombine.high %v1297_v50, %v1297_v50  ;;  %v871_v13 = vsel %vm746_vm6, %v870_v37, %v868_v54  ;;  %v1528_v16 = vsel %vm948_vm4, %v4374_v32, %v1518_v26 }
 0x1fb   :  { %v1607_v49 = vrot.slane %v1593_v10, %v4080_v25  ;;  %v1608_v17 = vcombine.high %v1600_v51, %v1600_v51  ;;  %v879_v19 = vrot.slane %v871_v13, %v4080_v25  ;;  %v1529_v43 = vsel %vm787_vm7, %v1528_v16, %v1522_v58 }
 0x1fc   :  { %v1312_v33 = vrot.slane %v1304_v21, %v4080_v25  ;;  %v1319_v23 = vrot.slane %v1305_v60, %v4080_v25  ;;  %v1530_v24 = vsel %vm746_vm6, %v1529_v43, %v1526_v22 }
 0x1fd   :  { %1611 = vst.msk [vmem:[#allocation2 + $0x33] sm:$0x1] %vm773_vm1, %v1607_v49  ;;  %1612 = vst.msk [vmem:[#allocation2 + $0x83] sm:$0x1] %vm773_vm1, %v1608_v17  ;;  %v880_v32 = vcombine.high %v879_v19, %v879_v19  ;;  %v887_v31 = vrot.slane %v879_v19, %v4080_v25  ;;  %v1532_v35 = vcombine.high %v1530_v24, %v1530_v24  ;;  %v1333_v41 = vpop.permute.xlu1 %1332  ;;  %v1472_v42 = vpop.permute.xlu0 %1471  ;;  %v1622_v19 = vsel %vm948_vm4, %v4195_v8, 0.0 }
 0x1fe   :  { %v1539_v36 = vrot.slane %v1530_v24, %v4080_v25  ;;  %v1320_v63 = vcombine.high %v1319_v23, %v1319_v23  ;;  %1324 = vst.msk [vmem:[#allocation2 + $0x72] sm:$0x1] %vm773_vm1, %v1312_v33  ;;  %v1340_v57 = vsel %vm787_vm7, %v1339_v20, %v1333_v41  ;;  %v1483_v44 = vsel %vm948_vm4, %v4379_v39, %v1472_v42 }
 0x1ff   :  { %v894_v55 = vrot.slane %v880_v32, %v4080_v25  ;;  %897 = vst.msk [vmem:[#allocation2 + $0x3] sm:$0x1] %vm773_vm1, %v887_v31  ;;  %v1546_v22 = vrot.slane %v1532_v35, %v4080_v25  ;;  %v1341_v45 = vsel %vm746_vm6, %v1340_v57, %v1337_v61  ;;  %v1484_v58 = vsel %vm787_vm7, %v1483_v44, %v1476_v29 }
 0x200   :  { %v1547_v12 = vcombine.high %v1539_v36, %v1539_v36  ;;  %1323 = vst.msk [vmem:[#allocation2 + $0x22] sm:$0x1] %vm773_vm1, %v1320_v63  ;;  %v1343_v38 = vcombine.high %v1341_v45, %v1341_v45  ;;  %v829_v39 = vsel %vm787_vm7, 0.0, %v4531_v4  ;;  %v1485_v61 = vsel %vm746_vm6, %v1484_v58, %v1481_v34 }
 0x201   :  { %898 = vst.msk [vmem:[#allocation2 + $0x53] sm:$0x1] %vm773_vm1, %v894_v55  ;;  %v1554_v14 = vrot.slane %v1546_v22, %v4080_v25  ;;  %v827_v52 = vpop.permute.xlu1 %826  ;;  %v1234_v15 = vpop.permute.xlu0 %1233  ;;  %v1493_v56 = vrot.slane %v1485_v61, %v4080_v25  ;;  %v1138_v34 = vsel %vm948_vm4, %v4145_v11, 0.0 }
 0x202   :  { %v1561_v9 = vrot.slane %v1547_v12, %v4080_v25  ;;  %v1350_v0 = vrot.slane %v1343_v38, %v4080_v25  ;;  %v830_v59 = vsel %vm746_vm6, %v829_v39, %v827_v52  ;;  %v1242_v62 = vsel %vm787_vm7, %v1241_v53, %v1234_v15  ;;  %v4657_v53 = vld [vmem:[#allocation2 + $0x11] sm:$0xff] }
 0x203   :  { %1566 = vst.msk [vmem:[#allocation2 + $0x82] sm:$0x1] %vm773_vm1, %v1554_v14  ;;  %v838_v4 = vrot.slane %v830_v59, %v4080_v25  ;;  %v1243_v29 = vsel %vm746_vm6, %v1242_v62, %v4555_v48  ;;  %v1494_v6 = vcombine.high %v1493_v56, %v1493_v56  ;;  %v1501_v7 = vrot.slane %v1493_v56, %v4080_v25 }
 0x204   :  { %v1562_v27 = vcombine.high %v1561_v9, %v1561_v9  ;;  %v1351_v30 = vcombine.high %v1350_v0, %v1350_v0  ;;  %v1358_v46 = vrot.slane %v1350_v0, %v4080_v25  ;;  %v1251_v37 = vrot.slane %v1243_v29, %v4080_v25  ;;  %v3763_v29 = vld [vmem:[%s5025_s2 + $0x8] sm:$0xff]  }
 0x205   :  { %v839_v47 = vcombine.high %v838_v4, %v838_v4  ;;  %v846_v50 = vrot.slane %v838_v4, %v4080_v25  ;;  %v1134_v10 = vpop.permute.xlu1 %1133  ;;  %v1380_v48 = vsel %vm948_vm4, %v4137_v2, 0.0  ;;  %v1376_v51 = vpop.permute.xlu0 %1375  ;;  %v1508_v26 = vrot.slane %v1494_v6, %v4080_v25 }
 0x206   :  { %1565 = vst.msk [vmem:[#allocation2 + $0x32] sm:$0x1] %vm773_vm1, %v1562_v27  ;;  %v1365_v11 = vrot.slane %v1351_v30, %v4080_v25  ;;  %v1366_v54 = vcombine.high %v1358_v46, %v1358_v46  ;;  %v1509_v21 = vcombine.high %v1501_v7, %v1501_v7  ;;  %v1252_v13 = vcombine.high %v1251_v37, %v1251_v37 }
 0x207   :  { %v853_v60 = vrot.slane %v839_v47, %v4080_v25  ;;  %856 = vst.msk [vmem:[#allocation2 + $0x2] sm:$0x1] %vm773_vm1, %v846_v50  ;;  %v1259_v16 = vrot.slane %v1251_v37, %v4080_v25  ;;  %v1140_v49 = vsel %vm787_vm7, %v1138_v34, %v1134_v10  ;;  %1512 = vst.msk [vmem:[#allocation2 + $0x31] sm:$0x1] %vm773_vm1, %v1508_v26 }
 0x208   :  { %1369 = vst.msk [vmem:[#allocation2 + $0x23] sm:$0x1] %vm773_vm1, %v1365_v11  ;;  %1370 = vst.msk [vmem:[#allocation2 + $0x73] sm:$0x1] %vm773_vm1, %v1366_v54  ;;  %v1142_v2 = vsel %vm746_vm6, %v1140_v49, 0.0  ;;  %v1382_v17 = vsel %vm787_vm7, %v1380_v48, %v1376_v51  ;;  %v1266_v43 = vrot.slane %v1252_v13, %v4080_v25 }
 0x209   :  { %1513 = vst.msk [vmem:[#allocation2 + $0x81] sm:$0x1] %vm773_vm1, %v1509_v21  ;;  %857 = vst.msk [vmem:[#allocation2 + $0x52] sm:$0x1] %vm773_vm1, %v853_v60  ;;  %v1267_v20 = vcombine.high %v1259_v16, %v1259_v16  ;;  %v1168_v33 = vrot.slane %v1142_v2, %v4080_v25  ;;  %v1384_v23 = vsel %vm746_vm6, %v1382_v17, 0.0  ;;  %v1618_v24 = vpop.permute.xlu1 %1617  ;;  %v939_v32 = vpop.permute.xlu0 %938  ;;  %v4700_v60 = vld [vmem:[%s5025_s2 + $0x20] sm:$0xff]  }
 0x20a   :  { %v1410_v31 = vrot.slane %v1384_v23, %v4080_v25  ;;  %v1624_v35 = vsel %vm787_vm7, %v1622_v19, %v1618_v24  ;;  %v949_v36 = vsel %vm948_vm4, 0.0, %v939_v32  ;;  %1270 = vst.msk [vmem:[#allocation2 + $0x21] sm:$0x1] %vm773_vm1, %v1266_v43 }
 0x20b   :  { %1271 = vst.msk [vmem:[#allocation2 + $0x71] sm:$0x1] %vm773_vm1, %v1267_v20  ;;  %v1175_v8 = vrot.slane %v1168_v33, %v4080_v25  ;;  %v1626_v41 = vsel %vm746_vm6, %v1624_v35, 0.0  ;;  %v950_v57 = vsel %vm787_vm7, %v949_v36, 0.0 }
 0x20c   :  { %v1417_v42 = vrot.slane %v1410_v31, %v4080_v25  ;;  %v1652_v63 = vrot.slane %v1626_v41, %v4080_v25 }
 0x20d   :  { %1179 = vst.msk [vmem:[#allocation2 + $0x64] sm:$0x1] %vm773_vm1, %v1175_v8  ;;  %v1185_v44 = vpop.permute.xlu1 %1184  ;;  %v946_v55 = vpop.permute.xlu0 %945 }
 0x20e   :  { %1421 = vst.msk [vmem:[#allocation2 + $0x74] sm:$0x1] %vm773_vm1, %v1417_v42  ;;  %v1659_v22 = vrot.slane %v1652_v63, %v4080_v25  ;;  %v951_v12 = vsel %vm746_vm6, %v950_v57, %v946_v55  ;;  %v1884_v45 = vld [vmem:[#allocation2 + $0x1] sm:$0xff]  ;;  %v1194_v39 = vsel %vm948_vm4, 0.0, %v1185_v44  ;;  %v4669_v59 = vld [vmem:[#allocation2 + $0x31] sm:$0xff] }
 0x20f   :  { %v959_v38 = vrot.slane %v951_v12, %v4080_v25  ;;  %v1892_v58 = vpack.c.bf16 %v4657_v53, %v1884_v45  ;;  %v1195_v34 = vsel %vm787_vm7, %v1194_v39, 0.0 }
 0x210   :  { %1663 = vst.msk [vmem:[#allocation2 + $0x84] sm:$0x1] %vm773_vm1, %v1659_v22  ;;  %v1888_v30 = vld [vmem:[#allocation2 + $0x51] sm:$0xff] }
 0x211   :  { %v960_v14 = vcombine.high %v959_v38, %v959_v38  ;;  %v967_v9 = vrot.slane %v959_v38, %v4080_v25  ;;  %3569 = vmatprep.mubr.msk.bf16.mxu1 %vm1913_vm2, %v1892_v58  ;;  %v744_v61 = vpop.permute.xlu1 %743  ;;  %v1427_v52 = vpop.permute.xlu0 %1426  ;;  %v4667_v56 = vld [vmem:[#allocation2 + $0x21] sm:$0xff] }
 0x212   :  { %v747_v15 = vsel %vm746_vm6, 0.0, %v744_v61  ;;  %v1436_v0 = vsel %vm948_vm4, 0.0, %v1427_v52  ;;  %v1893_v4 = vpack.c.bf16 %v4669_v59, %v4667_v56 }
 0x213   :  { %v974_v62 = vrot.slane %v960_v14, %v4080_v25  ;;  %978 = vst.msk [vmem:[#allocation2 + $0x10] sm:$0x1] %vm773_vm1, %v967_v9  ;;  %v755_v27 = vrot.slane %v747_v15, %v4080_v25  ;;  %v1437_v47 = vsel %vm787_vm7, %v1436_v0, 0.0 }
 0x214   :  { %v4680_v46 = vld [vmem:[#allocation2 + $0x61] sm:$0xff]  ;;  %3570 = vmatmul.mubr.msk.bf16.vlgmr.msra.gmra.mrb[0].mxu1 %vm1913_vm2, %v1893_v4 }
 0x215   :  { %979 = vst.msk [vmem:[#allocation2 + $0x60] sm:$0x1] %vm773_vm1, %v974_v62  ;;  %v756_v6 = vcombine.high %v755_v27, %v755_v27  ;;  %v763_v7 = vrot.slane %v755_v27, %v4080_v25  ;;  %v1192_v50 = vpop.permute.xlu1 %1191  ;;  %v1434_v37 = vpop.permute.xlu0 %1433  ;;  %v1894_v10 = vpack.c.bf16 %v4680_v46, %v1888_v30  ;;  %3578 = vmatpush3.bf16.msra.mxu1 %v4458_v1  ;;  %v4705_v19 = vld [vmem:[#allocation2 + $0x71] sm:$0xff] }
 0x216   :  { %v1196_v48 = vsel %vm746_vm6, %v1195_v34, %v1192_v50  ;;  %v1438_v51 = vsel %vm746_vm6, %v1437_v47, %v1434_v37  ;;  %3579 = vmatprep.subr.bf16.mxu1 %v3763_v29 }
 0x217   :  { %v770_v11 = vrot.slane %v756_v6, %v4080_v25  ;;  %774 = vst.msk [vmem:[#allocation2] sm:$0x1] %vm773_vm1, %v763_v7  ;;  %v1204_v54 = vrot.slane %v1196_v48, %v4080_v25  ;;  %v1446_v26 = vrot.slane %v1438_v51, %v4080_v25  ;;  %3573 = vmatprep.mubr.msk.bf16.mxu1 %vm1913_vm2, %v1894_v10  ;;  %v4695_v21 = vld [vmem:[#allocation2 + $0x81] sm:$0xff] }
 0x218   :  { %v1895_v33 = vpack.c.bf16 %v4695_v21, %v4705_v19  ;;  %v3765_v10 = vld [vmem:[%s5025_s2 + $0x28] sm:$0xff]  }
 0x219   :  { %775 = vst.msk [vmem:[#allocation2 + $0x50] sm:$0x1] %vm773_vm1, %v770_v11  ;;  %v1205_v1 = vcombine.high %v1204_v54, %v1204_v54  ;;  %v1212_v13 = vrot.slane %v1204_v54, %v4080_v25  ;;  %v1447_v16 = vcombine.high %v1446_v26, %v1446_v26  ;;  %v1454_v49 = vrot.slane %v1446_v26, %v4080_v25  ;;  %v1744_v2 = vpop.permute.xlu1 %1743  ;;  %v1789_v17 = vpop.permute.xlu0 %1788 }
 0x21a   :  { %v1746_v43 = vsel %vm948_vm4, %v4384_v5, %v1744_v2  ;;  %v1791_v20 = vsel %vm948_vm4, %v4389_v28, %v1789_v17  ;;  %3580 = vmatpush3.bf16.msra.mxu1 %v3763_v29  ;;  %v1869_v38 = vld [vmem:[#allocation2 + $0x10] sm:$0xff] }
 0x21b   :  { %v1219_v23 = vrot.slane %v1205_v1, %v4080_v25  ;;  %1223 = vst.msk [vmem:[#allocation2 + $0x20] sm:$0x1] %vm773_vm1, %v1212_v13  ;;  %v1461_v24 = vrot.slane %v1447_v16, %v4080_v25  ;;  %1465 = vst.msk [vmem:[#allocation2 + $0x30] sm:$0x1] %vm773_vm1, %v1454_v49  ;;  %v1747_v32 = vsel %vm787_vm7, %v1746_v43, 0.0  ;;  %v1792_v31 = vsel %vm787_vm7, %v1791_v20, 0.0  ;;  %3589 = vmatprep.subr.bf16.mxu1 %v4700_v60 }
 0x21c   :  { %v1748_v5 = vsel %vm746_vm6, %v1747_v32, 0.0  ;;  %v1793_v28 = vsel %vm746_vm6, %v1792_v31, 0.0  ;;  %3574 = vmatmul.mubr.msk.bf16.gmra.mrb[4].mxu1 %vm1913_vm2, %v1895_v33  ;;  %v1873_v37 = vld [vmem:[#allocation2 + $0x60] sm:$0xff]  ;;  %v3766_v13 = vld [vmem:[%s5025_s2 + $0x30] sm:$0xff]   ;;  %v3767_v20 = vld [vmem:[%s5025_s2 + $0x38] sm:$0xff]   ;;  %v2202_v32 = vpack.c.bf16 %v4667_v56, %v4657_v53  ;;  %s3795_s2 = smov 32  }
 0x21d   :  { %1224 = vst.msk [vmem:[#allocation2 + $0x70] sm:$0x1] %vm773_vm1, %v1219_v23  ;;  %1466 = vst.msk [vmem:[#allocation2 + $0x80] sm:$0x1] %vm773_vm1, %v1461_v24  ;;  %v1750_v35 = vcombine.high %v1748_v5, %v1748_v5  ;;  %v1757_v36 = vrot.slane %v1748_v5, %v4080_v25  ;;  %v1795_v8 = vcombine.high %v1793_v28, %v1793_v28  ;;  %v1707_v41 = vpop.permute.xlu1 %1706  ;;  %v1669_v42 = vpop.permute.xlu0 %1668 }
 0x21e   :  { %v1709_v63 = vsel %vm948_vm4, %v4394_v3, %v1707_v41  ;;  %v1671_v57 = vsel %vm948_vm4, 0.0, %v1669_v42  ;;  %v1868_v44 = vld [vmem:[#allocation2] sm:$0xff]  ;;  %v2204_v28 = vpack.c.bf16 %v4705_v19, %v4680_v46  ;;  %vm2310_vm4 = vcmp.lt.s32.totalorder %v4077_v18, 4 }
 0x21f   :  { %v1764_v55 = vrot.slane %v1750_v35, %v4080_v25  ;;  %v1765_v22 = vcombine.high %v1757_v36, %v1757_v36  ;;  %v1802_v12 = vrot.slane %v1795_v8, %v4080_v25  ;;  %v1710_v45 = vsel %vm787_vm7, %v1709_v63, 0.0 }
 0x220   :  { %v1711_v58 = vsel %vm746_vm6, %v1710_v45, 0.0  ;;  %v1672_v39 = vsel %vm787_vm7, %v1671_v57, 0.0  ;;  %v1876_v14 = vpack.c.bf16 %v1869_v38, %v1868_v44  ;;  %v1872_v4 = vld [vmem:[#allocation2 + $0x50] sm:$0xff] }
 0x221   :  { %v1772_v9 = vrot.slane %v1764_v55, %v4080_v25  ;;  %v1779_v3 = vrot.slane %v1765_v22, %v4080_v25  ;;  %v1803_v61 = vcombine.high %v1802_v12, %v1802_v12  ;;  %v1810_v52 = vrot.slane %v1802_v12, %v4080_v25 }
 0x222   :  { %v1719_v15 = vrot.slane %v1711_v58, %v4080_v25  ;;  %v1673_v0 = vsel %vm746_vm6, %v1672_v39, 0.0  ;;  %3581 = vmatprep.mubr.msk.bf16.mxu1 %vm1913_vm2, %v1876_v14  ;;  %v1870_v62 = vld [vmem:[#allocation2 + $0x20] sm:$0xff]  ;;  %v1871_v27 = vld [vmem:[#allocation2 + $0x30] sm:$0xff]  ;;  %v1878_v11 = vpack.c.bf16 %v1873_v37, %v1872_v4 }
 0x223   :  { %v1780_v29 = vcombine.high %v1779_v3, %v1779_v3  ;;  %1784 = vst.msk [vmem:[#allocation2 + $0x92] sm:$0x1] %vm773_vm1, %v1772_v9  ;;  %v1817_v34 = vrot.slane %v1803_v61, %v4080_v25  ;;  %v1818_v30 = vcombine.high %v1810_v52, %v1810_v52  ;;  %v1681_v6 = vrot.slane %v1673_v0, %v4080_v25 }
 0x224   :  { %v1720_v7 = vcombine.high %v1719_v15, %v1719_v15  ;;  %v1727_v47 = vrot.slane %v1719_v15, %v4080_v25  ;;  %v1877_v50 = vpack.c.bf16 %v1871_v27, %v1870_v62  ;;  %v1874_v16 = vld [vmem:[#allocation2 + $0x70] sm:$0xff]  ;;  %v1875_v49 = vld [vmem:[#allocation2 + $0x80] sm:$0xff]  ;;  %v2088_v17 = vpack.c.bf16 %v1870_v62, %v1869_v38 }
 0x225   :  { %1783 = vst.msk [vmem:[#allocation2 + $0x42] sm:$0x1] %vm773_vm1, %v1780_v29  ;;  %1821 = vst.msk [vmem:[#allocation2 + $0x43] sm:$0x1] %vm773_vm1, %v1817_v34  ;;  %v1682_v48 = vcombine.high %v1681_v6, %v1681_v6  ;;  %v1689_v51 = vrot.slane %v1681_v6, %v4080_v25  ;;  %v1879_v2 = vpack.c.bf16 %v1875_v49, %v1874_v16 }
 0x226   :  { %1822 = vst.msk [vmem:[#allocation2 + $0x93] sm:$0x1] %vm773_vm1, %v1818_v30  ;;  %v1734_v54 = vrot.slane %v1720_v7, %v4080_v25  ;;  %v1735_v26 = vcombine.high %v1727_v47, %v1727_v47  ;;  %3582 = vmatmul.mubr.msk.bf16.vlgmr.msra.gmra.mrb[0].mxu1 %vm1913_vm2, %v1877_v50  ;;  %v2090_v33 = vpack.c.bf16 %v1874_v16, %v1873_v37 }
 0x227   :  { %v1696_v1 = vrot.slane %v1682_v48, %v4080_v25  ;;  %1700 = vst.msk [vmem:[#allocation2 + $0x40] sm:$0x1] %vm773_vm1, %v1689_v51  ;;  %3585 = vmatprep.mubr.msk.bf16.mxu1 %vm1913_vm2, %v1878_v11  ;;  %3590 = vmatpush3.bf16.msra.mxu1 %v4700_v60 }
 0x228   :  { %1738 = vst.msk [vmem:[#allocation2 + $0x41] sm:$0x1] %vm773_vm1, %v1734_v54  ;;  %1739 = vst.msk [vmem:[#allocation2 + $0x91] sm:$0x1] %vm773_vm1, %v1735_v26  ;;  %3591 = vmatprep.subr.bf16.mxu1 %v3765_v10 }
 0x229   :  { %1701 = vst.msk [vmem:[#allocation2 + $0x90] sm:$0x1] %vm773_vm1, %v1696_v1 }
 0x22b   :  { %3592 = vmatpush3.bf16.msra.mxu1 %v3765_v10 }
 0x22c   :  { %3601 = vmatprep.subr.bf16.mxu1 %v3766_v13 }
 0x22e   :  { %3586 = vmatmul.mubr.msk.bf16.gmra.mrb[4].mxu1 %vm1913_vm2, %v1879_v2 }
 0x22f   :  { %3593 = vmatprep.mubr.msk.bf16.mxu1 %vm1913_vm2, %v2088_v17  ;;  %v2083_v60 = vld [vmem:[#allocation2 + $0x40] sm:$0xff]  ;;  %v2201_v35 = vld [vmem:[#allocation2 + $0x91] sm:$0xff] }
 0x230   :  { %v2089_v43 = vpack.c.bf16 %v2083_v60, %v1871_v27  ;;  %v2087_v23 = vld [vmem:[#allocation2 + $0x90] sm:$0xff]  ;;  %v2197_v31 = vld [vmem:[#allocation2 + $0x41] sm:$0xff]  ;;  %v2205_v36 = vpack.c.bf16 %v2201_v35, %v4695_v21 }
 0x231   :  { %v2091_v24 = vpack.c.bf16 %v2087_v23, %v1875_v49  ;;  %v2203_v5 = vpack.c.bf16 %v2197_v31, %v4669_v59 }
 0x236   :  { %3594 = vmatmul.mubr.msk.bf16.vlgmr.msra.gmra.mrb[0].mxu1 %vm1913_vm2, %v2089_v43 }
 0x237   :  { %3597 = vmatprep.mubr.msk.bf16.mxu1 %vm1913_vm2, %v2090_v33  ;;  %3602 = vmatpush3.bf16.msra.mxu1 %v3766_v13 }
 0x238   :  { %3603 = vmatprep.subr.bf16.mxu1 %v3767_v20 }
 0x23b   :  { %3604 = vmatpush3.bf16.msra.mxu1 %v3767_v20 }
 0x23e   :  { %3598 = vmatmul.mubr.msk.bf16.gmra.mrb[4].mxu1 %vm1913_vm2, %v2091_v24 }
 0x23f   :  { %3605 = vmatprep.mubr.msk.bf16.mxu1 %vm1913_vm2, %v2202_v32 }
 0x246   :  { %3606 = vmatmul.mubr.msk.bf16.vlgmr.msra.gmra.mrb[0].mxu1 %vm1913_vm2, %v2203_v5 }
 0x247   :  { %3609 = vmatprep.mubr.msk.bf16.mxu1 %vm1913_vm2, %v2204_v28 }
 0x24e   :  { %3610 = vmatmul.mubr.msk.bf16.gmra.mrb[4].mxu1 %vm1913_vm2, %v2205_v36 }
 0x319   :  { %v3607_v53 = vpop.f32.mrb[0].mxu1 }
 0x31a   :  { %v2269_v56 = vpop.f32.mrb[1].mxu1  ;;  %v2315_v46 = vsel %vm2310_vm4, %v3607_v53, 0.0 }
 0x31b   :  { %v2313_v8 = vsel %vm2310_vm4, %v2269_v56, 0.0  ;;  %v3608_v59 = vpop.f32.mrb[2].mxu1  ;;  %v2324_v44 = vsel %vm787_vm7, %v2315_v46, 0.0 }
 0x31c   :  { %v2272_v41 = vpop.f32.mrb[3].mxu1  ;;  %v2321_v42 = vsel %vm787_vm7, %v2313_v8, 0.0  ;;  %v2316_v63 = vsel %vm2310_vm4, %v3608_v59, 0.0 }
 0x31d   :  { %v2314_v19 = vsel %vm2310_vm4, %v2272_v41, 0.0  ;;  %v2326_v12 = vsel %vm787_vm7, %v2316_v63, 0.0 }
 0x31e   :  { %v2322_v21 = vsel %vm787_vm7, %v2314_v19, 0.0 }
 0x31f   :  { %v2323_v57 = vadd.f32 %v2322_v21, %v2321_v42 }
 0x321   :  { %v2325_v55 = vadd.f32 %v2324_v44, %v2323_v57  ;;  %v3611_v22 = vpop.f32.mrb[4].mxu1 }
 0x322   :  { %v2285_v45 = vpop.f32.mrb[5].mxu1  ;;  %v2319_v3 = vsel %vm2310_vm4, %v3611_v22, 0.0 }
 0x323   :  { %v2317_v38 = vsel %vm2310_vm4, %v2285_v45, 0.0  ;;  %v2327_v58 = vadd.f32 %v2326_v12, %v2325_v55  ;;  %v3612_v39 = vpop.f32.mrb[6].mxu1  ;;  %v2332_v27 = vsel %vm787_vm7, %v2319_v3, 0.0 }
 0x324   :  { %v2328_v14 = vsel %vm787_vm7, %v2317_v38, 0.0  ;;  %v2288_v9 = vpop.f32.mrb[7].mxu1  ;;  %v2320_v0 = vsel %vm2310_vm4, %v3612_v39, 0.0 }
 0x325   :  { %v2329_v61 = vadd.f32 %v2328_v14, %v2327_v58  ;;  %v2318_v52 = vsel %vm2310_vm4, %v2288_v9, 0.0  ;;  %v2334_v29 = vsel %vm787_vm7, %v2320_v0, 0.0 }
 0x326   :  { %v2330_v15 = vsel %vm787_vm7, %v2318_v52, 0.0 }
 0x327   :  { %v2331_v62 = vadd.f32 %v2330_v15, %v2329_v61 }
 0x329   :  { %v2333_v4 = vadd.f32 %v2332_v27, %v2331_v62 }
 0x32b   :  { %v2335_v34 = vadd.f32 %v2334_v29, %v2333_v4 }
 0x32d   :  { %v2336_v30 = vrot.slane %v2335_v34, 4 }
 0x32f   :  { %v2337_v6 = vadd.f32 %v2336_v30, %v2335_v34 }
 0x331   :  { %v2338_v7 = vrot.slane %v2337_v6, 2 }
 0x333   :  { %v2339_v47 = vadd.f32 %v2338_v7, %v2337_v6 }
 0x335   :  { %v2340_v50 = vrot.slane %v2339_v47, 1 }
 0x337   :  { %v2341_v37 = vadd.f32 %v2340_v50, %v2339_v47 }
 0x339   :  { %v2343_v10 = vmul.f32 0.03125, %v2341_v37 }
 0x33b   :  { %v2344_v48 = vsub.f32 %v2269_v56, %v2343_v10  ;;  %v2345_v51 = vsub.f32 %v2272_v41, %v2343_v10  ;;  %v2346_v11 = vsub.f32 %v3607_v53, %v2343_v10  ;;  %v2347_v54 = vsub.f32 %v3608_v59, %v2343_v10 }
 0x33c   :  { %v2348_v26 = vsub.f32 %v2285_v45, %v2343_v10  ;;  %v2349_v1 = vsub.f32 %v2288_v9, %v2343_v10  ;;  %v2350_v13 = vsub.f32 %v3611_v22, %v2343_v10  ;;  %v2351_v16 = vsub.f32 %v3612_v39, %v2343_v10 }
 0x33d   :  { %v2352_v49 = vmul.f32 %v2344_v48, %v2344_v48  ;;  %v2353_v2 = vmul.f32 %v2345_v51, %v2345_v51  ;;  %v2354_v17 = vmul.f32 %v2346_v11, %v2346_v11  ;;  %v2355_v60 = vmul.f32 %v2347_v54, %v2347_v54 }
 0x33e   :  { %v2356_v33 = vmul.f32 %v2348_v26, %v2348_v26  ;;  %v2357_v31 = vmul.f32 %v2349_v1, %v2349_v1  ;;  %v2358_v36 = vmul.f32 %v2350_v13, %v2350_v13  ;;  %v2359_v59 = vmul.f32 %v2351_v16, %v2351_v16 }
 0x33f   :  { %v2360_v43 = vsel %vm2310_vm4, %v2352_v49, 0.0  ;;  %v2361_v20 = vsel %vm2310_vm4, %v2353_v2, 0.0  ;;  %v2362_v23 = vsel %vm2310_vm4, %v2354_v17, 0.0  ;;  %v2363_v5 = vsel %vm2310_vm4, %v2355_v60, 0.0 }
 0x340   :  { %v2368_v24 = vsel %vm787_vm7, %v2360_v43, 0.0  ;;  %v2369_v32 = vsel %vm787_vm7, %v2361_v20, 0.0  ;;  %v2371_v35 = vsel %vm787_vm7, %v2362_v23, 0.0  ;;  %v2364_v53 = vsel %vm2310_vm4, %v2356_v33, 0.0 }
 0x341   :  { %v2370_v28 = vadd.f32 %v2369_v32, %v2368_v24  ;;  %v2373_v8 = vsel %vm787_vm7, %v2363_v5, 0.0  ;;  %v2365_v41 = vsel %vm2310_vm4, %v2357_v31, 0.0  ;;  %v2375_v19 = vsel %vm787_vm7, %v2364_v53, 0.0 }
 0x342   :  { %v2366_v42 = vsel %vm2310_vm4, %v2358_v36, 0.0  ;;  %v2377_v63 = vsel %vm787_vm7, %v2365_v41, 0.0  ;;  %v2367_v57 = vsel %vm2310_vm4, %v2359_v59, 0.0  ;;  %vm3193_vm4 = vcmp.lt.s32.totalorder %v4077_v18, 2  ;;  %v3407_v18 = vld [vmem:[%s5027_s4] ss:$0 sm:$0xff] }
 0x343   :  { %v2372_v56 = vadd.f32 %v2371_v35, %v2370_v28  ;;  %v2379_v55 = vsel %vm787_vm7, %v2366_v42, 0.0  ;;  %v2381_v12 = vsel %vm787_vm7, %v2367_v57, 0.0 }
 0x345   :  { %v2374_v46 = vadd.f32 %v2373_v8, %v2372_v56 }
 0x347   :  { %v2376_v21 = vadd.f32 %v2375_v19, %v2374_v46 }
 0x349   :  { %v2378_v44 = vadd.f32 %v2377_v63, %v2376_v21 }
 0x34b   :  { %v2380_v22 = vadd.f32 %v2379_v55, %v2378_v44 }
 0x34d   :  { %v2382_v45 = vadd.f32 %v2381_v12, %v2380_v22 }
 0x34f   :  { %v2383_v38 = vrot.slane %v2382_v45, 4 }
 0x351   :  { %v2384_v58 = vadd.f32 %v2383_v38, %v2382_v45  ;;  %v3768_v45 = vld [vmem:[%s5026_s3 + $0x20] sm:$0xff]  }
 0x352   :  { %3613 = vmatprep.subr.bf16.mxu1 %v3768_v45 }
 0x353   :  { %v2385_v39 = vrot.slane %v2384_v58, 2  ;;  %3614 = vmatpush3.bf16.msra.mxu1 %v3768_v45 }
 0x355   :  { %v2386_v14 = vadd.f32 %v2385_v39, %v2384_v58 }
 0x357   :  { %v2387_v9 = vrot.slane %v2386_v14, 1 }
 0x359   :  { %v2388_v3 = vadd.f32 %v2387_v9, %v2386_v14  ;;  %v3769_v9 = vld [vmem:[%s5026_s3 + $0x28] sm:$0xff]  }
 0x35a   :  { %3615 = vmatprep.subr.bf16.mxu1 %v3769_v9 }
 0x35b   :  { %v2389_v61 = vmul.f32 0.03125, %v2388_v3  ;;  %3616 = vmatpush3.bf16.msra.mxu1 %v3769_v9 }
 0x35d   :  { %v2390_v52 = vadd.f32 1e-05, %v2389_v61 }
 0x35f   :  { %3784 = vrsqrt.f32 %v2390_v52 }
 0x369   :  { %v3785_v15 = vpop.eup %3784 }
 0x36a   :  { %v2397_v0 = vmul.f32 %v3785_v15, %v2349_v1  ;;  %v2394_v62 = vmul.f32 %v3785_v15, %v2346_v11  ;;  %v2398_v27 = vmul.f32 %v3785_v15, %v2350_v13  ;;  %v2393_v4 = vmul.f32 %v3785_v15, %v2345_v51 }
 0x36b   :  { %v2392_v29 = vmul.f32 %v3785_v15, %v2344_v48  ;;  %v2396_v34 = vmul.f32 %v3785_v15, %v2348_v26  ;;  %v2395_v30 = vmul.f32 %v3785_v15, %v2347_v54  ;;  %v2399_v6 = vmul.f32 %v3785_v15, %v2351_v16 }
 0x36c   :  { %v2413_v7 = vmul.f32 0.2, %v2397_v0  ;;  %vm2402_vm6 = vcmp.gt.f32.partialorder %v2394_v62, 0.0  ;;  %vm2406_vm1 = vcmp.gt.f32.partialorder %v2398_v27, 0.0  ;;  %v2410_v47 = vmul.f32 0.2, %v2394_v62 }
 0x36d   :  { %v2414_v50 = vmul.f32 0.2, %v2398_v27  ;;  %vm2401_vm3 = vcmp.gt.f32.partialorder %v2393_v4, 0.0  ;;  %vm2405_vm5 = vcmp.gt.f32.partialorder %v2397_v0, 0.0  ;;  %v2409_v37 = vmul.f32 0.2, %v2393_v4 }
 0x36e   :  { %v2418_v10 = vsel %vm2402_vm6, %v2394_v62, %v2410_v47  ;;  %v2421_v49 = vsel %vm2405_vm5, %v2397_v0, %v2413_v7  ;;  %vm2400_vm8 = vcmp.gt.f32.partialorder %v2392_v29, 0.0  ;;  %vm2404_vm9 = vcmp.gt.f32.partialorder %v2396_v34, 0.0 }
 0x36f   :  { %v2422_v1 = vsel %vm2406_vm1, %v2398_v27, %v2414_v50  ;;  %v2417_v11 = vsel %vm2401_vm3, %v2393_v4, %v2409_v37  ;;  %v2545_v13 = vrot.slane %v2421_v49, 7  ;;  %v2408_v51 = vmul.f32 0.2, %v2392_v29  ;;  %v3770_v27 = vld [vmem:[%s5026_s3 + $0x30] sm:$0xff]  }
 0x370   :  { %v2552_v48 = vrot.slane %v2422_v1, 7  ;;  %v2590_v26 = vrot.slane %v2417_v11, 1  ;;  %v2412_v54 = vmul.f32 0.2, %v2396_v34  ;;  %v2599_v16 = vrot.slane %v2418_v10, 1  ;;  %3617 = vmatprep.subr.bf16.mxu1 %v3770_v27 }
 0x371   :  { %v2416_v2 = vsel %vm2400_vm8, %v2392_v29, %v2408_v51  ;;  %v2546_v17 = vsel %vm741_vm15, %v2545_v13, %v2417_v11  ;;  %vm2403_vm10 = vcmp.gt.f32.partialorder %v2395_v30, 0.0  ;;  %vm2407_vm13 = vcmp.gt.f32.partialorder %v2399_v6, 0.0  ;;  %v3771_v29 = vld [vmem:[%s5026_s3 + $0x38] sm:$0xff]   ;;  %3618 = vmatpush3.bf16.msra.mxu1 %v3770_v27 }
 0x372   :  { %v2637_v60 = vsel %vm1028_vm12, %v2552_v48, %v2418_v10  ;;  %v2591_v43 = vsel %vm980_vm14, %v2421_v49, %v2590_v26  ;;  %v2595_v20 = vsel %vm980_vm14, %v2552_v48, %v2418_v10  ;;  %v2420_v33 = vsel %vm2404_vm9, %v2396_v34, %v2412_v54  ;;  %v4888_v34 = vld [vmem:[%s5026_s3] sm:$0xff]   ;;  %3619 = vmatprep.subr.bf16.mxu1 %v3771_v29 }
 0x373   :  { %2638 = vrot.lane.b32.xlu1 %v2637_v60, %s3795_s2  ;;  %2592 = vrot.lane.b32.xlu0 %v2591_v43, %s3791_s0  ;;  %v2468_v23 = vrot.slane %v2416_v2, 1  ;;  %v2508_v24 = vrot.slane %v2416_v2, 3  ;;  %v2509_v32 = vrot.slane %v2420_v33, 2  ;;  %v2600_v31 = vsel %vm980_vm14, %v2422_v1, %v2599_v16 }
 0x374   :  { %v2473_v5 = vrot.slane %v2416_v2, 2  ;;  %v2474_v28 = vrot.slane %v2420_v33, 1  ;;  %v2553_v35 = vsel %vm741_vm15, %v2552_v48, %v2418_v10  ;;  %v2433_v36 = vrot.slane %v2420_v33, 7 }
 0x375   :  { %v2469_v53 = vsel %vm741_vm15, %v2420_v33, %v2468_v23  ;;  %v2510_v56 = vsel %vm741_vm15, %v2509_v32, %v2508_v24  ;;  %v2411_v8 = vmul.f32 0.2, %v2395_v30  ;;  %v2415_v59 = vmul.f32 0.2, %v2399_v6  ;;  %3620 = vmatpush3.bf16.msra.mxu1 %v3771_v29 }
 0x376   :  { %v2475_v41 = vsel %vm741_vm15, %v2474_v28, %v2473_v5  ;;  %v2434_v46 = vsel %vm741_vm15, %v2433_v36, %v2416_v2  ;;  %v2635_v19 = vsel %vm1028_vm12, %v2545_v13, %v2417_v11  ;;  %v4845_v42 = vsel %vm980_vm14, %v2545_v13, %v2417_v11  ;;  %3625 = vmatprep.subr.bf16.mxu1 %v4888_v34 }
 0x377   :  { %2596 = vrot.lane.b32.xlu1 %v2595_v20, %s3795_s2  ;;  %2470 = vrot.lane.b32.xlu0 %v2469_v53, %s3795_s2  ;;  %v2419_v21 = vsel %vm2403_vm10, %v2395_v30, %v2411_v8  ;;  %v2423_v63 = vsel %vm2407_vm13, %v2399_v6, %v2415_v59 }
 0x378   :  { %v2682_v57 = vrot.slane %v2423_v63, 7  ;;  %v2720_v44 = vrot.slane %v2419_v21, 1 }
 0x37a   :  { %v2683_v55 = vsel %vm741_vm15, %v2682_v57, %v2419_v21  ;;  %v2756_v22 = vsel %vm1028_vm12, %v2682_v57, %v2419_v21  ;;  %v2721_v12 = vsel %vm980_vm14, %v2423_v63, %v2720_v44  ;;  %v4858_v38 = vsel %vm980_vm14, %v2682_v57, %v2419_v21 }
 0x37b   :  { %2511 = vrot.lane.b32.xlu1 %v2510_v56, %s3795_s2  ;;  %2601 = vrot.lane.b32.xlu0 %v2600_v31, %s3796_s16  ;;  %v2758_v58 = vsel %vm787_vm7, %v2756_v22, 0.0  ;;  %vm2465_vm12 = vcmask 516096   ;;  %vm2424_vm14 = vcmask 521216  }
 0x37c   :  { %v2759_v39 = vsel %vm1913_vm2, %v2758_v58, 0.0  ;;  %2425 = vst.msk [vmem:[#allocation3 + $0x3] sm:$0x3f] %vm2424_vm14, %v3794_v40  ;;  %2426 = vst.msk [vmem:[#allocation3 + $0x13] sm:$0x3f] %vm2424_vm14, %v3794_v40 }
 0x37d   :  { %v2760_v14 = vsel %vm2438_vm0, %v2759_v39, 0.0  ;;  %2427 = vst.msk [vmem:[#allocation3 + $0x23] sm:$0x3f] %vm2424_vm14, %v3794_v40  ;;  %2428 = vst.msk [vmem:[#allocation3 + $0x33] sm:$0x3f] %vm2424_vm14, %v3794_v40 }
 0x37e   :  { %v2762_v3 = vcombine.high %v2760_v14, %v2760_v14  ;;  %v2769_v61 = vrot.slane %v2760_v14, %v4080_v25  ;;  %2429 = vst.msk [vmem:[#allocation3 + $0x43] sm:$0x3f] %vm2424_vm14, %v3794_v40  ;;  %2430 = vst.msk [vmem:[#allocation3 + $0x53] sm:$0x3f] %vm2424_vm14, %v3794_v40  ;;  %v2641_v40 = vsel %vm787_vm7, %v2635_v19, 0.0 }
 0x37f   :  { %2476 = vrot.lane.b32.xlu1 %v2475_v41, %s3796_s16  ;;  %2547 = vrot.lane.b32.xlu0 %v2546_v17, %s3791_s0 }
 0x380   :  { %v2776_v52 = vrot.slane %v2762_v3, %v4080_v25  ;;  %v2777_v15 = vcombine.high %v2769_v61, %v2769_v61 }
 0x382   :  { %v2784_v0 = vrot.slane %v2776_v52, %v4080_v25  ;;  %v2791_v62 = vrot.slane %v2777_v15, %v4080_v25 }
 0x383   :  { %2554 = vrot.lane.b32.xlu0 %v2553_v35, %s3796_s16  ;;  %2435 = vrot.lane.b32.xlu1 %v2434_v46, %s3796_s16 }
 0x384   :  { %v2792_v4 = vcombine.high %v2791_v62, %v2791_v62  ;;  %2796 = vst.msk [vmem:[#allocation3 + $0x52] sm:$0x1] %vm2465_vm12, %v2784_v0 }
 0x386   :  { %2795 = vst.msk [vmem:[#allocation3 + $0x22] sm:$0x1] %vm2465_vm12, %v2792_v4 }
 0x387   :  { %2684 = vrot.lane.b32.xlu0 %v2683_v55, %s3791_s0  ;;  %2722 = vrot.lane.b32.xlu1 %v2721_v12, %s3791_s0 }
 0x3e5   :  { %v2639_v30 = vpop.permute.xlu1 %2638  ;;  %v2593_v6 = vpop.permute.xlu0 %2592 }
 0x3e6   :  { %v2642_v7 = vsel %vm1913_vm2, %v2641_v40, %v2639_v30  ;;  %v2604_v48 = vsel %vm787_vm7, %v4845_v42, %v2593_v6 }
 0x3e7   :  { %v2643_v47 = vsel %vm2438_vm0, %v2642_v7, 0.0 }
 0x3e8   :  { %v2645_v50 = vcombine.high %v2643_v47, %v2643_v47  ;;  %v2652_v37 = vrot.slane %v2643_v47, %v4080_v25 }
 0x3e9   :  { %v2597_v10 = vpop.permute.xlu1 %2596  ;;  %v2471_v49 = vpop.permute.xlu0 %2470 }
 0x3ea   :  { %v2659_v1 = vrot.slane %v2645_v50, %v4080_v25  ;;  %v2660_v11 = vcombine.high %v2652_v37, %v2652_v37  ;;  %v2605_v26 = vsel %vm1913_vm2, %v2604_v48, %v2597_v10  ;;  %v2479_v23 = vsel %vm1913_vm2, 0.0, %v2471_v49 }
 0x3ec   :  { %v2667_v13 = vrot.slane %v2659_v1, %v4080_v25  ;;  %v2674_v51 = vrot.slane %v2660_v11, %v4080_v25 }
 0x3ed   :  { %v2512_v54 = vpop.permute.xlu1 %2511  ;;  %v2602_v16 = vpop.permute.xlu0 %2601 }
 0x3ee   :  { %v2675_v2 = vcombine.high %v2674_v51, %v2674_v51  ;;  %2679 = vst.msk [vmem:[#allocation3 + $0x42] sm:$0x1] %vm2465_vm12, %v2667_v13  ;;  %v2514_v17 = vsel %vm1913_vm2, 0.0, %v2512_v54  ;;  %v2606_v60 = vsel %vm2438_vm0, %v2605_v26, %v2602_v16  ;;  %v3773_v26 = vld [vmem:[%s5026_s3 + $0x8] sm:$0xff]  }
 0x3ef   :  { %v2515_v43 = vsel %vm2438_vm0, %v2514_v17, 0.0  ;;  %v2614_v20 = vrot.slane %v2606_v60, %v4080_v25  ;;  %v3775_v17 = vld [vmem:[%s5026_s3 + $0x18] sm:$0xff]   ;;  %v3776_v60 = vld [vmem:[%s5026_s3 + $0x40] sm:$0xff]  }
 0x3f0   :  { %2678 = vst.msk [vmem:[#allocation3 + $0x12] sm:$0x1] %vm2465_vm12, %v2675_v2  ;;  %v2523_v33 = vrot.slane %v2515_v43, %v4080_v25  ;;  %v3774_v2 = vld [vmem:[%s5026_s3 + $0x10] sm:$0xff]  }
 0x3f1   :  { %v2615_v24 = vcombine.high %v2614_v20, %v2614_v20  ;;  %v2622_v32 = vrot.slane %v2614_v20, %v4080_v25  ;;  %v2477_v31 = vpop.permute.xlu1 %2476  ;;  %v2548_v5 = vpop.permute.xlu0 %2547 }
 0x3f2   :  { %v2524_v28 = vcombine.high %v2523_v33, %v2523_v33  ;;  %v2531_v35 = vrot.slane %v2523_v33, %v4080_v25  ;;  %v2480_v36 = vsel %vm2438_vm0, %v2479_v23, %v2477_v31  ;;  %v2557_v53 = vsel %vm787_vm7, 0.0, %v2548_v5  ;;  %v3777_v23 = vld [vmem:[%s5026_s3 + $0x48] sm:$0xff]   ;;  %v3779_v31 = vld [vmem:[%s5026_s3 + $0x58] sm:$0xff]   ;;  %v3780_v5 = vld [vmem:[%s5026_s3 + $0x60] sm:$0xff]  }
 0x3f3   :  { %v2629_v56 = vrot.slane %v2615_v24, %v4080_v25  ;;  %v2630_v8 = vcombine.high %v2622_v32, %v2622_v32  ;;  %v2488_v59 = vrot.slane %v2480_v36, %v4080_v25  ;;  %v2558_v42 = vsel %vm1913_vm2, %v2557_v53, 0.0  ;;  %v3778_v32 = vld [vmem:[%s5026_s3 + $0x50] sm:$0xff]   ;;  %v3781_v53 = vld [vmem:[%s5026_s3 + $0x68] sm:$0xff]  }
 0x3f4   :  { %v2538_v41 = vrot.slane %v2524_v28, %v4080_v25  ;;  %2541 = vst.msk [vmem:[#allocation3 + $0x2] sm:$0x1] %vm2465_vm12, %v2531_v35 }
 0x3f5   :  { %2633 = vst.msk [vmem:[#allocation3 + $0x11] sm:$0x1] %vm2465_vm12, %v2629_v56  ;;  %2634 = vst.msk [vmem:[#allocation3 + $0x41] sm:$0x1] %vm2465_vm12, %v2630_v8  ;;  %v2489_v46 = vcombine.high %v2488_v59, %v2488_v59  ;;  %v2496_v19 = vrot.slane %v2488_v59, %v4080_v25  ;;  %v2555_v21 = vpop.permute.xlu0 %2554  ;;  %v2436_v63 = vpop.permute.xlu1 %2435  ;;  %v3782_v8 = vld [vmem:[%s5026_s3 + $0x70] sm:$0xff]   ;;  %v3783_v59 = vld [vmem:[%s5026_s3 + $0x78] sm:$0xff]  }
 0x3f6   :  { %2542 = vst.msk [vmem:[#allocation3 + $0x32] sm:$0x1] %vm2465_vm12, %v2538_v41  ;;  %v2559_v57 = vsel %vm2438_vm0, %v2558_v42, %v2555_v21  ;;  %v2439_v44 = vsel %vm2438_vm0, 0.0, %v2436_v63 }
 0x3f7   :  { %v2503_v55 = vrot.slane %v2489_v46, %v4080_v25  ;;  %2506 = vst.msk [vmem:[#allocation3 + $0x1] sm:$0x1] %vm2465_vm12, %v2496_v19  ;;  %v2567_v22 = vrot.slane %v2559_v57, %v4080_v25  ;;  %v2447_v12 = vrot.slane %v2439_v44, %v4080_v25 }
 0x3f9   :  { %2507 = vst.msk [vmem:[#allocation3 + $0x31] sm:$0x1] %vm2465_vm12, %v2503_v55  ;;  %v2568_v45 = vcombine.high %v2567_v22, %v2567_v22  ;;  %v2575_v58 = vrot.slane %v2567_v22, %v4080_v25  ;;  %v2448_v39 = vcombine.high %v2447_v12, %v2447_v12  ;;  %v2455_v14 = vrot.slane %v2447_v12, %v4080_v25  ;;  %v2685_v9 = vpop.permute.xlu0 %2684  ;;  %v2723_v3 = vpop.permute.xlu1 %2722 }
 0x3fa   :  { %v2687_v61 = vsel %vm787_vm7, 0.0, %v2685_v9  ;;  %v2725_v52 = vsel %vm787_vm7, %v4858_v38, %v2723_v3  ;;  %vm2850_vm7 = vcmask 523264  }
 0x3fb   :  { %v2582_v15 = vrot.slane %v2568_v45, %v4080_v25  ;;  %2586 = vst.msk [vmem:[#allocation3 + $0x10] sm:$0x1] %vm2465_vm12, %v2575_v58  ;;  %v2462_v0 = vrot.slane %v2448_v39, %v4080_v25  ;;  %2466 = vst.msk [vmem:[#allocation3] sm:$0x1] %vm2465_vm12, %v2455_v14  ;;  %v2688_v62 = vsel %vm1913_vm2, %v2687_v61, 0.0  ;;  %v2726_v27 = vsel %vm1913_vm2, %v2725_v52, 0.0 }
 0x3fc   :  { %v2689_v4 = vsel %vm2438_vm0, %v2688_v62, 0.0  ;;  %v2727_v29 = vsel %vm2438_vm0, %v2726_v27, 0.0  ;;  %v2812_v37 = vld [vmem:[#allocation3 + $0x11] sm:$0xff]  ;;  %v4951_v1 = vld [vmem:[#allocation3 + $0x41] sm:$0xff] }
 0x3fd   :  { %2587 = vst.msk [vmem:[#allocation3 + $0x40] sm:$0x1] %vm2465_vm12, %v2582_v15  ;;  %2467 = vst.msk [vmem:[#allocation3 + $0x30] sm:$0x1] %vm2465_vm12, %v2462_v0  ;;  %v2697_v38 = vrot.slane %v2689_v4, %v4080_v25  ;;  %v2735_v30 = vrot.slane %v2727_v29, %v4080_v25 }
 0x3fe   :  { %v2811_v40 = vld [vmem:[#allocation3 + $0x1] sm:$0xff] }
 0x3ff   :  { %v2698_v6 = vcombine.high %v2697_v38, %v2697_v38  ;;  %v2705_v7 = vrot.slane %v2697_v38, %v4080_v25  ;;  %v2736_v47 = vcombine.high %v2735_v30, %v2735_v30  ;;  %v2743_v50 = vrot.slane %v2735_v30, %v4080_v25 }
 0x400   :  { %v2815_v10 = vpack.c.bf16 %v2812_v37, %v2811_v40  ;;  %v2813_v49 = vld [vmem:[#allocation3 + $0x31] sm:$0xff] }
 0x401   :  { %v2712_v11 = vrot.slane %v2698_v6, %v4080_v25  ;;  %2716 = vst.msk [vmem:[#allocation3 + $0x20] sm:$0x1] %vm2465_vm12, %v2705_v7  ;;  %v2750_v13 = vrot.slane %v2736_v47, %v4080_v25  ;;  %v2751_v51 = vcombine.high %v2743_v50, %v2743_v50  ;;  %v2816_v48 = vpack.c.bf16 %v4951_v1, %v2813_v49 }
 0x402   :  { %3621 = vmatprep.mubr.msk.bf16.mxu1 %vm2850_vm7, %v2815_v10  ;;  %v2797_v54 = vld [vmem:[#allocation3] sm:$0xff]  ;;  %v2798_v16 = vld [vmem:[#allocation3 + $0x10] sm:$0xff] }
 0x403   :  { %2717 = vst.msk [vmem:[#allocation3 + $0x50] sm:$0x1] %vm2465_vm12, %v2712_v11  ;;  %2754 = vst.msk [vmem:[#allocation3 + $0x21] sm:$0x1] %vm2465_vm12, %v2750_v13  ;;  %3622 = vmatmul.mubr.msk.bf16.vlgmr.msra.gmra.mrb[8].mxu1 %vm2850_vm7, %v2816_v48  ;;  %v2801_v25 = vpack.c.bf16 %v2798_v16, %v2797_v54 }
 0x404   :  { %2755 = vst.msk [vmem:[#allocation3 + $0x51] sm:$0x1] %vm2465_vm12, %v2751_v51  ;;  %3626 = vmatpush3.bf16.msra.mxu1 %v4888_v34  ;;  %v2799_v34 = vld [vmem:[#allocation3 + $0x30] sm:$0xff]  ;;  %v2800_v43 = vld [vmem:[#allocation3 + $0x40] sm:$0xff] }
 0x405   :  { %3633 = vmatprep.mubr.msk.bf16.mxu1 %vm2850_vm7, %v2801_v25  ;;  %3627 = vmatprep.subr.bf16.mxu1 %v3773_v26  ;;  %v2802_v33 = vpack.c.bf16 %v2800_v43, %v2799_v34 }
 0x408   :  { %3628 = vmatpush3.bf16.msra.mxu1 %v3773_v26 }
 0x409   :  { %3629 = vmatprep.subr.bf16.mxu1 %v3774_v2 }
 0x40a   :  { %v2986_v20 = vld [vmem:[#allocation3 + $0x20] sm:$0xff] }
 0x40b   :  { %v2989_v24 = vpack.c.bf16 %v2986_v20, %v2798_v16  ;;  %v2988_v28 = vld [vmem:[#allocation3 + $0x50] sm:$0xff]  ;;  %v3084_v35 = vld [vmem:[#allocation3 + $0x21] sm:$0xff] }
 0x40c   :  { %3630 = vmatpush3.bf16.msra.mxu1 %v3774_v2  ;;  %v2990_v36 = vpack.c.bf16 %v2988_v28, %v2800_v43  ;;  %v3087_v56 = vpack.c.bf16 %v3084_v35, %v2812_v37  ;;  %v3086_v41 = vld [vmem:[#allocation3 + $0x51] sm:$0xff] }
 0x40d   :  { %3631 = vmatprep.subr.bf16.mxu1 %v3775_v17  ;;  %v3088_v46 = vpack.c.bf16 %v3086_v41, %v4951_v1 }
 0x410   :  { %3632 = vmatpush3.bf16.msra.mxu1 %v3775_v17 }
 0x411   :  { %3637 = vmatprep.subr.bf16.mxu1 %v3776_v60 }
 0x413   :  { %3634 = vmatmul.mubr.msk.bf16.vlgmr.msra.gmra.mrb[8].mxu1 %vm2850_vm7, %v2802_v33 }
 0x414   :  { %3638 = vmatpush3.bf16.msra.mxu1 %v3776_v60  ;;  %3645 = vmatprep.mubr.msk.bf16.mxu1 %vm2850_vm7, %v2989_v24 }
 0x415   :  { %3639 = vmatprep.subr.bf16.mxu1 %v3777_v23 }
 0x418   :  { %3640 = vmatpush3.bf16.msra.mxu1 %v3777_v23 }
 0x419   :  { %3641 = vmatprep.subr.bf16.mxu1 %v3778_v32 }
 0x41c   :  { %3642 = vmatpush3.bf16.msra.mxu1 %v3778_v32 }
 0x41d   :  { %3643 = vmatprep.subr.bf16.mxu1 %v3779_v31 }
 0x420   :  { %3644 = vmatpush3.bf16.msra.mxu1 %v3779_v31 }
 0x421   :  { %3649 = vmatprep.subr.bf16.mxu1 %v3780_v5 }
 0x423   :  { %3646 = vmatmul.mubr.msk.bf16.vlgmr.msra.gmra.mrb[8].mxu1 %vm2850_vm7, %v2990_v36 }
 0x424   :  { %3650 = vmatpush3.bf16.msra.mxu1 %v3780_v5  ;;  %3657 = vmatprep.mubr.msk.bf16.mxu1 %vm2850_vm7, %v3087_v56 }
 0x425   :  { %3651 = vmatprep.subr.bf16.mxu1 %v3781_v53 }
 0x428   :  { %3652 = vmatpush3.bf16.msra.mxu1 %v3781_v53 }
 0x429   :  { %3653 = vmatprep.subr.bf16.mxu1 %v3782_v8 }
 0x42c   :  { %3654 = vmatpush3.bf16.msra.mxu1 %v3782_v8 }
 0x42d   :  { %3655 = vmatprep.subr.bf16.mxu1 %v3783_v59 }
 0x430   :  { %3656 = vmatpush3.bf16.msra.mxu1 %v3783_v59 }
 0x433   :  { %3658 = vmatmul.mubr.msk.bf16.vlgmr.msra.gmra.mrb[8].mxu1 %vm2850_vm7, %v3088_v46 }
 0x506   :  { %v3659_v19 = vpop.f32.mrb[8].mxu1 }
 0x507   :  { %vm3183_vm11 = vcmp.gt.f32.partialorder %v3659_v19, 0.0  ;;  %v3187_v42 = vmul.f32 0.2, %v3659_v19  ;;  %v3162_v21 = vpop.f32.mrb[9].mxu1 }
 0x508   :  { %vm3181_vm6 = vcmp.gt.f32.partialorder %v3162_v21, 0.0  ;;  %v3185_v63 = vmul.f32 0.2, %v3162_v21  ;;  %v3660_v57 = vpop.f32.mrb[10].mxu1 }
 0x509   :  { %v3191_v44 = vsel %vm3183_vm11, %v3659_v19, %v3187_v42  ;;  %vm3184_vm1 = vcmp.gt.f32.partialorder %v3660_v57, 0.0  ;;  %v3188_v55 = vmul.f32 0.2, %v3660_v57  ;;  %v3165_v22 = vpop.f32.mrb[11].mxu1 }
 0x50a   :  { %v3198_v12 = vsel %vm3193_vm4, %v3191_v44, 0.0  ;;  %v3189_v45 = vsel %vm3181_vm6, %v3162_v21, %v3185_v63  ;;  %vm3182_vm3 = vcmp.gt.f32.partialorder %v3165_v22, 0.0  ;;  %v3186_v58 = vmul.f32 0.2, %v3165_v22 }
 0x50b   :  { %v3196_v39 = vsel %vm3193_vm4, %v3189_v45, 0.0  ;;  %v3192_v14 = vsel %vm3184_vm1, %v3660_v57, %v3188_v55  ;;  %v3209_v61 = vsel %vm1913_vm2, %v3198_v12, 0.0 }
 0x50c   :  { %v3199_v9 = vsel %vm3193_vm4, %v3192_v14, 0.0  ;;  %v3190_v3 = vsel %vm3182_vm3, %v3165_v22, %v3186_v58  ;;  %v3200_v0 = vsel %vm1913_vm2, %v3196_v39, 0.0 }
 0x50d   :  { %v3210_v52 = vsel %vm1913_vm2, %v3199_v9, 0.0  ;;  %v3197_v15 = vsel %vm3193_vm4, %v3190_v3, 0.0 }
 0x50e   :  { %v3211_v62 = vadd.f32 %v3210_v52, %v3209_v61  ;;  %v3201_v27 = vsel %vm1913_vm2, %v3197_v15, 0.0  ;;  %vm3234_vm2 = vcmask 254976  }
 0x50f   :  { %v3202_v4 = vadd.f32 %v3201_v27, %v3200_v0 }
 0x510   :  { %v3212_v29 = vrot.slane %v3211_v62, 4 }
 0x511   :  { %v3203_v38 = vrot.slane %v3202_v4, 4 }
 0x512   :  { %v3213_v30 = vadd.f32 %v3212_v29, %v3211_v62 }
 0x513   :  { %v3204_v40 = vadd.f32 %v3203_v38, %v3202_v4 }
 0x514   :  { %v3214_v6 = vrot.slane %v3213_v30, 2 }
 0x515   :  { %v3205_v7 = vrot.slane %v3204_v40, 2 }
 0x516   :  { %v3215_v47 = vadd.f32 %v3214_v6, %v3213_v30 }
 0x517   :  { %v3206_v50 = vadd.f32 %v3205_v7, %v3204_v40 }
 0x518   :  { %v3216_v37 = vrot.slane %v3215_v47, 1 }
 0x519   :  { %v3207_v10 = vrot.slane %v3206_v50, 1 }
 0x51a   :  { %v3217_v49 = vadd.f32 %v3216_v37, %v3215_v47 }
 0x51b   :  { %v3208_v1 = vadd.f32 %v3207_v10, %v3206_v50 }
 0x51c   :  { %v3219_v11 = vmul.f32 0.25, %v3217_v49 }
 0x51d   :  { %v3218_v13 = vmul.f32 0.25, %v3208_v1 }
 0x51e   :  { %v3228_v51 = vmul.f32 %v3407_v18, %v3219_v11 }
 0x51f   :  { %v3227_v48 = vmul.f32 %v3407_v18, %v3218_v13 }
 0x520   :  { %v3231_v26 = vrot.slane %v3228_v51, 7 }
 0x522   :  { %v3232_v54 = vsel %vm741_vm15, %v3231_v26, %v3227_v48 }
 0x523   :  { %v3235_v16 = vsel %vm3234_vm2, %v3232_v54, 0.0 }
 0x524   :  { %3236 = vadd.xlane.f32.xlu1 %v3235_v16 }
 0x5b1   :  { %v3237_v25 = vpop.xlane.xlu1 %3236 }
 0x5b2   :  { %v3408_v2 = vmul.f32 -1.442695, %v3237_v25 }
 0x5b4   :  { %3786 = vpow2.f32 %v3408_v2 }
 0x5be   :  { %v3787_v17 = vpop.eup %3786 }
 0x5bf   :  { %v3241_v60 = vadd.f32 1.0, %v3787_v17 }
 0x5c1   :  { %3788 = vrcp.f32 %v3241_v60 }
 0x5cb   :  { %v3789_v34 = vpop.eup %3788 }
 0x5cc   :  { %3244 = vst [vmem:[%s5028_s5] sm:$0x3] %v3789_v34 }

</bundles_post_ra>
